<compile_context>
chip_gen: v7x
topology: tpu7x:2x2x1
jax: 0.10.0
libtpu: 0.0.40
codegen_flags: <defaults>
</compile_context>

<pallas_src>
import math

import jax
import jax.numpy as jnp
from jax.experimental import pallas as pl
from jax.experimental.pallas import tpu as pltpu

IMG = 32                        # input image spatial size
PATCH = 8                       # patch size -> 4x4 = 16 patches
GRID = IMG // PATCH
N_PATCH = GRID * GRID           # 16 image tokens
PD = PATCH * PATCH * 3          # 192 patch features
HIDDEN = 32                     # transformer hidden size
MLP_DIM = 64
C_UP = 8                        # upscaled mask-embedding channels
NUM_MASK_TOKENS = 4             # 3 multimask tokens + 1 single-mask token
NUM_MULTIMASK = 3
UP = 4                          # 4x4 image-embedding -> 16x16 low-res masks
UPC = UP * UP * C_UP            # 128 -> lane-dense upscale slab
LOW = GRID * UP                 # 16
LANE = 128


# --------------------------- packed weight layout ----------------------------
_W_ENTRIES = [                  # every matmul weight, stored as [HIDDEN, cols]
    ("patch_wT", PD),
    ("enc_qkv", 3 * HIDDEN), ("enc_wo", HIDDEN),
    ("enc_mlp1", MLP_DIM), ("enc_mlp2T", MLP_DIM),
    ("neck_w", HIDDEN),
    ("dec_qkv", 3 * HIDDEN), ("dec_wo", HIDDEN),
    ("t2i_q", HIDDEN), ("t2i_kv", 2 * HIDDEN), ("t2i_wo", HIDDEN),
    ("dec_mlp1", MLP_DIM), ("dec_mlp2T", MLP_DIM),
    ("i2t_q", HIDDEN), ("i2t_kv", 2 * HIDDEN), ("i2t_wo", HIDDEN),
    ("fin_q", HIDDEN), ("fin_kv", 2 * HIDDEN), ("fin_wo", HIDDEN),
    ("up_w", UPC), ("hw1", NUM_MASK_TOKENS * HIDDEN),
]

_B_ENTRIES = [                  # biases / LN params / PE tables / hyper tables
    ("pos_embed", N_PATCH, HIDDEN), ("dense_pe", N_PATCH, HIDDEN),
    ("hw2T", C_UP, NUM_MASK_TOKENS * HIDDEN),
    ("hb1_diag", NUM_MASK_TOKENS, NUM_MASK_TOKENS * HIDDEN),
    ("hmask", NUM_MASK_TOKENS, NUM_MASK_TOKENS * HIDDEN),
    ("hb2", NUM_MASK_TOKENS, C_UP),
    ("patch_b", 1, HIDDEN),
    ("enc_ln1_g", 1, HIDDEN), ("enc_ln1_b", 1, HIDDEN),
    ("enc_qkv_b", 1, 3 * HIDDEN), ("enc_bo", 1, HIDDEN),
    ("enc_ln2_g", 1, HIDDEN), ("enc_ln2_b", 1, HIDDEN),
    ("enc_mlp_b1", 1, MLP_DIM), ("enc_mlp_b2", 1, HIDDEN),
    ("neck_b", 1, HIDDEN), ("neck_ln_g", 1, HIDDEN), ("neck_ln_b", 1, HIDDEN),
    ("dec_ln1_g", 1, HIDDEN), ("dec_ln1_b", 1, HIDDEN),
    ("dec_qkv_b", 1, 3 * HIDDEN), ("dec_bo", 1, HIDDEN),
    ("dec_ln2_g", 1, HIDDEN), ("dec_ln2_b", 1, HIDDEN),
    ("t2i_bq", 1, HIDDEN), ("t2i_kvb", 1, 2 * HIDDEN), ("t2i_bo", 1, HIDDEN),
    ("dec_mlp_b1", 1, MLP_DIM), ("dec_mlp_b2", 1, HIDDEN),
    ("dec_ln3_g", 1, HIDDEN), ("dec_ln3_b", 1, HIDDEN),
    ("i2t_bq", 1, HIDDEN), ("i2t_kvb", 1, 2 * HIDDEN), ("i2t_bo", 1, HIDDEN),
    ("dec_ln4_g", 1, HIDDEN), ("dec_ln4_b", 1, HIDDEN),
    ("fin_bq", 1, HIDDEN), ("fin_kvb", 1, 2 * HIDDEN), ("fin_bo", 1, HIDDEN),
    ("dec_lnf_g", 1, HIDDEN), ("dec_lnf_b", 1, HIDDEN),
    ("up_b", 1, UPC),
]


def _round_up(x, m):
    return -(-x // m) * m


def _build_layout():
    woff, off = {}, 0
    for name, cols in _W_ENTRIES:
        off = _round_up(off, LANE)        # 128-lane aligned starts (aligned vld)
        woff[name] = (off, cols)
        off += cols
    nw = _round_up(off, LANE)
    boff, row = {}, 0
    for name, rows, cols in _B_ENTRIES:
        if rows > 1:
            row = _round_up(row, 8)       # sublane-tile aligned multi-row blocks
        boff[name] = (row, rows, cols)
        row += rows
    nb = _round_up(row, 8)
    return woff, nw, boff, nb


_WOFF, _NW, _BOFF, _NB = _build_layout()


# ------------------------------- fused kernel --------------------------------
def _sam_kernel(patches_ref, tokens_ref, wmat_ref, bias_ref, masks_ref):
    C = HIDDEN
    scale = 1.0 / math.sqrt(C)

    def W(name):                                  # bf16 weight slice, lazy load
        s, c = _WOFF[name]
        return wmat_ref[:, s:s + c]

    def Bv(name):                                 # f32 bias / LN / table slice
        r, nr, c = _BOFF[name]
        return bias_ref[r:r + nr, :c]

    def dot(a, w):                                # a @ w       (MXU, f32 acc)
        return jax.lax.dot_general(a.astype(jnp.bfloat16), w.astype(jnp.bfloat16),
                                   (((1,), (0,)), ((), ())),
                                   preferred_element_type=jnp.float32)

    def dot_nt(a, b):                             # a @ b^T     (MXU, f32 acc)
        return jax.lax.dot_general(a.astype(jnp.bfloat16), b.astype(jnp.bfloat16),
                                   (((1,), (1,)), ((), ())),
                                   preferred_element_type=jnp.float32)

    def ln(x, p):
        # one-pass stats: E[x] and E[x^2] reductions issue back-to-back on XLU
        mu = jnp.mean(x, axis=-1, keepdims=True)
        ms = jnp.mean(x * x, axis=-1, keepdims=True)
        var = ms - mu * mu
        # TODO(synk): HF SAM mixes 1e-6 / 1e-5 eps across its LayerNorms.
        return (x - mu) * jax.lax.rsqrt(var + 1e-6) * Bv(p + "_g") + Bv(p + "_b")

    def softmax_attn(q, k, v):
        # TODO(synk): single-head attention (real SAM is multi-head).
        s = dot_nt(q, k) * scale
        s = s - jnp.max(s, axis=-1, keepdims=True)
        e = jnp.exp(s)
        e = e * pl.reciprocal(jnp.sum(e, axis=-1, keepdims=True), approx=True)
        return dot(e, v)

    def self_attn(x, p):
        qkv = dot(x, W(p + "_qkv")) + Bv(p + "_qkv_b")     # fused [C,3C] proj
        q, k, v = qkv[:, :C], qkv[:, C:2 * C], qkv[:, 2 * C:]
        return dot(softmax_attn(q, k, v), W(p + "_wo")) + Bv(p + "_bo")

    def cross_attn(xq, xkv, p):
        q = dot(xq, W(p + "_q")) + Bv(p + "_bq")
        kv = dot(xkv, W(p + "_kv")) + Bv(p + "_kvb")       # fused [C,2C] proj
        k, v = kv[:, :C], kv[:, C:]
        return dot(softmax_attn(q, k, v), W(p + "_wo")) + Bv(p + "_bo")

    # ------------------------------ vision encoder ---------------------------
    x = dot_nt(patches_ref[0], W("patch_wT")) + Bv("patch_b") + Bv("pos_embed")
    x = x + self_attn(ln(x, "enc_ln1"), "enc")
    h = jax.nn.gelu(dot(ln(x, "enc_ln2"), W("enc_mlp1")) + Bv("enc_mlp_b1"))
    x = x + dot_nt(h, W("enc_mlp2T")) + Bv("enc_mlp_b2")
    # TODO(synk): SAM's neck is 1x1 + 3x3 convs; approximated by a pointwise conv.
    img = ln(dot(x, W("neck_w")) + Bv("neck_b"), "neck_ln")          # [nP, C]

    # --------------------- mask decoder (two-way transformer) ----------------
    src = img + Bv("dense_pe")
    t = tokens_ref[0]                                                # [T, C]
    t = ln(t + self_attn(t, "dec"), "dec_ln1")
    t = ln(t + cross_attn(t, src, "t2i"), "dec_ln2")
    h = jnp.maximum(dot(t, W("dec_mlp1")) + Bv("dec_mlp_b1"), 0.0)
    t = ln(t + dot_nt(h, W("dec_mlp2T")) + Bv("dec_mlp_b2"), "dec_ln3")
    src = ln(src + cross_attn(src, t, "i2t"), "dec_ln4")
    t = ln(t + cross_attn(t, src, "fin"), "dec_lnf")

    # Hyper-network: all 4 mask tokens in ONE block-diagonal matmul pair.
    # TODO(synk): SAM uses 3-layer per-token hypernetwork MLPs; 2 layers here.
    mask_toks = t[1:1 + NUM_MASK_TOKENS, :]                          # [4, C]
    hh = jnp.maximum(dot(mask_toks, W("hw1")) + Bv("hb1_diag"), 0.0) * Bv("hmask")
    hyper_in = dot_nt(hh, Bv("hw2T")) + Bv("hb2")                    # [4, C_UP]

    # Upscale + mask product, fused.  Output block is lane-dense [4, 256]; the
    # 16 narrow stores below hit only the VMEM output buffer (the HBM
    # writeback is one unmasked 256-lane DMA).
    # TODO(synk): SAM uses two stride-2 transposed convs; learned per-pixel
    #             linear expansion here.
    up = jax.nn.gelu(dot(src, W("up_w")) + Bv("up_b"))               # [nP, 128]
    for j in range(UP * UP):                                         # per-pixel offset
        masks_ref[0, :, j * N_PATCH:(j + 1) * N_PATCH] = dot_nt(
            hyper_in, up[:, j * C_UP:(j + 1) * C_UP])                # [4, nP]


def sam_fused_forward(patches, tokens, wmat, bias):
    """patches: [B, nP, PD], tokens: [B, T, C] -> masks [B, 4, 256] (py,px,gy,gx)."""
    B, nP, pd = patches.shape
    T = tokens.shape[1]
    return pl.pallas_call(
        _sam_kernel,
        out_shape=jax.ShapeDtypeStruct((B, NUM_MASK_TOKENS, UP * UP * N_PATCH),
                                       jnp.float32),
        grid=(B,),
        in_specs=[
            pl.BlockSpec((1, nP, pd), lambda b: (b, 0, 0)),
            pl.BlockSpec((1, T, HIDDEN), lambda b: (b, 0, 0)),
            pl.BlockSpec((HIDDEN, _NW), lambda b: (0, 0)),
            pl.BlockSpec((_NB, LANE), lambda b: (0, 0)),
        ],
        out_specs=pl.BlockSpec((1, NUM_MASK_TOKENS, UP * UP * N_PATCH),
                               lambda b: (b, 0, 0)),
        compiler_params=pltpu.CompilerParams(dimension_semantics=("parallel",)),
    )(patches, tokens, wmat, bias)


# --------------------------------- params ------------------------------------
def make_params():
    keys = iter(jax.random.split(jax.random.PRNGKey(0), 256))

    def randn(*shape, scale=0.05):
        return scale * jax.random.normal(next(keys), shape, dtype=jnp.float32)

    def zeros(*shape):
        return jnp.zeros(shape, jnp.float32)

    def ones(*shape):
        return jnp.ones(shape, jnp.float32)

    wv, bv = {}, {}

    # vision encoder
    wv["patch_wT"] = randn(PD, HIDDEN).T
    bv["patch_b"] = zeros(1, HIDDEN)
    bv["pos_embed"] = randn(N_PATCH, HIDDEN)
    bv["enc_ln1_g"], bv["enc_ln1_b"] = ones(1, HIDDEN), zeros(1, HIDDEN)
    wv["enc_qkv"] = randn(HIDDEN, 3 * HIDDEN); bv["enc_qkv_b"] = zeros(1, 3 * HIDDEN)
    wv["enc_wo"] = randn(HIDDEN, HIDDEN); bv["enc_bo"] = zeros(1, HIDDEN)
    bv["enc_ln2_g"], bv["enc_ln2_b"] = ones(1, HIDDEN), zeros(1, HIDDEN)
    wv["enc_mlp1"] = randn(HIDDEN, MLP_DIM); bv["enc_mlp_b1"] = zeros(1, MLP_DIM)
    wv["enc_mlp2T"] = randn(MLP_DIM, HIDDEN).T; bv["enc_mlp_b2"] = zeros(1, HIDDEN)
    wv["neck_w"] = randn(HIDDEN, HIDDEN); bv["neck_b"] = zeros(1, HIDDEN)
    bv["neck_ln_g"], bv["neck_ln_b"] = ones(1, HIDDEN), zeros(1, HIDDEN)

    # Fourier PE (dense PE hoisted out of the per-forward path)
    pe_gauss = randn(2, HIDDEN // 2, scale=1.0)
    ys = (jnp.arange(GRID, dtype=jnp.float32) + 0.5) / GRID
    xs = (jnp.arange(GRID, dtype=jnp.float32) + 0.5) / GRID
    gy, gx = jnp.meshgrid(ys, xs, indexing="ij")
    coords = jnp.stack([gx, gy], axis=-1).reshape(N_PATCH, 2)
    proj = (2.0 * jnp.pi) * ((2.0 * coords - 1.0) @ pe_gauss)
    bv["dense_pe"] = jnp.concatenate([jnp.sin(proj), jnp.cos(proj)], axis=-1)

    # mask decoder (two-way layer + final attention)
    bv["dec_ln1_g"], bv["dec_ln1_b"] = ones(1, HIDDEN), zeros(1, HIDDEN)
    wv["dec_qkv"] = randn(HIDDEN, 3 * HIDDEN); bv["dec_qkv_b"] = zeros(1, 3 * HIDDEN)
    wv["dec_wo"] = randn(HIDDEN, HIDDEN); bv["dec_bo"] = zeros(1, HIDDEN)
    bv["dec_ln2_g"], bv["dec_ln2_b"] = ones(1, HIDDEN), zeros(1, HIDDEN)
    wv["t2i_q"] = randn(HIDDEN, HIDDEN); bv["t2i_bq"] = zeros(1, HIDDEN)
    wv["t2i_kv"] = randn(HIDDEN, 2 * HIDDEN); bv["t2i_kvb"] = zeros(1, 2 * HIDDEN)
    wv["t2i_wo"] = randn(HIDDEN, HIDDEN); bv["t2i_bo"] = zeros(1, HIDDEN)
    wv["dec_mlp1"] = randn(HIDDEN, MLP_DIM); bv["dec_mlp_b1"] = zeros(1, MLP_DIM)
    wv["dec_mlp2T"] = randn(MLP_DIM, HIDDEN).T; bv["dec_mlp_b2"] = zeros(1, HIDDEN)
    bv["dec_ln3_g"], bv["dec_ln3_b"] = ones(1, HIDDEN), zeros(1, HIDDEN)
    wv["i2t_q"] = randn(HIDDEN, HIDDEN); bv["i2t_bq"] = zeros(1, HIDDEN)
    wv["i2t_kv"] = randn(HIDDEN, 2 * HIDDEN); bv["i2t_kvb"] = zeros(1, 2 * HIDDEN)
    wv["i2t_wo"] = randn(HIDDEN, HIDDEN); bv["i2t_bo"] = zeros(1, HIDDEN)
    bv["dec_ln4_g"], bv["dec_ln4_b"] = ones(1, HIDDEN), zeros(1, HIDDEN)
    wv["fin_q"] = randn(HIDDEN, HIDDEN); bv["fin_bq"] = zeros(1, HIDDEN)
    wv["fin_kv"] = randn(HIDDEN, 2 * HIDDEN); bv["fin_kvb"] = zeros(1, 2 * HIDDEN)
    wv["fin_wo"] = randn(HIDDEN, HIDDEN); bv["fin_bo"] = zeros(1, HIDDEN)
    bv["dec_lnf_g"], bv["dec_lnf_b"] = ones(1, HIDDEN), zeros(1, HIDDEN)

    # upscale + hyper-network, pre-packed into block-diagonal / stacked form
    wv["up_w"] = randn(HIDDEN, UPC); bv["up_b"] = zeros(1, UPC)
    hw1 = randn(NUM_MASK_TOKENS, HIDDEN, HIDDEN)
    hb1 = zeros(NUM_MASK_TOKENS, HIDDEN)
    hw2 = randn(NUM_MASK_TOKENS, HIDDEN, C_UP)
    hb2 = zeros(NUM_MASK_TOKENS, C_UP)
    wv["hw1"] = jnp.concatenate([hw1[m] for m in range(NUM_MASK_TOKENS)], axis=1)
    hb1_diag = jnp.zeros((NUM_MASK_TOKENS, NUM_MASK_TOKENS * HIDDEN), jnp.float32)
    hmask = jnp.zeros((NUM_MASK_TOKENS, NUM_MASK_TOKENS * HIDDEN), jnp.float32)
    for m in range(NUM_MASK_TOKENS):
        hb1_diag = hb1_diag.at[m, m * HIDDEN:(m + 1) * HIDDEN].set(hb1[m])
        hmask = hmask.at[m, m * HIDDEN:(m + 1) * HIDDEN].set(1.0)
    bv["hb1_diag"] = hb1_diag
    bv["hmask"] = hmask
    bv["hw2T"] = jnp.concatenate([hw2[m] for m in range(NUM_MASK_TOKENS)], axis=0).T
    bv["hb2"] = hb2

    # pack into two lane-dense slabs (2 DMAs per grid step instead of ~44)
    wmat = jnp.zeros((HIDDEN, _NW), jnp.float32)
    for name, cols in _W_ENTRIES:
        s, c = _WOFF[name]
        wmat = wmat.at[:, s:s + c].set(wv[name])
    bias = jnp.zeros((_NB, LANE), jnp.float32)
    for name, rows, cols in _B_ENTRIES:
        r, nr, c = _BOFF[name]
        bias = bias.at[r:r + nr, :c].set(bv[name])

    prompt = dict(
        pe_gauss=pe_gauss,
        point_label_embed=randn(1, HIDDEN),
        iou_token=randn(1, HIDDEN),
        mask_tokens=randn(NUM_MASK_TOKENS, HIDDEN),
    )
    return dict(wmat=wmat.astype(jnp.bfloat16), bias=bias, prompt=prompt)


# --------------------------------- model -------------------------------------
def sam_forward(pixel_values, input_points, params):
    wmat, bias, pr = params["wmat"], params["bias"], params["prompt"]
    B = pixel_values.shape[0]

    # NCHW -> channels-last patches [B, nP, p*p*3] (layout plumbing in XLA).
    x = jnp.transpose(pixel_values, (0, 2, 3, 1))
    x = x.reshape(B, GRID, PATCH, GRID, PATCH, 3)
    patches = jnp.transpose(x, (0, 1, 3, 2, 4, 5)).reshape(B, N_PATCH, PD)

    # Prompt encoder: tiny K=2 Fourier projection kept in XLA (setup/glue).
    # TODO(synk): point labels (fg/bg/pad) collapsed into one label embedding.
    PB, NP = input_points.shape[1], input_points.shape[2]
    coords = (input_points.reshape(B, PB * NP, 2) + 0.5) / IMG
    proj = (2.0 * jnp.pi) * ((2.0 * coords - 1.0) @ pr["pe_gauss"])
    sparse = jnp.concatenate([jnp.sin(proj), jnp.cos(proj)], axis=-1)
    sparse = sparse + pr["point_label_embed"]                     # [B, PB*NP, C]

    out_tokens = jnp.concatenate([pr["iou_token"], pr["mask_tokens"]], axis=0)
    tokens = jnp.concatenate(
        [jnp.broadcast_to(out_tokens[None], (B,) + out_tokens.shape), sparse],
        axis=1)                                                   # [B, T, C]

    # Single fused Pallas kernel: encoder + decoder + hyper-net + mask product.
    masks = sam_fused_forward(patches, tokens, wmat, bias)        # [B, 4, 256]

    # (py, px, gy, gx) columns -> (gy*UP+py, gx*UP+px): tiny XLA layout plumbing.
    m6 = masks.reshape(B, NUM_MASK_TOKENS, UP, UP, GRID, GRID)
    m6 = jnp.transpose(m6, (0, 1, 4, 2, 5, 3))
    masks_sp = m6.reshape(B, NUM_MASK_TOKENS, LOW, LOW)
    pred = masks_sp[:, 1:1 + NUM_MULTIMASK]                       # multimask out
    # TODO(synk): point_batch collapsed to 1; .cpu() in the wrapper is a no-op.
    return pred[:, None]                                          # [B, 1, 3, 16, 16]


if __name__ == "__main__":
    params = make_params()
    kp, ki = jax.random.split(jax.random.PRNGKey(0))
    pixel_values = jax.random.normal(kp, (2, 3, IMG, IMG), dtype=jnp.float32)
    input_points = jax.random.uniform(ki, (2, 1, 1, 2),
                                      minval=0.0, maxval=float(IMG),
                                      dtype=jnp.float32)

    fwd = jax.jit(sam_forward)
    pred_masks = fwd(pixel_values, input_points, params)
    jax.block_until_ready(pred_masks)

    expected = (2, 1, NUM_MULTIMASK, LOW, LOW)
    assert pred_masks.shape == expected, pred_masks.shape
    assert pred_masks.dtype == jnp.float32
    assert bool(jnp.all(jnp.isfinite(pred_masks)))
    print("KERNEL_OK")
</pallas_src>

<mosaic_0001>
module attributes {stable_mosaic.version = 11 : i64} {
  func.func @_sam_kernel(%arg0: i32, %arg1: memref<1x16x192xf32, #tpu.memory_space<vmem>>, %arg2: memref<1x6x32xf32, #tpu.memory_space<vmem>>, %arg3: memref<32x2816xbf16, #tpu.memory_space<vmem>>, %arg4: memref<96x128xf32, #tpu.memory_space<vmem>>, %arg5: memref<1x4x256xf32, #tpu.memory_space<vmem>>) attributes {dimension_semantics = [#tpu.dimension_semantics<parallel>], iteration_bounds = array<i64: 2>, scalar_prefetch = 0 : i64, scratch_operands = 0 : i64, tpu.core_type = #tpu.core_type<tc>, window_params = [{transform_indices = @transform_0, window_bounds = array<i64: 1, 16, 192>}, {transform_indices = @transform_1, window_bounds = array<i64: 1, 6, 32>}, {pipeline_mode = #tpu.pipeline_mode<synchronous>, transform_indices = @transform_2, window_bounds = array<i64: 32, 2816>}, {pipeline_mode = #tpu.pipeline_mode<synchronous>, transform_indices = @transform_3, window_bounds = array<i64: 96, 128>}, {transform_indices = @transform_4, window_bounds = array<i64: 1, 4, 256>}]} {
    %c0 = arith.constant 0 : index
    %c0_0 = arith.constant 0 : index
    %c0_1 = arith.constant 0 : index
    %0 = vector.load %arg1[%c0, %c0_0, %c0_1] : memref<1x16x192xf32, #tpu.memory_space<vmem>>, vector<1x16x192xf32>
    %1 = vector.shape_cast %0 : vector<1x16x192xf32> to vector<16x192xf32>
    %c0_2 = arith.constant 0 : index
    %c0_3 = arith.constant 0 : index
    %2 = vector.load %arg3[%c0_2, %c0_3] : memref<32x2816xbf16, #tpu.memory_space<vmem>>, vector<32x192xbf16>
    %3 = arith.truncf %1 : vector<16x192xf32> to vector<16x192xbf16>
    %cst = arith.constant dense<0.000000e+00> : vector<16x32xf32>
    %4 = tpu.matmul %3, %2, %cst {dimension_numbers = #tpu.dot_dimension_numbers<[1], [1], [0], [0], [0, 0, 1, 0], [], []>} : vector<16x192xbf16>, vector<32x192xbf16>, vector<16x32xf32> -> vector<16x32xf32>
    %c60 = arith.constant 60 : index
    %c0_4 = arith.constant 0 : index
    %5 = vector.load %arg4[%c60, %c0_4] : memref<96x128xf32, #tpu.memory_space<vmem>>, vector<1x32xf32>
    %6 = vector.broadcast %5 : vector<1x32xf32> to vector<16x32xf32>
    %7 = arith.addf %4, %6 : vector<16x32xf32>
    %c0_5 = arith.constant 0 : index
    %c0_6 = arith.constant 0 : index
    %8 = vector.load %arg4[%c0_5, %c0_6] : memref<96x128xf32, #tpu.memory_space<vmem>>, vector<16x32xf32>
    %9 = arith.addf %7, %8 : vector<16x32xf32>
    %cst_7 = arith.constant dense<0.000000e+00> : vector<16xf32>
    %10 = vector.multi_reduction <add>, %9, %cst_7 [1] : vector<16x32xf32> to vector<16xf32>
    %11 = vector.shape_cast %10 : vector<16xf32> to vector<16x1xf32>
    %cst_8 = arith.constant 3.200000e+01 : f32
    %12 = vector.broadcast %cst_8 : f32 to vector<16x1xf32>
    %13 = arith.divf %11, %12 : vector<16x1xf32>
    %14 = arith.mulf %9, %9 : vector<16x32xf32>
    %cst_9 = arith.constant dense<0.000000e+00> : vector<16xf32>
    %15 = vector.multi_reduction <add>, %14, %cst_9 [1] : vector<16x32xf32> to vector<16xf32>
    %16 = vector.shape_cast %15 : vector<16xf32> to vector<16x1xf32>
    %cst_10 = arith.constant 3.200000e+01 : f32
    %17 = vector.broadcast %cst_10 : f32 to vector<16x1xf32>
    %18 = arith.divf %16, %17 : vector<16x1xf32>
    %19 = arith.mulf %13, %13 : vector<16x1xf32>
    %20 = arith.subf %18, %19 : vector<16x1xf32>
    %21 = vector.broadcast %13 : vector<16x1xf32> to vector<16x32xf32>
    %22 = arith.subf %9, %21 : vector<16x32xf32>
    %cst_11 = arith.constant 9.99999997E-7 : f32
    %23 = vector.broadcast %cst_11 : f32 to vector<16x1xf32>
    %24 = arith.addf %20, %23 : vector<16x1xf32>
    %25 = math.rsqrt %24 : vector<16x1xf32>
    %26 = vector.broadcast %25 : vector<16x1xf32> to vector<16x32xf32>
    %27 = arith.mulf %22, %26 : vector<16x32xf32>
    %c61 = arith.constant 61 : index
    %c0_12 = arith.constant 0 : index
    %28 = vector.load %arg4[%c61, %c0_12] : memref<96x128xf32, #tpu.memory_space<vmem>>, vector<1x32xf32>
    %29 = vector.broadcast %28 : vector<1x32xf32> to vector<16x32xf32>
    %30 = arith.mulf %27, %29 : vector<16x32xf32>
    %c62 = arith.constant 62 : index
    %c0_13 = arith.constant 0 : index
    %31 = vector.load %arg4[%c62, %c0_13] : memref<96x128xf32, #tpu.memory_space<vmem>>, vector<1x32xf32>
    %32 = vector.broadcast %31 : vector<1x32xf32> to vector<16x32xf32>
    %33 = arith.addf %30, %32 : vector<16x32xf32>
    %c0_14 = arith.constant 0 : index
    %c256 = arith.constant 256 : index
    %34 = vector.load %arg3[%c0_14, %c256] : memref<32x2816xbf16, #tpu.memory_space<vmem>>, vector<32x96xbf16>
    %35 = arith.truncf %33 : vector<16x32xf32> to vector<16x32xbf16>
    %cst_15 = arith.constant dense<0.000000e+00> : vector<16x96xf32>
    %36 = tpu.matmul %35, %34, %cst_15 {dimension_numbers = #tpu.dot_dimension_numbers<[1], [0], [0], [1], [0, 0, 1, 1], [], []>} : vector<16x32xbf16>, vector<32x96xbf16>, vector<16x96xf32> -> vector<16x96xf32>
    %c63 = arith.constant 63 : index
    %c0_16 = arith.constant 0 : index
    %37 = vector.load %arg4[%c63, %c0_16] : memref<96x128xf32, #tpu.memory_space<vmem>>, vector<1x96xf32>
    %38 = vector.broadcast %37 : vector<1x96xf32> to vector<16x96xf32>
    %39 = arith.addf %36, %38 : vector<16x96xf32>
    %40 = vector.extract_strided_slice %39 {offsets = [0, 0], sizes = [16, 32], strides = [1, 1]} : vector<16x96xf32> to vector<16x32xf32>
    %41 = vector.extract_strided_slice %39 {offsets = [0, 32], sizes = [16, 32], strides = [1, 1]} : vector<16x96xf32> to vector<16x32xf32>
    %42 = vector.extract_strided_slice %39 {offsets = [0, 64], sizes = [16, 32], strides = [1, 1]} : vector<16x96xf32> to vector<16x32xf32>
    %43 = arith.truncf %40 : vector<16x32xf32> to vector<16x32xbf16>
    %44 = arith.truncf %41 : vector<16x32xf32> to vector<16x32xbf16>
    %cst_17 = arith.constant dense<0.000000e+00> : vector<16x16xf32>
    %45 = tpu.matmul %43, %44, %cst_17 {dimension_numbers = #tpu.dot_dimension_numbers<[1], [1], [0], [0], [0, 0, 1, 0], [], []>} : vector<16x32xbf16>, vector<16x32xbf16>, vector<16x16xf32> -> vector<16x16xf32>
    %cst_18 = arith.constant 0.176776692 : f32
    %46 = vector.broadcast %cst_18 : f32 to vector<16x16xf32>
    %47 = arith.mulf %45, %46 : vector<16x16xf32>
    %cst_19 = arith.constant dense<0xFF800000> : vector<16xf32>
    %48 = vector.multi_reduction <maximumf>, %47, %cst_19 [1] : vector<16x16xf32> to vector<16xf32>
    %49 = vector.shape_cast %48 : vector<16xf32> to vector<16x1xf32>
    %50 = vector.broadcast %49 : vector<16x1xf32> to vector<16x16xf32>
    %51 = arith.subf %47, %50 : vector<16x16xf32>
    %52 = math.exp %51 : vector<16x16xf32>
    %cst_20 = arith.constant dense<0.000000e+00> : vector<16xf32>
    %53 = vector.multi_reduction <add>, %52, %cst_20 [1] : vector<16x16xf32> to vector<16xf32>
    %54 = vector.shape_cast %53 : vector<16xf32> to vector<16x1xf32>
    %55 = tpu.reciprocal %54 {approx = true} : vector<16x1xf32> -> vector<16x1xf32>
    %56 = vector.broadcast %55 : vector<16x1xf32> to vector<16x16xf32>
    %57 = arith.mulf %52, %56 : vector<16x16xf32>
    %58 = arith.truncf %57 : vector<16x16xf32> to vector<16x16xbf16>
    %59 = arith.truncf %42 : vector<16x32xf32> to vector<16x32xbf16>
    %cst_21 = arith.constant dense<0.000000e+00> : vector<16x32xf32>
    %60 = tpu.matmul %58, %59, %cst_21 {dimension_numbers = #tpu.dot_dimension_numbers<[1], [0], [0], [1], [0, 0, 1, 1], [], []>} : vector<16x16xbf16>, vector<16x32xbf16>, vector<16x32xf32> -> vector<16x32xf32>
    %c0_22 = arith.constant 0 : index
    %c384 = arith.constant 384 : index
    %61 = vector.load %arg3[%c0_22, %c384] : memref<32x2816xbf16, #tpu.memory_space<vmem>>, vector<32x32xbf16>
    %62 = arith.truncf %60 : vector<16x32xf32> to vector<16x32xbf16>
    %cst_23 = arith.constant dense<0.000000e+00> : vector<16x32xf32>
    %63 = tpu.matmul %62, %61, %cst_23 {dimension_numbers = #tpu.dot_dimension_numbers<[1], [0], [0], [1], [0, 0, 1, 1], [], []>} : vector<16x32xbf16>, vector<32x32xbf16>, vector<16x32xf32> -> vector<16x32xf32>
    %c64 = arith.constant 64 : index
    %c0_24 = arith.constant 0 : index
    %64 = vector.load %arg4[%c64, %c0_24] : memref<96x128xf32, #tpu.memory_space<vmem>>, vector<1x32xf32>
    %65 = vector.broadcast %64 : vector<1x32xf32> to vector<16x32xf32>
    %66 = arith.addf %63, %65 : vector<16x32xf32>
    %67 = arith.addf %9, %66 : vector<16x32xf32>
    %cst_25 = arith.constant dense<0.000000e+00> : vector<16xf32>
    %68 = vector.multi_reduction <add>, %67, %cst_25 [1] : vector<16x32xf32> to vector<16xf32>
    %69 = vector.shape_cast %68 : vector<16xf32> to vector<16x1xf32>
    %cst_26 = arith.constant 3.200000e+01 : f32
    %70 = vector.broadcast %cst_26 : f32 to vector<16x1xf32>
    %71 = arith.divf %69, %70 : vector<16x1xf32>
    %72 = arith.mulf %67, %67 : vector<16x32xf32>
    %cst_27 = arith.constant dense<0.000000e+00> : vector<16xf32>
    %73 = vector.multi_reduction <add>, %72, %cst_27 [1] : vector<16x32xf32> to vector<16xf32>
    %74 = vector.shape_cast %73 : vector<16xf32> to vector<16x1xf32>
    %cst_28 = arith.constant 3.200000e+01 : f32
    %75 = vector.broadcast %cst_28 : f32 to vector<16x1xf32>
    %76 = arith.divf %74, %75 : vector<16x1xf32>
    %77 = arith.mulf %71, %71 : vector<16x1xf32>
    %78 = arith.subf %76, %77 : vector<16x1xf32>
    %79 = vector.broadcast %71 : vector<16x1xf32> to vector<16x32xf32>
    %80 = arith.subf %67, %79 : vector<16x32xf32>
    %cst_29 = arith.constant 9.99999997E-7 : f32
    %81 = vector.broadcast %cst_29 : f32 to vector<16x1xf32>
    %82 = arith.addf %78, %81 : vector<16x1xf32>
    %83 = math.rsqrt %82 : vector<16x1xf32>
    %84 = vector.broadcast %83 : vector<16x1xf32> to vector<16x32xf32>
    %85 = arith.mulf %80, %84 : vector<16x32xf32>
    %c65 = arith.constant 65 : index
    %c0_30 = arith.constant 0 : index
    %86 = vector.load %arg4[%c65, %c0_30] : memref<96x128xf32, #tpu.memory_space<vmem>>, vector<1x32xf32>
    %87 = vector.broadcast %86 : vector<1x32xf32> to vector<16x32xf32>
    %88 = arith.mulf %85, %87 : vector<16x32xf32>
    %c66 = arith.constant 66 : index
    %c0_31 = arith.constant 0 : index
    %89 = vector.load %arg4[%c66, %c0_31] : memref<96x128xf32, #tpu.memory_space<vmem>>, vector<1x32xf32>
    %90 = vector.broadcast %89 : vector<1x32xf32> to vector<16x32xf32>
    %91 = arith.addf %88, %90 : vector<16x32xf32>
    %c0_32 = arith.constant 0 : index
    %c512 = arith.constant 512 : index
    %92 = vector.load %arg3[%c0_32, %c512] : memref<32x2816xbf16, #tpu.memory_space<vmem>>, vector<32x64xbf16>
    %93 = arith.truncf %91 : vector<16x32xf32> to vector<16x32xbf16>
    %cst_33 = arith.constant dense<0.000000e+00> : vector<16x64xf32>
    %94 = tpu.matmul %93, %92, %cst_33 {dimension_numbers = #tpu.dot_dimension_numbers<[1], [0], [0], [1], [0, 0, 1, 1], [], []>} : vector<16x32xbf16>, vector<32x64xbf16>, vector<16x64xf32> -> vector<16x64xf32>
    %c67 = arith.constant 67 : index
    %c0_34 = arith.constant 0 : index
    %95 = vector.load %arg4[%c67, %c0_34] : memref<96x128xf32, #tpu.memory_space<vmem>>, vector<1x64xf32>
    %96 = vector.broadcast %95 : vector<1x64xf32> to vector<16x64xf32>
    %97 = arith.addf %94, %96 : vector<16x64xf32>
    %98 = arith.mulf %97, %97 : vector<16x64xf32>
    %99 = arith.mulf %97, %98 : vector<16x64xf32>
    %cst_35 = arith.constant 4.471500e-02 : f32
    %100 = vector.broadcast %cst_35 : f32 to vector<16x64xf32>
    %101 = arith.mulf %100, %99 : vector<16x64xf32>
    %102 = arith.addf %97, %101 : vector<16x64xf32>
    %cst_36 = arith.constant 0.797884583 : f32
    %103 = vector.broadcast %cst_36 : f32 to vector<16x64xf32>
    %104 = arith.mulf %103, %102 : vector<16x64xf32>
    %105 = math.tanh %104 : vector<16x64xf32>
    %cst_37 = arith.constant 1.000000e+00 : f32
    %106 = vector.broadcast %cst_37 : f32 to vector<16x64xf32>
    %107 = arith.addf %106, %105 : vector<16x64xf32>
    %cst_38 = arith.constant 5.000000e-01 : f32
    %108 = vector.broadcast %cst_38 : f32 to vector<16x64xf32>
    %109 = arith.mulf %108, %107 : vector<16x64xf32>
    %110 = arith.mulf %97, %109 : vector<16x64xf32>
    %c0_39 = arith.constant 0 : index
    %c640 = arith.constant 640 : index
    %111 = vector.load %arg3[%c0_39, %c640] : memref<32x2816xbf16, #tpu.memory_space<vmem>>, vector<32x64xbf16>
    %112 = arith.truncf %110 : vector<16x64xf32> to vector<16x64xbf16>
    %cst_40 = arith.constant dense<0.000000e+00> : vector<16x32xf32>
    %113 = tpu.matmul %112, %111, %cst_40 {dimension_numbers = #tpu.dot_dimension_numbers<[1], [1], [0], [0], [0, 0, 1, 0], [], []>} : vector<16x64xbf16>, vector<32x64xbf16>, vector<16x32xf32> -> vector<16x32xf32>
    %114 = arith.addf %67, %113 : vector<16x32xf32>
    %c68 = arith.constant 68 : index
    %c0_41 = arith.constant 0 : index
    %115 = vector.load %arg4[%c68, %c0_41] : memref<96x128xf32, #tpu.memory_space<vmem>>, vector<1x32xf32>
    %116 = vector.broadcast %115 : vector<1x32xf32> to vector<16x32xf32>
    %117 = arith.addf %114, %116 : vector<16x32xf32>
    %c0_42 = arith.constant 0 : index
    %c768 = arith.constant 768 : index
    %118 = vector.load %arg3[%c0_42, %c768] : memref<32x2816xbf16, #tpu.memory_space<vmem>>, vector<32x32xbf16>
    %119 = arith.truncf %117 : vector<16x32xf32> to vector<16x32xbf16>
    %cst_43 = arith.constant dense<0.000000e+00> : vector<16x32xf32>
    %120 = tpu.matmul %119, %118, %cst_43 {dimension_numbers = #tpu.dot_dimension_numbers<[1], [0], [0], [1], [0, 0, 1, 1], [], []>} : vector<16x32xbf16>, vector<32x32xbf16>, vector<16x32xf32> -> vector<16x32xf32>
    %c69 = arith.constant 69 : index
    %c0_44 = arith.constant 0 : index
    %121 = vector.load %arg4[%c69, %c0_44] : memref<96x128xf32, #tpu.memory_space<vmem>>, vector<1x32xf32>
    %122 = vector.broadcast %121 : vector<1x32xf32> to vector<16x32xf32>
    %123 = arith.addf %120, %122 : vector<16x32xf32>
    %cst_45 = arith.constant dense<0.000000e+00> : vector<16xf32>
    %124 = vector.multi_reduction <add>, %123, %cst_45 [1] : vector<16x32xf32> to vector<16xf32>
    %125 = vector.shape_cast %124 : vector<16xf32> to vector<16x1xf32>
    %cst_46 = arith.constant 3.200000e+01 : f32
    %126 = vector.broadcast %cst_46 : f32 to vector<16x1xf32>
    %127 = arith.divf %125, %126 : vector<16x1xf32>
    %128 = arith.mulf %123, %123 : vector<16x32xf32>
    %cst_47 = arith.constant dense<0.000000e+00> : vector<16xf32>
    %129 = vector.multi_reduction <add>, %128, %cst_47 [1] : vector<16x32xf32> to vector<16xf32>
    %130 = vector.shape_cast %129 : vector<16xf32> to vector<16x1xf32>
    %cst_48 = arith.constant 3.200000e+01 : f32
    %131 = vector.broadcast %cst_48 : f32 to vector<16x1xf32>
    %132 = arith.divf %130, %131 : vector<16x1xf32>
    %133 = arith.mulf %127, %127 : vector<16x1xf32>
    %134 = arith.subf %132, %133 : vector<16x1xf32>
    %135 = vector.broadcast %127 : vector<16x1xf32> to vector<16x32xf32>
    %136 = arith.subf %123, %135 : vector<16x32xf32>
    %cst_49 = arith.constant 9.99999997E-7 : f32
    %137 = vector.broadcast %cst_49 : f32 to vector<16x1xf32>
    %138 = arith.addf %134, %137 : vector<16x1xf32>
    %139 = math.rsqrt %138 : vector<16x1xf32>
    %140 = vector.broadcast %139 : vector<16x1xf32> to vector<16x32xf32>
    %141 = arith.mulf %136, %140 : vector<16x32xf32>
    %c70 = arith.constant 70 : index
    %c0_50 = arith.constant 0 : index
    %142 = vector.load %arg4[%c70, %c0_50] : memref<96x128xf32, #tpu.memory_space<vmem>>, vector<1x32xf32>
    %143 = vector.broadcast %142 : vector<1x32xf32> to vector<16x32xf32>
    %144 = arith.mulf %141, %143 : vector<16x32xf32>
    %c71 = arith.constant 71 : index
    %c0_51 = arith.constant 0 : index
    %145 = vector.load %arg4[%c71, %c0_51] : memref<96x128xf32, #tpu.memory_space<vmem>>, vector<1x32xf32>
    %146 = vector.broadcast %145 : vector<1x32xf32> to vector<16x32xf32>
    %147 = arith.addf %144, %146 : vector<16x32xf32>
    %c16 = arith.constant 16 : index
    %c0_52 = arith.constant 0 : index
    %148 = vector.load %arg4[%c16, %c0_52] : memref<96x128xf32, #tpu.memory_space<vmem>>, vector<16x32xf32>
    %149 = arith.addf %147, %148 : vector<16x32xf32>
    %c0_53 = arith.constant 0 : index
    %c0_54 = arith.constant 0 : index
    %c0_55 = arith.constant 0 : index
    %150 = vector.load %arg2[%c0_53, %c0_54, %c0_55] : memref<1x6x32xf32, #tpu.memory_space<vmem>>, vector<1x6x32xf32>
    %151 = vector.shape_cast %150 : vector<1x6x32xf32> to vector<6x32xf32>
    %c0_56 = arith.constant 0 : index
    %c896 = arith.constant 896 : index
    %152 = vector.load %arg3[%c0_56, %c896] : memref<32x2816xbf16, #tpu.memory_space<vmem>>, vector<32x96xbf16>
    %153 = arith.truncf %151 : vector<6x32xf32> to vector<6x32xbf16>
    %cst_57 = arith.constant dense<0.000000e+00> : vector<6x96xf32>
    %154 = tpu.matmul %153, %152, %cst_57 {dimension_numbers = #tpu.dot_dimension_numbers<[1], [0], [0], [1], [0, 0, 1, 1], [], []>} : vector<6x32xbf16>, vector<32x96xbf16>, vector<6x96xf32> -> vector<6x96xf32>
    %c74 = arith.constant 74 : index
    %c0_58 = arith.constant 0 : index
    %155 = vector.load %arg4[%c74, %c0_58] : memref<96x128xf32, #tpu.memory_space<vmem>>, vector<1x96xf32>
    %156 = vector.broadcast %155 : vector<1x96xf32> to vector<6x96xf32>
    %157 = arith.addf %154, %156 : vector<6x96xf32>
    %158 = vector.extract_strided_slice %157 {offsets = [0, 0], sizes = [6, 32], strides = [1, 1]} : vector<6x96xf32> to vector<6x32xf32>
    %159 = vector.extract_strided_slice %157 {offsets = [0, 32], sizes = [6, 32], strides = [1, 1]} : vector<6x96xf32> to vector<6x32xf32>
    %160 = vector.extract_strided_slice %157 {offsets = [0, 64], sizes = [6, 32], strides = [1, 1]} : vector<6x96xf32> to vector<6x32xf32>
    %161 = arith.truncf %158 : vector<6x32xf32> to vector<6x32xbf16>
    %162 = arith.truncf %159 : vector<6x32xf32> to vector<6x32xbf16>
    %cst_59 = arith.constant dense<0.000000e+00> : vector<6x6xf32>
    %163 = tpu.matmul %161, %162, %cst_59 {dimension_numbers = #tpu.dot_dimension_numbers<[1], [1], [0], [0], [0, 0, 1, 0], [], []>} : vector<6x32xbf16>, vector<6x32xbf16>, vector<6x6xf32> -> vector<6x6xf32>
    %cst_60 = arith.constant 0.176776692 : f32
    %164 = vector.broadcast %cst_60 : f32 to vector<6x6xf32>
    %165 = arith.mulf %163, %164 : vector<6x6xf32>
    %cst_61 = arith.constant dense<0xFF800000> : vector<6xf32>
    %166 = vector.multi_reduction <maximumf>, %165, %cst_61 [1] : vector<6x6xf32> to vector<6xf32>
    %167 = vector.shape_cast %166 : vector<6xf32> to vector<6x1xf32>
    %168 = vector.broadcast %167 : vector<6x1xf32> to vector<6x6xf32>
    %169 = arith.subf %165, %168 : vector<6x6xf32>
    %170 = math.exp %169 : vector<6x6xf32>
    %cst_62 = arith.constant dense<0.000000e+00> : vector<6xf32>
    %171 = vector.multi_reduction <add>, %170, %cst_62 [1] : vector<6x6xf32> to vector<6xf32>
    %172 = vector.shape_cast %171 : vector<6xf32> to vector<6x1xf32>
    %173 = tpu.reciprocal %172 {approx = true} : vector<6x1xf32> -> vector<6x1xf32>
    %174 = vector.broadcast %173 : vector<6x1xf32> to vector<6x6xf32>
    %175 = arith.mulf %170, %174 : vector<6x6xf32>
    %176 = arith.truncf %175 : vector<6x6xf32> to vector<6x6xbf16>
    %177 = arith.truncf %160 : vector<6x32xf32> to vector<6x32xbf16>
    %cst_63 = arith.constant dense<0.000000e+00> : vector<6x32xf32>
    %178 = tpu.matmul %176, %177, %cst_63 {dimension_numbers = #tpu.dot_dimension_numbers<[1], [0], [0], [1], [0, 0, 1, 1], [], []>} : vector<6x6xbf16>, vector<6x32xbf16>, vector<6x32xf32> -> vector<6x32xf32>
    %c0_64 = arith.constant 0 : index
    %c1024 = arith.constant 1024 : index
    %179 = vector.load %arg3[%c0_64, %c1024] : memref<32x2816xbf16, #tpu.memory_space<vmem>>, vector<32x32xbf16>
    %180 = arith.truncf %178 : vector<6x32xf32> to vector<6x32xbf16>
    %cst_65 = arith.constant dense<0.000000e+00> : vector<6x32xf32>
    %181 = tpu.matmul %180, %179, %cst_65 {dimension_numbers = #tpu.dot_dimension_numbers<[1], [0], [0], [1], [0, 0, 1, 1], [], []>} : vector<6x32xbf16>, vector<32x32xbf16>, vector<6x32xf32> -> vector<6x32xf32>
    %c75 = arith.constant 75 : index
    %c0_66 = arith.constant 0 : index
    %182 = vector.load %arg4[%c75, %c0_66] : memref<96x128xf32, #tpu.memory_space<vmem>>, vector<1x32xf32>
    %183 = vector.broadcast %182 : vector<1x32xf32> to vector<6x32xf32>
    %184 = arith.addf %181, %183 : vector<6x32xf32>
    %185 = arith.addf %151, %184 : vector<6x32xf32>
    %cst_67 = arith.constant dense<0.000000e+00> : vector<6xf32>
    %186 = vector.multi_reduction <add>, %185, %cst_67 [1] : vector<6x32xf32> to vector<6xf32>
    %187 = vector.shape_cast %186 : vector<6xf32> to vector<6x1xf32>
    %cst_68 = arith.constant 3.200000e+01 : f32
    %188 = vector.broadcast %cst_68 : f32 to vector<6x1xf32>
    %189 = arith.divf %187, %188 : vector<6x1xf32>
    %190 = arith.mulf %185, %185 : vector<6x32xf32>
    %cst_69 = arith.constant dense<0.000000e+00> : vector<6xf32>
    %191 = vector.multi_reduction <add>, %190, %cst_69 [1] : vector<6x32xf32> to vector<6xf32>
    %192 = vector.shape_cast %191 : vector<6xf32> to vector<6x1xf32>
    %cst_70 = arith.constant 3.200000e+01 : f32
    %193 = vector.broadcast %cst_70 : f32 to vector<6x1xf32>
    %194 = arith.divf %192, %193 : vector<6x1xf32>
    %195 = arith.mulf %189, %189 : vector<6x1xf32>
    %196 = arith.subf %194, %195 : vector<6x1xf32>
    %197 = vector.broadcast %189 : vector<6x1xf32> to vector<6x32xf32>
    %198 = arith.subf %185, %197 : vector<6x32xf32>
    %cst_71 = arith.constant 9.99999997E-7 : f32
    %199 = vector.broadcast %cst_71 : f32 to vector<6x1xf32>
    %200 = arith.addf %196, %199 : vector<6x1xf32>
    %201 = math.rsqrt %200 : vector<6x1xf32>
    %202 = vector.broadcast %201 : vector<6x1xf32> to vector<6x32xf32>
    %203 = arith.mulf %198, %202 : vector<6x32xf32>
    %c72 = arith.constant 72 : index
    %c0_72 = arith.constant 0 : index
    %204 = vector.load %arg4[%c72, %c0_72] : memref<96x128xf32, #tpu.memory_space<vmem>>, vector<1x32xf32>
    %205 = vector.broadcast %204 : vector<1x32xf32> to vector<6x32xf32>
    %206 = arith.mulf %203, %205 : vector<6x32xf32>
    %c73 = arith.constant 73 : index
    %c0_73 = arith.constant 0 : index
    %207 = vector.load %arg4[%c73, %c0_73] : memref<96x128xf32, #tpu.memory_space<vmem>>, vector<1x32xf32>
    %208 = vector.broadcast %207 : vector<1x32xf32> to vector<6x32xf32>
    %209 = arith.addf %206, %208 : vector<6x32xf32>
    %c0_74 = arith.constant 0 : index
    %c1152 = arith.constant 1152 : index
    %210 = vector.load %arg3[%c0_74, %c1152] : memref<32x2816xbf16, #tpu.memory_space<vmem>>, vector<32x32xbf16>
    %211 = arith.truncf %209 : vector<6x32xf32> to vector<6x32xbf16>
    %cst_75 = arith.constant dense<0.000000e+00> : vector<6x32xf32>
    %212 = tpu.matmul %211, %210, %cst_75 {dimension_numbers = #tpu.dot_dimension_numbers<[1], [0], [0], [1], [0, 0, 1, 1], [], []>} : vector<6x32xbf16>, vector<32x32xbf16>, vector<6x32xf32> -> vector<6x32xf32>
    %c78 = arith.constant 78 : index
    %c0_76 = arith.constant 0 : index
    %213 = vector.load %arg4[%c78, %c0_76] : memref<96x128xf32, #tpu.memory_space<vmem>>, vector<1x32xf32>
    %214 = vector.broadcast %213 : vector<1x32xf32> to vector<6x32xf32>
    %215 = arith.addf %212, %214 : vector<6x32xf32>
    %c0_77 = arith.constant 0 : index
    %c1280 = arith.constant 1280 : index
    %216 = vector.load %arg3[%c0_77, %c1280] : memref<32x2816xbf16, #tpu.memory_space<vmem>>, vector<32x64xbf16>
    %217 = arith.truncf %149 : vector<16x32xf32> to vector<16x32xbf16>
    %cst_78 = arith.constant dense<0.000000e+00> : vector<16x64xf32>
    %218 = tpu.matmul %217, %216, %cst_78 {dimension_numbers = #tpu.dot_dimension_numbers<[1], [0], [0], [1], [0, 0, 1, 1], [], []>} : vector<16x32xbf16>, vector<32x64xbf16>, vector<16x64xf32> -> vector<16x64xf32>
    %c79 = arith.constant 79 : index
    %c0_79 = arith.constant 0 : index
    %219 = vector.load %arg4[%c79, %c0_79] : memref<96x128xf32, #tpu.memory_space<vmem>>, vector<1x64xf32>
    %220 = vector.broadcast %219 : vector<1x64xf32> to vector<16x64xf32>
    %221 = arith.addf %218, %220 : vector<16x64xf32>
    %222 = vector.extract_strided_slice %221 {offsets = [0, 0], sizes = [16, 32], strides = [1, 1]} : vector<16x64xf32> to vector<16x32xf32>
    %223 = vector.extract_strided_slice %221 {offsets = [0, 32], sizes = [16, 32], strides = [1, 1]} : vector<16x64xf32> to vector<16x32xf32>
    %224 = arith.truncf %215 : vector<6x32xf32> to vector<6x32xbf16>
    %225 = arith.truncf %222 : vector<16x32xf32> to vector<16x32xbf16>
    %cst_80 = arith.constant dense<0.000000e+00> : vector<6x16xf32>
    %226 = tpu.matmul %224, %225, %cst_80 {dimension_numbers = #tpu.dot_dimension_numbers<[1], [1], [0], [0], [0, 0, 1, 0], [], []>} : vector<6x32xbf16>, vector<16x32xbf16>, vector<6x16xf32> -> vector<6x16xf32>
    %cst_81 = arith.constant 0.176776692 : f32
    %227 = vector.broadcast %cst_81 : f32 to vector<6x16xf32>
    %228 = arith.mulf %226, %227 : vector<6x16xf32>
    %cst_82 = arith.constant dense<0xFF800000> : vector<6xf32>
    %229 = vector.multi_reduction <maximumf>, %228, %cst_82 [1] : vector<6x16xf32> to vector<6xf32>
    %230 = vector.shape_cast %229 : vector<6xf32> to vector<6x1xf32>
    %231 = vector.broadcast %230 : vector<6x1xf32> to vector<6x16xf32>
    %232 = arith.subf %228, %231 : vector<6x16xf32>
    %233 = math.exp %232 : vector<6x16xf32>
    %cst_83 = arith.constant dense<0.000000e+00> : vector<6xf32>
    %234 = vector.multi_reduction <add>, %233, %cst_83 [1] : vector<6x16xf32> to vector<6xf32>
    %235 = vector.shape_cast %234 : vector<6xf32> to vector<6x1xf32>
    %236 = tpu.reciprocal %235 {approx = true} : vector<6x1xf32> -> vector<6x1xf32>
    %237 = vector.broadcast %236 : vector<6x1xf32> to vector<6x16xf32>
    %238 = arith.mulf %233, %237 : vector<6x16xf32>
    %239 = arith.truncf %238 : vector<6x16xf32> to vector<6x16xbf16>
    %240 = arith.truncf %223 : vector<16x32xf32> to vector<16x32xbf16>
    %cst_84 = arith.constant dense<0.000000e+00> : vector<6x32xf32>
    %241 = tpu.matmul %239, %240, %cst_84 {dimension_numbers = #tpu.dot_dimension_numbers<[1], [0], [0], [1], [0, 0, 1, 1], [], []>} : vector<6x16xbf16>, vector<16x32xbf16>, vector<6x32xf32> -> vector<6x32xf32>
    %c0_85 = arith.constant 0 : index
    %c1408 = arith.constant 1408 : index
    %242 = vector.load %arg3[%c0_85, %c1408] : memref<32x2816xbf16, #tpu.memory_space<vmem>>, vector<32x32xbf16>
    %243 = arith.truncf %241 : vector<6x32xf32> to vector<6x32xbf16>
    %cst_86 = arith.constant dense<0.000000e+00> : vector<6x32xf32>
    %244 = tpu.matmul %243, %242, %cst_86 {dimension_numbers = #tpu.dot_dimension_numbers<[1], [0], [0], [1], [0, 0, 1, 1], [], []>} : vector<6x32xbf16>, vector<32x32xbf16>, vector<6x32xf32> -> vector<6x32xf32>
    %c80 = arith.constant 80 : index
    %c0_87 = arith.constant 0 : index
    %245 = vector.load %arg4[%c80, %c0_87] : memref<96x128xf32, #tpu.memory_space<vmem>>, vector<1x32xf32>
    %246 = vector.broadcast %245 : vector<1x32xf32> to vector<6x32xf32>
    %247 = arith.addf %244, %246 : vector<6x32xf32>
    %248 = arith.addf %209, %247 : vector<6x32xf32>
    %cst_88 = arith.constant dense<0.000000e+00> : vector<6xf32>
    %249 = vector.multi_reduction <add>, %248, %cst_88 [1] : vector<6x32xf32> to vector<6xf32>
    %250 = vector.shape_cast %249 : vector<6xf32> to vector<6x1xf32>
    %cst_89 = arith.constant 3.200000e+01 : f32
    %251 = vector.broadcast %cst_89 : f32 to vector<6x1xf32>
    %252 = arith.divf %250, %251 : vector<6x1xf32>
    %253 = arith.mulf %248, %248 : vector<6x32xf32>
    %cst_90 = arith.constant dense<0.000000e+00> : vector<6xf32>
    %254 = vector.multi_reduction <add>, %253, %cst_90 [1] : vector<6x32xf32> to vector<6xf32>
    %255 = vector.shape_cast %254 : vector<6xf32> to vector<6x1xf32>
    %cst_91 = arith.constant 3.200000e+01 : f32
    %256 = vector.broadcast %cst_91 : f32 to vector<6x1xf32>
    %257 = arith.divf %255, %256 : vector<6x1xf32>
    %258 = arith.mulf %252, %252 : vector<6x1xf32>
    %259 = arith.subf %257, %258 : vector<6x1xf32>
    %260 = vector.broadcast %252 : vector<6x1xf32> to vector<6x32xf32>
    %261 = arith.subf %248, %260 : vector<6x32xf32>
    %cst_92 = arith.constant 9.99999997E-7 : f32
    %262 = vector.broadcast %cst_92 : f32 to vector<6x1xf32>
    %263 = arith.addf %259, %262 : vector<6x1xf32>
    %264 = math.rsqrt %263 : vector<6x1xf32>
    %265 = vector.broadcast %264 : vector<6x1xf32> to vector<6x32xf32>
    %266 = arith.mulf %261, %265 : vector<6x32xf32>
    %c76 = arith.constant 76 : index
    %c0_93 = arith.constant 0 : index
    %267 = vector.load %arg4[%c76, %c0_93] : memref<96x128xf32, #tpu.memory_space<vmem>>, vector<1x32xf32>
    %268 = vector.broadcast %267 : vector<1x32xf32> to vector<6x32xf32>
    %269 = arith.mulf %266, %268 : vector<6x32xf32>
    %c77 = arith.constant 77 : index
    %c0_94 = arith.constant 0 : index
    %270 = vector.load %arg4[%c77, %c0_94] : memref<96x128xf32, #tpu.memory_space<vmem>>, vector<1x32xf32>
    %271 = vector.broadcast %270 : vector<1x32xf32> to vector<6x32xf32>
    %272 = arith.addf %269, %271 : vector<6x32xf32>
    %c0_95 = arith.constant 0 : index
    %c1536 = arith.constant 1536 : index
    %273 = vector.load %arg3[%c0_95, %c1536] : memref<32x2816xbf16, #tpu.memory_space<vmem>>, vector<32x64xbf16>
    %274 = arith.truncf %272 : vector<6x32xf32> to vector<6x32xbf16>
    %cst_96 = arith.constant dense<0.000000e+00> : vector<6x64xf32>
    %275 = tpu.matmul %274, %273, %cst_96 {dimension_numbers = #tpu.dot_dimension_numbers<[1], [0], [0], [1], [0, 0, 1, 1], [], []>} : vector<6x32xbf16>, vector<32x64xbf16>, vector<6x64xf32> -> vector<6x64xf32>
    %c81 = arith.constant 81 : index
    %c0_97 = arith.constant 0 : index
    %276 = vector.load %arg4[%c81, %c0_97] : memref<96x128xf32, #tpu.memory_space<vmem>>, vector<1x64xf32>
    %277 = vector.broadcast %276 : vector<1x64xf32> to vector<6x64xf32>
    %278 = arith.addf %275, %277 : vector<6x64xf32>
    %cst_98 = arith.constant 0.000000e+00 : f32
    %279 = vector.broadcast %cst_98 : f32 to vector<6x64xf32>
    %280 = arith.maximumf %278, %279 : vector<6x64xf32>
    %c0_99 = arith.constant 0 : index
    %c1664 = arith.constant 1664 : index
    %281 = vector.load %arg3[%c0_99, %c1664] : memref<32x2816xbf16, #tpu.memory_space<vmem>>, vector<32x64xbf16>
    %282 = arith.truncf %280 : vector<6x64xf32> to vector<6x64xbf16>
    %cst_100 = arith.constant dense<0.000000e+00> : vector<6x32xf32>
    %283 = tpu.matmul %282, %281, %cst_100 {dimension_numbers = #tpu.dot_dimension_numbers<[1], [1], [0], [0], [0, 0, 1, 0], [], []>} : vector<6x64xbf16>, vector<32x64xbf16>, vector<6x32xf32> -> vector<6x32xf32>
    %284 = arith.addf %272, %283 : vector<6x32xf32>
    %c82 = arith.constant 82 : index
    %c0_101 = arith.constant 0 : index
    %285 = vector.load %arg4[%c82, %c0_101] : memref<96x128xf32, #tpu.memory_space<vmem>>, vector<1x32xf32>
    %286 = vector.broadcast %285 : vector<1x32xf32> to vector<6x32xf32>
    %287 = arith.addf %284, %286 : vector<6x32xf32>
    %cst_102 = arith.constant dense<0.000000e+00> : vector<6xf32>
    %288 = vector.multi_reduction <add>, %287, %cst_102 [1] : vector<6x32xf32> to vector<6xf32>
    %289 = vector.shape_cast %288 : vector<6xf32> to vector<6x1xf32>
    %cst_103 = arith.constant 3.200000e+01 : f32
    %290 = vector.broadcast %cst_103 : f32 to vector<6x1xf32>
    %291 = arith.divf %289, %290 : vector<6x1xf32>
    %292 = arith.mulf %287, %287 : vector<6x32xf32>
    %cst_104 = arith.constant dense<0.000000e+00> : vector<6xf32>
    %293 = vector.multi_reduction <add>, %292, %cst_104 [1] : vector<6x32xf32> to vector<6xf32>
    %294 = vector.shape_cast %293 : vector<6xf32> to vector<6x1xf32>
    %cst_105 = arith.constant 3.200000e+01 : f32
    %295 = vector.broadcast %cst_105 : f32 to vector<6x1xf32>
    %296 = arith.divf %294, %295 : vector<6x1xf32>
    %297 = arith.mulf %291, %291 : vector<6x1xf32>
    %298 = arith.subf %296, %297 : vector<6x1xf32>
    %299 = vector.broadcast %291 : vector<6x1xf32> to vector<6x32xf32>
    %300 = arith.subf %287, %299 : vector<6x32xf32>
    %cst_106 = arith.constant 9.99999997E-7 : f32
    %301 = vector.broadcast %cst_106 : f32 to vector<6x1xf32>
    %302 = arith.addf %298, %301 : vector<6x1xf32>
    %303 = math.rsqrt %302 : vector<6x1xf32>
    %304 = vector.broadcast %303 : vector<6x1xf32> to vector<6x32xf32>
    %305 = arith.mulf %300, %304 : vector<6x32xf32>
    %c83 = arith.constant 83 : index
    %c0_107 = arith.constant 0 : index
    %306 = vector.load %arg4[%c83, %c0_107] : memref<96x128xf32, #tpu.memory_space<vmem>>, vector<1x32xf32>
    %307 = vector.broadcast %306 : vector<1x32xf32> to vector<6x32xf32>
    %308 = arith.mulf %305, %307 : vector<6x32xf32>
    %c84 = arith.constant 84 : index
    %c0_108 = arith.constant 0 : index
    %309 = vector.load %arg4[%c84, %c0_108] : memref<96x128xf32, #tpu.memory_space<vmem>>, vector<1x32xf32>
    %310 = vector.broadcast %309 : vector<1x32xf32> to vector<6x32xf32>
    %311 = arith.addf %308, %310 : vector<6x32xf32>
    %c0_109 = arith.constant 0 : index
    %c1792 = arith.constant 1792 : index
    %312 = vector.load %arg3[%c0_109, %c1792] : memref<32x2816xbf16, #tpu.memory_space<vmem>>, vector<32x32xbf16>
    %313 = arith.truncf %149 : vector<16x32xf32> to vector<16x32xbf16>
    %cst_110 = arith.constant dense<0.000000e+00> : vector<16x32xf32>
    %314 = tpu.matmul %313, %312, %cst_110 {dimension_numbers = #tpu.dot_dimension_numbers<[1], [0], [0], [1], [0, 0, 1, 1], [], []>} : vector<16x32xbf16>, vector<32x32xbf16>, vector<16x32xf32> -> vector<16x32xf32>
    %c85 = arith.constant 85 : index
    %c0_111 = arith.constant 0 : index
    %315 = vector.load %arg4[%c85, %c0_111] : memref<96x128xf32, #tpu.memory_space<vmem>>, vector<1x32xf32>
    %316 = vector.broadcast %315 : vector<1x32xf32> to vector<16x32xf32>
    %317 = arith.addf %314, %316 : vector<16x32xf32>
    %c0_112 = arith.constant 0 : index
    %c1920 = arith.constant 1920 : index
    %318 = vector.load %arg3[%c0_112, %c1920] : memref<32x2816xbf16, #tpu.memory_space<vmem>>, vector<32x64xbf16>
    %319 = arith.truncf %311 : vector<6x32xf32> to vector<6x32xbf16>
    %cst_113 = arith.constant dense<0.000000e+00> : vector<6x64xf32>
    %320 = tpu.matmul %319, %318, %cst_113 {dimension_numbers = #tpu.dot_dimension_numbers<[1], [0], [0], [1], [0, 0, 1, 1], [], []>} : vector<6x32xbf16>, vector<32x64xbf16>, vector<6x64xf32> -> vector<6x64xf32>
    %c86 = arith.constant 86 : index
    %c0_114 = arith.constant 0 : index
    %321 = vector.load %arg4[%c86, %c0_114] : memref<96x128xf32, #tpu.memory_space<vmem>>, vector<1x64xf32>
    %322 = vector.broadcast %321 : vector<1x64xf32> to vector<6x64xf32>
    %323 = arith.addf %320, %322 : vector<6x64xf32>
    %324 = vector.extract_strided_slice %323 {offsets = [0, 0], sizes = [6, 32], strides = [1, 1]} : vector<6x64xf32> to vector<6x32xf32>
    %325 = vector.extract_strided_slice %323 {offsets = [0, 32], sizes = [6, 32], strides = [1, 1]} : vector<6x64xf32> to vector<6x32xf32>
    %326 = arith.truncf %317 : vector<16x32xf32> to vector<16x32xbf16>
    %327 = arith.truncf %324 : vector<6x32xf32> to vector<6x32xbf16>
    %cst_115 = arith.constant dense<0.000000e+00> : vector<16x6xf32>
    %328 = tpu.matmul %326, %327, %cst_115 {dimension_numbers = #tpu.dot_dimension_numbers<[1], [1], [0], [0], [0, 0, 1, 0], [], []>} : vector<16x32xbf16>, vector<6x32xbf16>, vector<16x6xf32> -> vector<16x6xf32>
    %cst_116 = arith.constant 0.176776692 : f32
    %329 = vector.broadcast %cst_116 : f32 to vector<16x6xf32>
    %330 = arith.mulf %328, %329 : vector<16x6xf32>
    %cst_117 = arith.constant dense<0xFF800000> : vector<16xf32>
    %331 = vector.multi_reduction <maximumf>, %330, %cst_117 [1] : vector<16x6xf32> to vector<16xf32>
    %332 = vector.shape_cast %331 : vector<16xf32> to vector<16x1xf32>
    %333 = vector.broadcast %332 : vector<16x1xf32> to vector<16x6xf32>
    %334 = arith.subf %330, %333 : vector<16x6xf32>
    %335 = math.exp %334 : vector<16x6xf32>
    %cst_118 = arith.constant dense<0.000000e+00> : vector<16xf32>
    %336 = vector.multi_reduction <add>, %335, %cst_118 [1] : vector<16x6xf32> to vector<16xf32>
    %337 = vector.shape_cast %336 : vector<16xf32> to vector<16x1xf32>
    %338 = tpu.reciprocal %337 {approx = true} : vector<16x1xf32> -> vector<16x1xf32>
    %339 = vector.broadcast %338 : vector<16x1xf32> to vector<16x6xf32>
    %340 = arith.mulf %335, %339 : vector<16x6xf32>
    %341 = arith.truncf %340 : vector<16x6xf32> to vector<16x6xbf16>
    %342 = arith.truncf %325 : vector<6x32xf32> to vector<6x32xbf16>
    %cst_119 = arith.constant dense<0.000000e+00> : vector<16x32xf32>
    %343 = tpu.matmul %341, %342, %cst_119 {dimension_numbers = #tpu.dot_dimension_numbers<[1], [0], [0], [1], [0, 0, 1, 1], [], []>} : vector<16x6xbf16>, vector<6x32xbf16>, vector<16x32xf32> -> vector<16x32xf32>
    %c0_120 = arith.constant 0 : index
    %c2048 = arith.constant 2048 : index
    %344 = vector.load %arg3[%c0_120, %c2048] : memref<32x2816xbf16, #tpu.memory_space<vmem>>, vector<32x32xbf16>
    %345 = arith.truncf %343 : vector<16x32xf32> to vector<16x32xbf16>
    %cst_121 = arith.constant dense<0.000000e+00> : vector<16x32xf32>
    %346 = tpu.matmul %345, %344, %cst_121 {dimension_numbers = #tpu.dot_dimension_numbers<[1], [0], [0], [1], [0, 0, 1, 1], [], []>} : vector<16x32xbf16>, vector<32x32xbf16>, vector<16x32xf32> -> vector<16x32xf32>
    %c87 = arith.constant 87 : index
    %c0_122 = arith.constant 0 : index
    %347 = vector.load %arg4[%c87, %c0_122] : memref<96x128xf32, #tpu.memory_space<vmem>>, vector<1x32xf32>
    %348 = vector.broadcast %347 : vector<1x32xf32> to vector<16x32xf32>
    %349 = arith.addf %346, %348 : vector<16x32xf32>
    %350 = arith.addf %149, %349 : vector<16x32xf32>
    %cst_123 = arith.constant dense<0.000000e+00> : vector<16xf32>
    %351 = vector.multi_reduction <add>, %350, %cst_123 [1] : vector<16x32xf32> to vector<16xf32>
    %352 = vector.shape_cast %351 : vector<16xf32> to vector<16x1xf32>
    %cst_124 = arith.constant 3.200000e+01 : f32
    %353 = vector.broadcast %cst_124 : f32 to vector<16x1xf32>
    %354 = arith.divf %352, %353 : vector<16x1xf32>
    %355 = arith.mulf %350, %350 : vector<16x32xf32>
    %cst_125 = arith.constant dense<0.000000e+00> : vector<16xf32>
    %356 = vector.multi_reduction <add>, %355, %cst_125 [1] : vector<16x32xf32> to vector<16xf32>
    %357 = vector.shape_cast %356 : vector<16xf32> to vector<16x1xf32>
    %cst_126 = arith.constant 3.200000e+01 : f32
    %358 = vector.broadcast %cst_126 : f32 to vector<16x1xf32>
    %359 = arith.divf %357, %358 : vector<16x1xf32>
    %360 = arith.mulf %354, %354 : vector<16x1xf32>
    %361 = arith.subf %359, %360 : vector<16x1xf32>
    %362 = vector.broadcast %354 : vector<16x1xf32> to vector<16x32xf32>
    %363 = arith.subf %350, %362 : vector<16x32xf32>
    %cst_127 = arith.constant 9.99999997E-7 : f32
    %364 = vector.broadcast %cst_127 : f32 to vector<16x1xf32>
    %365 = arith.addf %361, %364 : vector<16x1xf32>
    %366 = math.rsqrt %365 : vector<16x1xf32>
    %367 = vector.broadcast %366 : vector<16x1xf32> to vector<16x32xf32>
    %368 = arith.mulf %363, %367 : vector<16x32xf32>
    %c88 = arith.constant 88 : index
    %c0_128 = arith.constant 0 : index
    %369 = vector.load %arg4[%c88, %c0_128] : memref<96x128xf32, #tpu.memory_space<vmem>>, vector<1x32xf32>
    %370 = vector.broadcast %369 : vector<1x32xf32> to vector<16x32xf32>
    %371 = arith.mulf %368, %370 : vector<16x32xf32>
    %c89 = arith.constant 89 : index
    %c0_129 = arith.constant 0 : index
    %372 = vector.load %arg4[%c89, %c0_129] : memref<96x128xf32, #tpu.memory_space<vmem>>, vector<1x32xf32>
    %373 = vector.broadcast %372 : vector<1x32xf32> to vector<16x32xf32>
    %374 = arith.addf %371, %373 : vector<16x32xf32>
    %c0_130 = arith.constant 0 : index
    %c2176 = arith.constant 2176 : index
    %375 = vector.load %arg3[%c0_130, %c2176] : memref<32x2816xbf16, #tpu.memory_space<vmem>>, vector<32x32xbf16>
    %376 = arith.truncf %311 : vector<6x32xf32> to vector<6x32xbf16>
    %cst_131 = arith.constant dense<0.000000e+00> : vector<6x32xf32>
    %377 = tpu.matmul %376, %375, %cst_131 {dimension_numbers = #tpu.dot_dimension_numbers<[1], [0], [0], [1], [0, 0, 1, 1], [], []>} : vector<6x32xbf16>, vector<32x32xbf16>, vector<6x32xf32> -> vector<6x32xf32>
    %c90 = arith.constant 90 : index
    %c0_132 = arith.constant 0 : index
    %378 = vector.load %arg4[%c90, %c0_132] : memref<96x128xf32, #tpu.memory_space<vmem>>, vector<1x32xf32>
    %379 = vector.broadcast %378 : vector<1x32xf32> to vector<6x32xf32>
    %380 = arith.addf %377, %379 : vector<6x32xf32>
    %c0_133 = arith.constant 0 : index
    %c2304 = arith.constant 2304 : index
    %381 = vector.load %arg3[%c0_133, %c2304] : memref<32x2816xbf16, #tpu.memory_space<vmem>>, vector<32x64xbf16>
    %382 = arith.truncf %374 : vector<16x32xf32> to vector<16x32xbf16>
    %cst_134 = arith.constant dense<0.000000e+00> : vector<16x64xf32>
    %383 = tpu.matmul %382, %381, %cst_134 {dimension_numbers = #tpu.dot_dimension_numbers<[1], [0], [0], [1], [0, 0, 1, 1], [], []>} : vector<16x32xbf16>, vector<32x64xbf16>, vector<16x64xf32> -> vector<16x64xf32>
    %c91 = arith.constant 91 : index
    %c0_135 = arith.constant 0 : index
    %384 = vector.load %arg4[%c91, %c0_135] : memref<96x128xf32, #tpu.memory_space<vmem>>, vector<1x64xf32>
    %385 = vector.broadcast %384 : vector<1x64xf32> to vector<16x64xf32>
    %386 = arith.addf %383, %385 : vector<16x64xf32>
    %387 = vector.extract_strided_slice %386 {offsets = [0, 0], sizes = [16, 32], strides = [1, 1]} : vector<16x64xf32> to vector<16x32xf32>
    %388 = vector.extract_strided_slice %386 {offsets = [0, 32], sizes = [16, 32], strides = [1, 1]} : vector<16x64xf32> to vector<16x32xf32>
    %389 = arith.truncf %380 : vector<6x32xf32> to vector<6x32xbf16>
    %390 = arith.truncf %387 : vector<16x32xf32> to vector<16x32xbf16>
    %cst_136 = arith.constant dense<0.000000e+00> : vector<6x16xf32>
    %391 = tpu.matmul %389, %390, %cst_136 {dimension_numbers = #tpu.dot_dimension_numbers<[1], [1], [0], [0], [0, 0, 1, 0], [], []>} : vector<6x32xbf16>, vector<16x32xbf16>, vector<6x16xf32> -> vector<6x16xf32>
    %cst_137 = arith.constant 0.176776692 : f32
    %392 = vector.broadcast %cst_137 : f32 to vector<6x16xf32>
    %393 = arith.mulf %391, %392 : vector<6x16xf32>
    %cst_138 = arith.constant dense<0xFF800000> : vector<6xf32>
    %394 = vector.multi_reduction <maximumf>, %393, %cst_138 [1] : vector<6x16xf32> to vector<6xf32>
    %395 = vector.shape_cast %394 : vector<6xf32> to vector<6x1xf32>
    %396 = vector.broadcast %395 : vector<6x1xf32> to vector<6x16xf32>
    %397 = arith.subf %393, %396 : vector<6x16xf32>
    %398 = math.exp %397 : vector<6x16xf32>
    %cst_139 = arith.constant dense<0.000000e+00> : vector<6xf32>
    %399 = vector.multi_reduction <add>, %398, %cst_139 [1] : vector<6x16xf32> to vector<6xf32>
    %400 = vector.shape_cast %399 : vector<6xf32> to vector<6x1xf32>
    %401 = tpu.reciprocal %400 {approx = true} : vector<6x1xf32> -> vector<6x1xf32>
    %402 = vector.broadcast %401 : vector<6x1xf32> to vector<6x16xf32>
    %403 = arith.mulf %398, %402 : vector<6x16xf32>
    %404 = arith.truncf %403 : vector<6x16xf32> to vector<6x16xbf16>
    %405 = arith.truncf %388 : vector<16x32xf32> to vector<16x32xbf16>
    %cst_140 = arith.constant dense<0.000000e+00> : vector<6x32xf32>
    %406 = tpu.matmul %404, %405, %cst_140 {dimension_numbers = #tpu.dot_dimension_numbers<[1], [0], [0], [1], [0, 0, 1, 1], [], []>} : vector<6x16xbf16>, vector<16x32xbf16>, vector<6x32xf32> -> vector<6x32xf32>
    %c0_141 = arith.constant 0 : index
    %c2432 = arith.constant 2432 : index
    %407 = vector.load %arg3[%c0_141, %c2432] : memref<32x2816xbf16, #tpu.memory_space<vmem>>, vector<32x32xbf16>
    %408 = arith.truncf %406 : vector<6x32xf32> to vector<6x32xbf16>
    %cst_142 = arith.constant dense<0.000000e+00> : vector<6x32xf32>
    %409 = tpu.matmul %408, %407, %cst_142 {dimension_numbers = #tpu.dot_dimension_numbers<[1], [0], [0], [1], [0, 0, 1, 1], [], []>} : vector<6x32xbf16>, vector<32x32xbf16>, vector<6x32xf32> -> vector<6x32xf32>
    %c92 = arith.constant 92 : index
    %c0_143 = arith.constant 0 : index
    %410 = vector.load %arg4[%c92, %c0_143] : memref<96x128xf32, #tpu.memory_space<vmem>>, vector<1x32xf32>
    %411 = vector.broadcast %410 : vector<1x32xf32> to vector<6x32xf32>
    %412 = arith.addf %409, %411 : vector<6x32xf32>
    %413 = arith.addf %311, %412 : vector<6x32xf32>
    %cst_144 = arith.constant dense<0.000000e+00> : vector<6xf32>
    %414 = vector.multi_reduction <add>, %413, %cst_144 [1] : vector<6x32xf32> to vector<6xf32>
    %415 = vector.shape_cast %414 : vector<6xf32> to vector<6x1xf32>
    %cst_145 = arith.constant 3.200000e+01 : f32
    %416 = vector.broadcast %cst_145 : f32 to vector<6x1xf32>
    %417 = arith.divf %415, %416 : vector<6x1xf32>
    %418 = arith.mulf %413, %413 : vector<6x32xf32>
    %cst_146 = arith.constant dense<0.000000e+00> : vector<6xf32>
    %419 = vector.multi_reduction <add>, %418, %cst_146 [1] : vector<6x32xf32> to vector<6xf32>
    %420 = vector.shape_cast %419 : vector<6xf32> to vector<6x1xf32>
    %cst_147 = arith.constant 3.200000e+01 : f32
    %421 = vector.broadcast %cst_147 : f32 to vector<6x1xf32>
    %422 = arith.divf %420, %421 : vector<6x1xf32>
    %423 = arith.mulf %417, %417 : vector<6x1xf32>
    %424 = arith.subf %422, %423 : vector<6x1xf32>
    %425 = vector.broadcast %417 : vector<6x1xf32> to vector<6x32xf32>
    %426 = arith.subf %413, %425 : vector<6x32xf32>
    %cst_148 = arith.constant 9.99999997E-7 : f32
    %427 = vector.broadcast %cst_148 : f32 to vector<6x1xf32>
    %428 = arith.addf %424, %427 : vector<6x1xf32>
    %429 = math.rsqrt %428 : vector<6x1xf32>
    %430 = vector.broadcast %429 : vector<6x1xf32> to vector<6x32xf32>
    %431 = arith.mulf %426, %430 : vector<6x32xf32>
    %c93 = arith.constant 93 : index
    %c0_149 = arith.constant 0 : index
    %432 = vector.load %arg4[%c93, %c0_149] : memref<96x128xf32, #tpu.memory_space<vmem>>, vector<1x32xf32>
    %433 = vector.broadcast %432 : vector<1x32xf32> to vector<6x32xf32>
    %434 = arith.mulf %431, %433 : vector<6x32xf32>
    %c94 = arith.constant 94 : index
    %c0_150 = arith.constant 0 : index
    %435 = vector.load %arg4[%c94, %c0_150] : memref<96x128xf32, #tpu.memory_space<vmem>>, vector<1x32xf32>
    %436 = vector.broadcast %435 : vector<1x32xf32> to vector<6x32xf32>
    %437 = arith.addf %434, %436 : vector<6x32xf32>
    %438 = vector.extract_strided_slice %437 {offsets = [1, 0], sizes = [4, 32], strides = [1, 1]} : vector<6x32xf32> to vector<4x32xf32>
    %c0_151 = arith.constant 0 : index
    %c2688 = arith.constant 2688 : index
    %439 = vector.load %arg3[%c0_151, %c2688] : memref<32x2816xbf16, #tpu.memory_space<vmem>>, vector<32x128xbf16>
    %440 = arith.truncf %438 : vector<4x32xf32> to vector<4x32xbf16>
    %cst_152 = arith.constant dense<0.000000e+00> : vector<4x128xf32>
    %441 = tpu.matmul %440, %439, %cst_152 {dimension_numbers = #tpu.dot_dimension_numbers<[1], [0], [0], [1], [0, 0, 1, 1], [], []>} : vector<4x32xbf16>, vector<32x128xbf16>, vector<4x128xf32> -> vector<4x128xf32>
    %c40 = arith.constant 40 : index
    %c0_153 = arith.constant 0 : index
    %442 = vector.load %arg4[%c40, %c0_153] : memref<96x128xf32, #tpu.memory_space<vmem>>, vector<4x128xf32>
    %443 = arith.addf %441, %442 : vector<4x128xf32>
    %cst_154 = arith.constant 0.000000e+00 : f32
    %444 = vector.broadcast %cst_154 : f32 to vector<4x128xf32>
    %445 = arith.maximumf %443, %444 : vector<4x128xf32>
    %c48 = arith.constant 48 : index
    %c0_155 = arith.constant 0 : index
    %446 = vector.load %arg4[%c48, %c0_155] : memref<96x128xf32, #tpu.memory_space<vmem>>, vector<4x128xf32>
    %447 = arith.mulf %445, %446 : vector<4x128xf32>
    %c32 = arith.constant 32 : index
    %c0_156 = arith.constant 0 : index
    %448 = vector.load %arg4[%c32, %c0_156] : memref<96x128xf32, #tpu.memory_space<vmem>>, vector<8x128xf32>
    %449 = arith.truncf %447 : vector<4x128xf32> to vector<4x128xbf16>
    %450 = arith.truncf %448 : vector<8x128xf32> to vector<8x128xbf16>
    %cst_157 = arith.constant dense<0.000000e+00> : vector<4x8xf32>
    %451 = tpu.matmul %449, %450, %cst_157 {dimension_numbers = #tpu.dot_dimension_numbers<[1], [1], [0], [0], [0, 0, 1, 0], [], []>} : vector<4x128xbf16>, vector<8x128xbf16>, vector<4x8xf32> -> vector<4x8xf32>
    %c56 = arith.constant 56 : index
    %c0_158 = arith.constant 0 : index
    %452 = vector.load %arg4[%c56, %c0_158] : memref<96x128xf32, #tpu.memory_space<vmem>>, vector<4x8xf32>
    %453 = arith.addf %451, %452 : vector<4x8xf32>
    %c0_159 = arith.constant 0 : index
    %c2560 = arith.constant 2560 : index
    %454 = vector.load %arg3[%c0_159, %c2560] : memref<32x2816xbf16, #tpu.memory_space<vmem>>, vector<32x128xbf16>
    %455 = arith.truncf %374 : vector<16x32xf32> to vector<16x32xbf16>
    %cst_160 = arith.constant dense<0.000000e+00> : vector<16x128xf32>
    %456 = tpu.matmul %455, %454, %cst_160 {dimension_numbers = #tpu.dot_dimension_numbers<[1], [0], [0], [1], [0, 0, 1, 1], [], []>} : vector<16x32xbf16>, vector<32x128xbf16>, vector<16x128xf32> -> vector<16x128xf32>
    %c95 = arith.constant 95 : index
    %c0_161 = arith.constant 0 : index
    %457 = vector.load %arg4[%c95, %c0_161] : memref<96x128xf32, #tpu.memory_space<vmem>>, vector<1x128xf32>
    %458 = vector.broadcast %457 : vector<1x128xf32> to vector<16x128xf32>
    %459 = arith.addf %456, %458 : vector<16x128xf32>
    %460 = arith.mulf %459, %459 : vector<16x128xf32>
    %461 = arith.mulf %459, %460 : vector<16x128xf32>
    %cst_162 = arith.constant 4.471500e-02 : f32
    %462 = vector.broadcast %cst_162 : f32 to vector<16x128xf32>
    %463 = arith.mulf %462, %461 : vector<16x128xf32>
    %464 = arith.addf %459, %463 : vector<16x128xf32>
    %cst_163 = arith.constant 0.797884583 : f32
    %465 = vector.broadcast %cst_163 : f32 to vector<16x128xf32>
    %466 = arith.mulf %465, %464 : vector<16x128xf32>
    %467 = math.tanh %466 : vector<16x128xf32>
    %cst_164 = arith.constant 1.000000e+00 : f32
    %468 = vector.broadcast %cst_164 : f32 to vector<16x128xf32>
    %469 = arith.addf %468, %467 : vector<16x128xf32>
    %cst_165 = arith.constant 5.000000e-01 : f32
    %470 = vector.broadcast %cst_165 : f32 to vector<16x128xf32>
    %471 = arith.mulf %470, %469 : vector<16x128xf32>
    %472 = arith.mulf %459, %471 : vector<16x128xf32>
    %473 = vector.extract_strided_slice %472 {offsets = [0, 0], sizes = [16, 8], strides = [1, 1]} : vector<16x128xf32> to vector<16x8xf32>
    %474 = arith.truncf %453 : vector<4x8xf32> to vector<4x8xbf16>
    %475 = arith.truncf %473 : vector<16x8xf32> to vector<16x8xbf16>
    %cst_166 = arith.constant dense<0.000000e+00> : vector<4x16xf32>
    %476 = tpu.matmul %474, %475, %cst_166 {dimension_numbers = #tpu.dot_dimension_numbers<[1], [1], [0], [0], [0, 0, 1, 0], [], []>} : vector<4x8xbf16>, vector<16x8xbf16>, vector<4x16xf32> -> vector<4x16xf32>
    %c0_167 = arith.constant 0 : index
    %c0_168 = arith.constant 0 : index
    %c0_169 = arith.constant 0 : index
    %477 = vector.load %arg5[%c0_167, %c0_168, %c0_169] : memref<1x4x256xf32, #tpu.memory_space<vmem>>, vector<1x4x16xf32>
    %478 = vector.shape_cast %477 : vector<1x4x16xf32> to vector<4x16xf32>
    %479 = vector.shape_cast %476 : vector<4x16xf32> to vector<1x4x16xf32>
    tpu.vector_store %arg5[%c0_167, %c0_168, %c0_169], %479 {strides = array<i32>} : memref<1x4x256xf32, #tpu.memory_space<vmem>>, vector<1x4x16xf32>,
    %480 = vector.extract_strided_slice %472 {offsets = [0, 8], sizes = [16, 8], strides = [1, 1]} : vector<16x128xf32> to vector<16x8xf32>
    %481 = arith.truncf %453 : vector<4x8xf32> to vector<4x8xbf16>
    %482 = arith.truncf %480 : vector<16x8xf32> to vector<16x8xbf16>
    %cst_170 = arith.constant dense<0.000000e+00> : vector<4x16xf32>
    %483 = tpu.matmul %481, %482, %cst_170 {dimension_numbers = #tpu.dot_dimension_numbers<[1], [1], [0], [0], [0, 0, 1, 0], [], []>} : vector<4x8xbf16>, vector<16x8xbf16>, vector<4x16xf32> -> vector<4x16xf32>
    %c0_171 = arith.constant 0 : index
    %c0_172 = arith.constant 0 : index
    %c16_173 = arith.constant 16 : index
    %484 = vector.load %arg5[%c0_171, %c0_172, %c16_173] : memref<1x4x256xf32, #tpu.memory_space<vmem>>, vector<1x4x16xf32>
    %485 = vector.shape_cast %484 : vector<1x4x16xf32> to vector<4x16xf32>
    %486 = vector.shape_cast %483 : vector<4x16xf32> to vector<1x4x16xf32>
    tpu.vector_store %arg5[%c0_171, %c0_172, %c16_173], %486 {strides = array<i32>} : memref<1x4x256xf32, #tpu.memory_space<vmem>>, vector<1x4x16xf32>,
    %487 = vector.extract_strided_slice %472 {offsets = [0, 16], sizes = [16, 8], strides = [1, 1]} : vector<16x128xf32> to vector<16x8xf32>
    %488 = arith.truncf %453 : vector<4x8xf32> to vector<4x8xbf16>
    %489 = arith.truncf %487 : vector<16x8xf32> to vector<16x8xbf16>
    %cst_174 = arith.constant dense<0.000000e+00> : vector<4x16xf32>
    %490 = tpu.matmul %488, %489, %cst_174 {dimension_numbers = #tpu.dot_dimension_numbers<[1], [1], [0], [0], [0, 0, 1, 0], [], []>} : vector<4x8xbf16>, vector<16x8xbf16>, vector<4x16xf32> -> vector<4x16xf32>
    %c0_175 = arith.constant 0 : index
    %c0_176 = arith.constant 0 : index
    %c32_177 = arith.constant 32 : index
    %491 = vector.load %arg5[%c0_175, %c0_176, %c32_177] : memref<1x4x256xf32, #tpu.memory_space<vmem>>, vector<1x4x16xf32>
    %492 = vector.shape_cast %491 : vector<1x4x16xf32> to vector<4x16xf32>
    %493 = vector.shape_cast %490 : vector<4x16xf32> to vector<1x4x16xf32>
    tpu.vector_store %arg5[%c0_175, %c0_176, %c32_177], %493 {strides = array<i32>} : memref<1x4x256xf32, #tpu.memory_space<vmem>>, vector<1x4x16xf32>,
    %494 = vector.extract_strided_slice %472 {offsets = [0, 24], sizes = [16, 8], strides = [1, 1]} : vector<16x128xf32> to vector<16x8xf32>
    %495 = arith.truncf %453 : vector<4x8xf32> to vector<4x8xbf16>
    %496 = arith.truncf %494 : vector<16x8xf32> to vector<16x8xbf16>
    %cst_178 = arith.constant dense<0.000000e+00> : vector<4x16xf32>
    %497 = tpu.matmul %495, %496, %cst_178 {dimension_numbers = #tpu.dot_dimension_numbers<[1], [1], [0], [0], [0, 0, 1, 0], [], []>} : vector<4x8xbf16>, vector<16x8xbf16>, vector<4x16xf32> -> vector<4x16xf32>
    %c0_179 = arith.constant 0 : index
    %c0_180 = arith.constant 0 : index
    %c48_181 = arith.constant 48 : index
    %498 = vector.load %arg5[%c0_179, %c0_180, %c48_181] : memref<1x4x256xf32, #tpu.memory_space<vmem>>, vector<1x4x16xf32>
    %499 = vector.shape_cast %498 : vector<1x4x16xf32> to vector<4x16xf32>
    %500 = vector.shape_cast %497 : vector<4x16xf32> to vector<1x4x16xf32>
    tpu.vector_store %arg5[%c0_179, %c0_180, %c48_181], %500 {strides = array<i32>} : memref<1x4x256xf32, #tpu.memory_space<vmem>>, vector<1x4x16xf32>,
    %501 = vector.extract_strided_slice %472 {offsets = [0, 32], sizes = [16, 8], strides = [1, 1]} : vector<16x128xf32> to vector<16x8xf32>
    %502 = arith.truncf %453 : vector<4x8xf32> to vector<4x8xbf16>
    %503 = arith.truncf %501 : vector<16x8xf32> to vector<16x8xbf16>
    %cst_182 = arith.constant dense<0.000000e+00> : vector<4x16xf32>
    %504 = tpu.matmul %502, %503, %cst_182 {dimension_numbers = #tpu.dot_dimension_numbers<[1], [1], [0], [0], [0, 0, 1, 0], [], []>} : vector<4x8xbf16>, vector<16x8xbf16>, vector<4x16xf32> -> vector<4x16xf32>
    %c0_183 = arith.constant 0 : index
    %c0_184 = arith.constant 0 : index
    %c64_185 = arith.constant 64 : index
    %505 = vector.load %arg5[%c0_183, %c0_184, %c64_185] : memref<1x4x256xf32, #tpu.memory_space<vmem>>, vector<1x4x16xf32>
    %506 = vector.shape_cast %505 : vector<1x4x16xf32> to vector<4x16xf32>
    %507 = vector.shape_cast %504 : vector<4x16xf32> to vector<1x4x16xf32>
    tpu.vector_store %arg5[%c0_183, %c0_184, %c64_185], %507 {strides = array<i32>} : memref<1x4x256xf32, #tpu.memory_space<vmem>>, vector<1x4x16xf32>,
    %508 = vector.extract_strided_slice %472 {offsets = [0, 40], sizes = [16, 8], strides = [1, 1]} : vector<16x128xf32> to vector<16x8xf32>
    %509 = arith.truncf %453 : vector<4x8xf32> to vector<4x8xbf16>
    %510 = arith.truncf %508 : vector<16x8xf32> to vector<16x8xbf16>
    %cst_186 = arith.constant dense<0.000000e+00> : vector<4x16xf32>
    %511 = tpu.matmul %509, %510, %cst_186 {dimension_numbers = #tpu.dot_dimension_numbers<[1], [1], [0], [0], [0, 0, 1, 0], [], []>} : vector<4x8xbf16>, vector<16x8xbf16>, vector<4x16xf32> -> vector<4x16xf32>
    %c0_187 = arith.constant 0 : index
    %c0_188 = arith.constant 0 : index
    %c80_189 = arith.constant 80 : index
    %512 = vector.load %arg5[%c0_187, %c0_188, %c80_189] : memref<1x4x256xf32, #tpu.memory_space<vmem>>, vector<1x4x16xf32>
    %513 = vector.shape_cast %512 : vector<1x4x16xf32> to vector<4x16xf32>
    %514 = vector.shape_cast %511 : vector<4x16xf32> to vector<1x4x16xf32>
    tpu.vector_store %arg5[%c0_187, %c0_188, %c80_189], %514 {strides = array<i32>} : memref<1x4x256xf32, #tpu.memory_space<vmem>>, vector<1x4x16xf32>,
    %515 = vector.extract_strided_slice %472 {offsets = [0, 48], sizes = [16, 8], strides = [1, 1]} : vector<16x128xf32> to vector<16x8xf32>
    %516 = arith.truncf %453 : vector<4x8xf32> to vector<4x8xbf16>
    %517 = arith.truncf %515 : vector<16x8xf32> to vector<16x8xbf16>
    %cst_190 = arith.constant dense<0.000000e+00> : vector<4x16xf32>
    %518 = tpu.matmul %516, %517, %cst_190 {dimension_numbers = #tpu.dot_dimension_numbers<[1], [1], [0], [0], [0, 0, 1, 0], [], []>} : vector<4x8xbf16>, vector<16x8xbf16>, vector<4x16xf32> -> vector<4x16xf32>
    %c0_191 = arith.constant 0 : index
    %c0_192 = arith.constant 0 : index
    %c96 = arith.constant 96 : index
    %519 = vector.load %arg5[%c0_191, %c0_192, %c96] : memref<1x4x256xf32, #tpu.memory_space<vmem>>, vector<1x4x16xf32>
    %520 = vector.shape_cast %519 : vector<1x4x16xf32> to vector<4x16xf32>
    %521 = vector.shape_cast %518 : vector<4x16xf32> to vector<1x4x16xf32>
    tpu.vector_store %arg5[%c0_191, %c0_192, %c96], %521 {strides = array<i32>} : memref<1x4x256xf32, #tpu.memory_space<vmem>>, vector<1x4x16xf32>,
    %522 = vector.extract_strided_slice %472 {offsets = [0, 56], sizes = [16, 8], strides = [1, 1]} : vector<16x128xf32> to vector<16x8xf32>
    %523 = arith.truncf %453 : vector<4x8xf32> to vector<4x8xbf16>
    %524 = arith.truncf %522 : vector<16x8xf32> to vector<16x8xbf16>
    %cst_193 = arith.constant dense<0.000000e+00> : vector<4x16xf32>
    %525 = tpu.matmul %523, %524, %cst_193 {dimension_numbers = #tpu.dot_dimension_numbers<[1], [1], [0], [0], [0, 0, 1, 0], [], []>} : vector<4x8xbf16>, vector<16x8xbf16>, vector<4x16xf32> -> vector<4x16xf32>
    %c0_194 = arith.constant 0 : index
    %c0_195 = arith.constant 0 : index
    %c112 = arith.constant 112 : index
    %526 = vector.load %arg5[%c0_194, %c0_195, %c112] : memref<1x4x256xf32, #tpu.memory_space<vmem>>, vector<1x4x16xf32>
    %527 = vector.shape_cast %526 : vector<1x4x16xf32> to vector<4x16xf32>
    %528 = vector.shape_cast %525 : vector<4x16xf32> to vector<1x4x16xf32>
    tpu.vector_store %arg5[%c0_194, %c0_195, %c112], %528 {strides = array<i32>} : memref<1x4x256xf32, #tpu.memory_space<vmem>>, vector<1x4x16xf32>,
    %529 = vector.extract_strided_slice %472 {offsets = [0, 64], sizes = [16, 8], strides = [1, 1]} : vector<16x128xf32> to vector<16x8xf32>
    %530 = arith.truncf %453 : vector<4x8xf32> to vector<4x8xbf16>
    %531 = arith.truncf %529 : vector<16x8xf32> to vector<16x8xbf16>
    %cst_196 = arith.constant dense<0.000000e+00> : vector<4x16xf32>
    %532 = tpu.matmul %530, %531, %cst_196 {dimension_numbers = #tpu.dot_dimension_numbers<[1], [1], [0], [0], [0, 0, 1, 0], [], []>} : vector<4x8xbf16>, vector<16x8xbf16>, vector<4x16xf32> -> vector<4x16xf32>
    %c0_197 = arith.constant 0 : index
    %c0_198 = arith.constant 0 : index
    %c128 = arith.constant 128 : index
    %533 = vector.load %arg5[%c0_197, %c0_198, %c128] : memref<1x4x256xf32, #tpu.memory_space<vmem>>, vector<1x4x16xf32>
    %534 = vector.shape_cast %533 : vector<1x4x16xf32> to vector<4x16xf32>
    %535 = vector.shape_cast %532 : vector<4x16xf32> to vector<1x4x16xf32>
    tpu.vector_store %arg5[%c0_197, %c0_198, %c128], %535 {strides = array<i32>} : memref<1x4x256xf32, #tpu.memory_space<vmem>>, vector<1x4x16xf32>,
    %536 = vector.extract_strided_slice %472 {offsets = [0, 72], sizes = [16, 8], strides = [1, 1]} : vector<16x128xf32> to vector<16x8xf32>
    %537 = arith.truncf %453 : vector<4x8xf32> to vector<4x8xbf16>
    %538 = arith.truncf %536 : vector<16x8xf32> to vector<16x8xbf16>
    %cst_199 = arith.constant dense<0.000000e+00> : vector<4x16xf32>
    %539 = tpu.matmul %537, %538, %cst_199 {dimension_numbers = #tpu.dot_dimension_numbers<[1], [1], [0], [0], [0, 0, 1, 0], [], []>} : vector<4x8xbf16>, vector<16x8xbf16>, vector<4x16xf32> -> vector<4x16xf32>
    %c0_200 = arith.constant 0 : index
    %c0_201 = arith.constant 0 : index
    %c144 = arith.constant 144 : index
    %540 = vector.load %arg5[%c0_200, %c0_201, %c144] : memref<1x4x256xf32, #tpu.memory_space<vmem>>, vector<1x4x16xf32>
    %541 = vector.shape_cast %540 : vector<1x4x16xf32> to vector<4x16xf32>
    %542 = vector.shape_cast %539 : vector<4x16xf32> to vector<1x4x16xf32>
    tpu.vector_store %arg5[%c0_200, %c0_201, %c144], %542 {strides = array<i32>} : memref<1x4x256xf32, #tpu.memory_space<vmem>>, vector<1x4x16xf32>,
    %543 = vector.extract_strided_slice %472 {offsets = [0, 80], sizes = [16, 8], strides = [1, 1]} : vector<16x128xf32> to vector<16x8xf32>
    %544 = arith.truncf %453 : vector<4x8xf32> to vector<4x8xbf16>
    %545 = arith.truncf %543 : vector<16x8xf32> to vector<16x8xbf16>
    %cst_202 = arith.constant dense<0.000000e+00> : vector<4x16xf32>
    %546 = tpu.matmul %544, %545, %cst_202 {dimension_numbers = #tpu.dot_dimension_numbers<[1], [1], [0], [0], [0, 0, 1, 0], [], []>} : vector<4x8xbf16>, vector<16x8xbf16>, vector<4x16xf32> -> vector<4x16xf32>
    %c0_203 = arith.constant 0 : index
    %c0_204 = arith.constant 0 : index
    %c160 = arith.constant 160 : index
    %547 = vector.load %arg5[%c0_203, %c0_204, %c160] : memref<1x4x256xf32, #tpu.memory_space<vmem>>, vector<1x4x16xf32>
    %548 = vector.shape_cast %547 : vector<1x4x16xf32> to vector<4x16xf32>
    %549 = vector.shape_cast %546 : vector<4x16xf32> to vector<1x4x16xf32>
    tpu.vector_store %arg5[%c0_203, %c0_204, %c160], %549 {strides = array<i32>} : memref<1x4x256xf32, #tpu.memory_space<vmem>>, vector<1x4x16xf32>,
    %550 = vector.extract_strided_slice %472 {offsets = [0, 88], sizes = [16, 8], strides = [1, 1]} : vector<16x128xf32> to vector<16x8xf32>
    %551 = arith.truncf %453 : vector<4x8xf32> to vector<4x8xbf16>
    %552 = arith.truncf %550 : vector<16x8xf32> to vector<16x8xbf16>
    %cst_205 = arith.constant dense<0.000000e+00> : vector<4x16xf32>
    %553 = tpu.matmul %551, %552, %cst_205 {dimension_numbers = #tpu.dot_dimension_numbers<[1], [1], [0], [0], [0, 0, 1, 0], [], []>} : vector<4x8xbf16>, vector<16x8xbf16>, vector<4x16xf32> -> vector<4x16xf32>
    %c0_206 = arith.constant 0 : index
    %c0_207 = arith.constant 0 : index
    %c176 = arith.constant 176 : index
    %554 = vector.load %arg5[%c0_206, %c0_207, %c176] : memref<1x4x256xf32, #tpu.memory_space<vmem>>, vector<1x4x16xf32>
    %555 = vector.shape_cast %554 : vector<1x4x16xf32> to vector<4x16xf32>
    %556 = vector.shape_cast %553 : vector<4x16xf32> to vector<1x4x16xf32>
    tpu.vector_store %arg5[%c0_206, %c0_207, %c176], %556 {strides = array<i32>} : memref<1x4x256xf32, #tpu.memory_space<vmem>>, vector<1x4x16xf32>,
    %557 = vector.extract_strided_slice %472 {offsets = [0, 96], sizes = [16, 8], strides = [1, 1]} : vector<16x128xf32> to vector<16x8xf32>
    %558 = arith.truncf %453 : vector<4x8xf32> to vector<4x8xbf16>
    %559 = arith.truncf %557 : vector<16x8xf32> to vector<16x8xbf16>
    %cst_208 = arith.constant dense<0.000000e+00> : vector<4x16xf32>
    %560 = tpu.matmul %558, %559, %cst_208 {dimension_numbers = #tpu.dot_dimension_numbers<[1], [1], [0], [0], [0, 0, 1, 0], [], []>} : vector<4x8xbf16>, vector<16x8xbf16>, vector<4x16xf32> -> vector<4x16xf32>
    %c0_209 = arith.constant 0 : index
    %c0_210 = arith.constant 0 : index
    %c192 = arith.constant 192 : index
    %561 = vector.load %arg5[%c0_209, %c0_210, %c192] : memref<1x4x256xf32, #tpu.memory_space<vmem>>, vector<1x4x16xf32>
    %562 = vector.shape_cast %561 : vector<1x4x16xf32> to vector<4x16xf32>
    %563 = vector.shape_cast %560 : vector<4x16xf32> to vector<1x4x16xf32>
    tpu.vector_store %arg5[%c0_209, %c0_210, %c192], %563 {strides = array<i32>} : memref<1x4x256xf32, #tpu.memory_space<vmem>>, vector<1x4x16xf32>,
    %564 = vector.extract_strided_slice %472 {offsets = [0, 104], sizes = [16, 8], strides = [1, 1]} : vector<16x128xf32> to vector<16x8xf32>
    %565 = arith.truncf %453 : vector<4x8xf32> to vector<4x8xbf16>
    %566 = arith.truncf %564 : vector<16x8xf32> to vector<16x8xbf16>
    %cst_211 = arith.constant dense<0.000000e+00> : vector<4x16xf32>
    %567 = tpu.matmul %565, %566, %cst_211 {dimension_numbers = #tpu.dot_dimension_numbers<[1], [1], [0], [0], [0, 0, 1, 0], [], []>} : vector<4x8xbf16>, vector<16x8xbf16>, vector<4x16xf32> -> vector<4x16xf32>
    %c0_212 = arith.constant 0 : index
    %c0_213 = arith.constant 0 : index
    %c208 = arith.constant 208 : index
    %568 = vector.load %arg5[%c0_212, %c0_213, %c208] : memref<1x4x256xf32, #tpu.memory_space<vmem>>, vector<1x4x16xf32>
    %569 = vector.shape_cast %568 : vector<1x4x16xf32> to vector<4x16xf32>
    %570 = vector.shape_cast %567 : vector<4x16xf32> to vector<1x4x16xf32>
    tpu.vector_store %arg5[%c0_212, %c0_213, %c208], %570 {strides = array<i32>} : memref<1x4x256xf32, #tpu.memory_space<vmem>>, vector<1x4x16xf32>,
    %571 = vector.extract_strided_slice %472 {offsets = [0, 112], sizes = [16, 8], strides = [1, 1]} : vector<16x128xf32> to vector<16x8xf32>
    %572 = arith.truncf %453 : vector<4x8xf32> to vector<4x8xbf16>
    %573 = arith.truncf %571 : vector<16x8xf32> to vector<16x8xbf16>
    %cst_214 = arith.constant dense<0.000000e+00> : vector<4x16xf32>
    %574 = tpu.matmul %572, %573, %cst_214 {dimension_numbers = #tpu.dot_dimension_numbers<[1], [1], [0], [0], [0, 0, 1, 0], [], []>} : vector<4x8xbf16>, vector<16x8xbf16>, vector<4x16xf32> -> vector<4x16xf32>
    %c0_215 = arith.constant 0 : index
    %c0_216 = arith.constant 0 : index
    %c224 = arith.constant 224 : index
    %575 = vector.load %arg5[%c0_215, %c0_216, %c224] : memref<1x4x256xf32, #tpu.memory_space<vmem>>, vector<1x4x16xf32>
    %576 = vector.shape_cast %575 : vector<1x4x16xf32> to vector<4x16xf32>
    %577 = vector.shape_cast %574 : vector<4x16xf32> to vector<1x4x16xf32>
    tpu.vector_store %arg5[%c0_215, %c0_216, %c224], %577 {strides = array<i32>} : memref<1x4x256xf32, #tpu.memory_space<vmem>>, vector<1x4x16xf32>,
    %578 = vector.extract_strided_slice %472 {offsets = [0, 120], sizes = [16, 8], strides = [1, 1]} : vector<16x128xf32> to vector<16x8xf32>
    %579 = arith.truncf %453 : vector<4x8xf32> to vector<4x8xbf16>
    %580 = arith.truncf %578 : vector<16x8xf32> to vector<16x8xbf16>
    %cst_217 = arith.constant dense<0.000000e+00> : vector<4x16xf32>
    %581 = tpu.matmul %579, %580, %cst_217 {dimension_numbers = #tpu.dot_dimension_numbers<[1], [1], [0], [0], [0, 0, 1, 0], [], []>} : vector<4x8xbf16>, vector<16x8xbf16>, vector<4x16xf32> -> vector<4x16xf32>
    %c0_218 = arith.constant 0 : index
    %c0_219 = arith.constant 0 : index
    %c240 = arith.constant 240 : index
    %582 = vector.load %arg5[%c0_218, %c0_219, %c240] : memref<1x4x256xf32, #tpu.memory_space<vmem>>, vector<1x4x16xf32>
    %583 = vector.shape_cast %582 : vector<1x4x16xf32> to vector<4x16xf32>
    %584 = vector.shape_cast %581 : vector<4x16xf32> to vector<1x4x16xf32>
    tpu.vector_store %arg5[%c0_218, %c0_219, %c240], %584 {strides = array<i32>} : memref<1x4x256xf32, #tpu.memory_space<vmem>>, vector<1x4x16xf32>,
    return
  }
  func.func @transform_0(%arg0: i32) -> (i32, i32, i32) {
    %c0_i32 = arith.constant 0 : i32
    %c0_i32_0 = arith.constant 0 : i32
    %c0_i32_1 = arith.constant 0 : i32
    return %arg0, %c0_i32, %c0_i32_0 : i32, i32, i32
  }
  func.func @transform_1(%arg0: i32) -> (i32, i32, i32) {
    %c0_i32 = arith.constant 0 : i32
    %c0_i32_0 = arith.constant 0 : i32
    %c0_i32_1 = arith.constant 0 : i32
    return %arg0, %c0_i32, %c0_i32_0 : i32, i32, i32
  }
  func.func @transform_2(%arg0: i32) -> (i32, i32) {
    %c0_i32 = arith.constant 0 : i32
    %c0_i32_0 = arith.constant 0 : i32
    %c0_i32_1 = arith.constant 0 : i32
    return %c0_i32, %c0_i32_0 : i32, i32
  }
  func.func @transform_3(%arg0: i32) -> (i32, i32) {
    %c0_i32 = arith.constant 0 : i32
    %c0_i32_0 = arith.constant 0 : i32
    %c0_i32_1 = arith.constant 0 : i32
    return %c0_i32, %c0_i32_0 : i32, i32
  }
  func.func @transform_4(%arg0: i32) -> (i32, i32, i32) {
    %c0_i32 = arith.constant 0 : i32
    %c0_i32_0 = arith.constant 0 : i32
    %c0_i32_1 = arith.constant 0 : i32
    return %arg0, %c0_i32, %c0_i32_0 : i32, i32, i32
  }
}

</mosaic_0001>

<bundles_post_ra>
// kernel: sam_forward.1
= control target key start
LH: loop header
LB: loop body
LE: loop exit
PB: predicated region body
PF: predicated region fallthrough
CT: control target
= control target key end

     0   :  { %s4213_s15 = smov 0   ;;  %s4931_s0 = inlined_call_operand.vmem [shape: f32[2,16,192], index: 0, kind: input, shape index: {}]   ;;  %s4932_s1 = inlined_call_operand.vmem [shape: f32[2,6,32], index: 1, kind: input, shape index: {}]   ;;  %s4933_s2 = inlined_call_operand.vmem [shape: bf16[32,2816], index: 2, kind: input, shape index: {}]   ;;  %s4934_s3 = inlined_call_operand.vmem [shape: f32[96,128], index: 3, kind: input, shape index: {}]   ;;  %s4935_s4 = inlined_call_operand.vmem [shape: f32[2,4,256], index: 4, kind: output, shape index: {}]  }
   0x1 LB: > { %s3453_s16 = sadd.s32 4294967295, %s4169_s15   ;;  %p3457_p0 = scmp.ge.s32.totalorder %s4169_s15, 1  ;;  %s4169_s15 = sphi %s4213_s15, %s14_s15  }
   0x2   : > { %p171_p1 = scmp.lt.s32.totalorder %s4169_s15, 3 }
   0x4   : > { %p172_p2 = pnand %p3457_p0, %p171_p1 }
   0x5   : > { %v4057_v0 = vld [vmem:[%s4933_s2 + $0x4] ss:$88 sps:$4 sm:$0xff] (!%p172_p2)   ;;  %vm249_vm0 = vcmask (!%p172_p2), 523264   ;;  %p201_p3 = scmp.lt.s32.totalorder (!%p172_p2), %s3453_s16, 1  ;;  %v4059_v1 = vld [vmem:[%s4933_s2] ss:$88 sps:$4 sm:$0xff] (!%p172_p2)  }
   0x6   : > { %175 = sbr.rel (%p172_p2) target bundleno = 9349 (0x2485), region = 36  ;;  %3468 = vmatprep.subr.msk.bf16.mxu0 (!%p172_p2), %vm249_vm0, %v4057_v0  ;;  %v4060_v2 = vld [vmem:[%s4933_s2 + $0xb4] ss:$88 sps:$4 sm:$0xff] (!%p172_p2)   ;;  %v4062_v5 = vld [vmem:[%s4933_s2 + $0xb0] ss:$88 sps:$4 sm:$0xff] (!%p172_p2)   ;;  %v300_v12 = vld [vmem:[%s4934_s3] sm:$0xff] (!%p172_p2) }
   0x7   : > { %260 = vmatpush1.bf16.xpose.msra.mxu0 (!%p172_p2), %v4059_v1  ;;  %v3463_v10 = vld [vmem:[%s4934_s3 + $0x3c] ss:$0 sm:$0xff] (!%p172_p2)  ;;  %v301_v16 = vld [vmem:[%s4934_s3 + $0x8] sm:$0xff] (!%p172_p2)  ;;  %vm304_vm1 = vcmask (!%p172_p2), 261120   ;;  %v4171_v28 = vmov (!%p172_p2), 0.0   ;;  %vm4172_vm2 = vmmov (!%p172_p2), 0  }
   0x8   : > { %3469 = vmatprep.subr.msk.bf16.mxu0 (!%p172_p2), %vm249_vm0, %v4060_v2  ;;  %v4063_v27 = vld [vmem:[%s4933_s2 + $0x8] ss:$88 sps:$4 sm:$0xff] (!%p172_p2)   ;;  %3710 = vmatprep.subr.bf16.mxu1 (!%p172_p2), %v4171_v28  ;;  %v4064_v29 = vld [vmem:[%s4933_s2 + $0xb8] ss:$88 sps:$4 sm:$0xff] (!%p172_p2)   ;;  %v3471_v47 = vld [vmem:[%s4934_s3 + $0x3d] ss:$0 sm:$0xff] (!%p172_p2) }
   0x9   : > { %3714 = vmatprep.mubr.msk.bf16.mxu1 (!%p172_p2), %vm4172_vm2, %v4171_v28  ;;  %3711 = vmatpush3.bf16.msra.mxu1 (!%p172_p2), %v4063_v27  ;;  %v3472_v52 = vld [vmem:[%s4934_s3 + $0x3e] ss:$0 sm:$0xff] (!%p172_p2)  ;;  %v3473_v57 = vld [vmem:[%s4934_s3 + $0x3f] ss:$0 sm:$0xff] (!%p172_p2)  ;;  %s4173_s21 = smov (!%p172_p2), 96   ;;  %vm469_vm3 = vcmask (!%p172_p2), 130048  }
   0xa   : > { %3712 = vmatprep.subr.bf16.mxu1 (!%p172_p2), %v4171_v28  ;;  %s4174_s22 = smov (!%p172_p2), 64   ;;  %vm1041_vm4 = vcmask (!%p172_p2), 46080   ;;  %vm1060_vm5 = vcmask (!%p172_p2), 1042432   ;;  %vm1056_vm6 = vcmask (!%p172_p2), 48128   ;;  %vm1170_vm7 = vcmask (!%p172_p2), 259072   ;;  %s4175_s29 = smov (!%p172_p2), 112  }
   0xb   : > { %vm1378_vm8 = vcmask (!%p172_p2), 128000   ;;  %vm2583_vm9 = vcmask (!%p172_p2), 64512   ;;  %s4176_s30 = smov (!%p172_p2), 120   ;;  %s4177_s5 = smov (!%p172_p2), 104   ;;  %vm2630_vm10 = vcmask (!%p172_p2), 125952   ;;  %vm2682_vm11 = vcmask (!%p172_p2), 257152  }
   0xc   : > { %s4179_s7 = smov (!%p172_p2), 72   ;;  %s4180_s8 = smov (!%p172_p2), 80   ;;  %vm2733_vm12 = vcmask (!%p172_p2), 388352   ;;  %vm2784_vm13 = vcmask (!%p172_p2), 519552   ;;  %vm2835_vm14 = vcmask (!%p172_p2), 650752   ;;  %vm2886_vm15 = vcmask (!%p172_p2), 781952  }
   0xd   : > { %s4937_s16 = smov (!%p201_p3, %s3453_s16), 1  ;;  %3713 = vmatpush3.bf16.msra.mxu1 %v4064_v29  ;;  %s4181_s9 = smov 56  }
   0xe   : > { %s3594_s23 = sshll.u32 %s4937_s16, 5  ;;  %3718 = vmatprep.subr.bf16.mxu1 %v4171_v28  ;;  %s3460_s27 = sshll.u32 %s4937_s16, 3 }
   0xf   : > { %s205_s26 = scalar_lea.vmem %s4931_s0, %s3594_s23  ;;  %262 = vmatpush1.bf16.xpose.msra.mxu0 %v4062_v5  ;;  %s209_s6 = scalar_lea.vmem %s4932_s1, %s3460_s27 }
  0x10   : > { %v217_v3 = vld [vmem:[%s205_s26 + $0x8] sm:$0xff]  ;;  %v219_v4 = vld [vmem:[%s205_s26 + $0x18] sm:$0xff]  ;;  %v216_v7 = vld [vmem:[%s205_s26] sm:$0xff]  ;;  %3724 = vmatprep.subr.bf16.mxu0 %v4171_v28  ;;  %s4182_s10 = smov 40   ;;  %s4183_s11 = smov 48  }
  0x11   : > { %v225_v6 = vpack.c.bf16 %v219_v4, %v217_v3  ;;  %v218_v8 = vld [vmem:[%s205_s26 + $0x10] sm:$0xff]  ;;  %s4184_s12 = smov 24   ;;  %s4185_s13 = smov 32  }
  0x12   : > { %v224_v9 = vpack.c.bf16 %v218_v8, %v216_v7  ;;  %s4186_s14 = smov 8   ;;  %s4187_s17 = smov 16  }
  0x13   : > { %3470 = vmatprep.mubr.msk.bf16.mxu0 %vm249_vm0, %v225_v6  ;;  %s4880_s24 = scalar_lea.vmem %s4935_s4, %s3460_s27 }
  0x16   : > { %292 = vmatmul.mubr.bf16.vlgmr.msra.gmra.mrb[0].mxu0 %v224_v9 }
  0x17   : > { %3726 = vmatprep.mubr.msk.bf16.mxu0 %vm4172_vm2, %v4171_v28 }
  0xe9   : > { %v293_v11 = vpop.f32.mrb[0].mxu0 }
  0xea   : > { %v294_v13 = vadd.f32 %v3463_v10, %v293_v11  ;;  %v295_v14 = vpop.f32.mrb[1].mxu0 }
  0xeb   : > { %v296_v15 = vpop.f32.mrb[2].mxu0 }
  0xec   : > { %v4251_v17 = vadd.f32 %v300_v12, %v294_v13  ;;  %v297_v18 = vadd.f32 %v3463_v10, %v296_v15  ;;  %v298_v19 = vpop.f32.mrb[3].mxu0 }
  0xee   : > { %v4253_v20 = vadd.f32 %v301_v16, %v297_v18  ;;  %v305_v21 = vsel %vm304_vm1, %v4251_v17, 0.0  ;;  %v314_v22 = vmul.f32 %v4251_v17, %v4251_v17 }
  0xef   : > { %306 = vadd.xlane.f32.xlu0 %v305_v21 }
  0xf0   : > { %v316_v23 = vsel %vm304_vm1, %v314_v22, 0.0  ;;  %v315_v24 = vmul.f32 %v4253_v20, %v4253_v20  ;;  %v308_v25 = vsel %vm304_vm1, %v4253_v20, 0.0 }
  0xf1   : > { %317 = vadd.xlane.f32.xlu1 %v316_v23  ;;  %v4065_v23 = vld [vmem:[%s4933_s2 + $0xc] ss:$88 sps:$4 sm:$0xff]  }
  0xf2   : > { %v319_v26 = vsel %vm304_vm1, %v315_v24, 0.0 }
  0xf3   : > { %309 = vadd.xlane.f32.xlu0 %v308_v25 }
  0xf5   : > { %320 = vadd.xlane.f32.xlu1 %v319_v26 }
 0x17c   : > { %v307_v30 = vpop.xlane.xlu0 %306 }
 0x17d   : > { %v312_v31 = vmul.f32 0.03125, %v307_v30 }
 0x17e   : > { %v318_v32 = vpop.xlane.xlu1 %317 }
 0x17f   : > { %v324_v33 = vmul.f32 %v312_v31, %v312_v31  ;;  %v322_v34 = vmul.f32 0.03125, %v318_v32  ;;  %v328_v44 = vsub.f32 %v4251_v17, %v312_v31 }
 0x180   : > { %v310_v35 = vpop.xlane.xlu0 %309 }
 0x181   : > { %v326_v36 = vsub.f32 %v322_v34, %v324_v33  ;;  %v313_v37 = vmul.f32 0.03125, %v310_v35  ;;  %v4066_v33 = vld [vmem:[%s4933_s2 + $0xbc] ss:$88 sps:$4 sm:$0xff]  }
 0x182   : > { %v321_v38 = vpop.xlane.xlu1 %320 }
 0x183   : > { %v330_v39 = vadd.f32 1e-06, %v326_v36  ;;  %v325_v40 = vmul.f32 %v313_v37, %v313_v37  ;;  %v323_v41 = vmul.f32 0.03125, %v321_v38  ;;  %v329_v48 = vsub.f32 %v4253_v20, %v313_v37 }
 0x185   : > { %4103 = vrsqrt.f32 %v330_v39  ;;  %v327_v42 = vsub.f32 %v323_v41, %v325_v40  ;;  %v3479_v39 = vld [vmem:[%s4934_s3 + $0x40] ss:$0 sm:$0xff] }
 0x187   : > { %v331_v43 = vadd.f32 1e-06, %v327_v42 }
 0x189   : > { %4105 = vrsqrt.f32 %v331_v43 }
 0x18f   : > { %v4104_v45 = vpop.eup %4103 }
 0x190   : > { %v334_v46 = vmul.f32 %v4104_v45, %v328_v44 }
 0x192   : > { %v341_v51 = vmul.f32 %v3471_v47, %v334_v46 }
 0x193   : > { %v4106_v49 = vpop.eup %4105 }
 0x194   : > { %v335_v50 = vmul.f32 %v4106_v49, %v329_v48  ;;  %v348_v54 = vadd.f32 %v3472_v52, %v341_v51 }
 0x196   : > { %v342_v53 = vmul.f32 %v3471_v47, %v335_v50 }
 0x198   : > { %v349_v55 = vadd.f32 %v3472_v52, %v342_v53  ;;  %v4067_v52 = vld [vmem:[%s4933_s2 + $0x10] ss:$88 sps:$4 sm:$0xff]   ;;  %v4068_v53 = vld [vmem:[%s4933_s2 + $0xc0] ss:$88 sps:$4 sm:$0xff]  }
 0x19a   : > { %v354_v56 = vpack.c.bf16 %v349_v55, %v348_v54 }
 0x19c   : > { %3715 = vmatmul.mubr.msk.bf16.vlgmr.msra.gmra.mrb[0].mxu1 %vm304_vm1, %v354_v56 }
 0x19d   : > { %3720 = vmatprep.mubr.msk.bf16.mxu1 %vm4172_vm2, %v4171_v28 }
 0x26f   : > { %v409_v58 = vpop.f32.mrb[0].mxu1 }
 0x270   : > { %v3716_v59 = vpop.f32.mrb[1].mxu1  ;;  %v410_v61 = vadd.f32 %v3473_v57, %v409_v58 }
 0x271   : > { %v412_v60 = vpop.f32.mrb[2].mxu1 }
 0x272   : > { %v413_v62 = vadd.f32 %v3473_v57, %v412_v60  ;;  %v3717_v63 = vpop.f32.mrb[3].mxu1 }
 0x274   : > { %v416_v0 = vpack.c.bf16 %v413_v62, %v410_v61 }
 0x276   : > { %418 = vrot.lane.b32.xlu0 %v416_v0, %s4173_s21 }
 0x2e8   : > { %v419_v1 = vpop.permute.xlu0 %418 }
 0x2e9   : > { %v424_v2 = vsel %vm304_vm1, %v419_v1, 0 }
 0x2ea   : > { %3719 = vmatpush3.bf16.xpose.msra.mxu1 %v424_v2 }
 0x2eb   : > { %3730 = vmatprep.subr.bf16.mxu1 %v4171_v28 }
 0x2f1   : > { %3721 = vmatmul.mubr.msk.bf16.vlgmr.msra.gmra.mrb[4].mxu1 %vm304_vm1, %v416_v0 }
 0x2f2   : > { %3734 = vmatprep.mubr.msk.bf16.mxu1 %vm4172_vm2, %v4171_v28  ;;  %3731 = vmatpush3.bf16.msra.mxu1 %v4065_v23  ;;  %v3485_v23 = vld [vmem:[%s4934_s3 + $0x43] ss:$0 sm:$0xff] }
 0x2f3   : > { %3732 = vmatprep.subr.bf16.mxu1 %v4171_v28 }
 0x2f6   : > { %3733 = vmatpush3.bf16.msra.mxu1 %v4066_v33 }
 0x2f7   : > { %3746 = vmatprep.subr.bf16.mxu1 %v4171_v28 }
 0x3c4   : > { %v460_v3 = vpop.f32.mrb[4].mxu1 }
 0x3c5   : > { %v467_v4 = vmul.f32 0.17677669, %v460_v3  ;;  %v3722_v5 = vpop.f32.mrb[5].mxu1 }
 0x3c6   : > { %v463_v6 = vpop.f32.mrb[6].mxu1 }
 0x3c7   : > { %v468_v7 = vmul.f32 0.17677669, %v463_v6  ;;  %v3723_v8 = vpop.f32.mrb[7].mxu1  ;;  %v470_v9 = vsel %vm469_vm3, %v467_v4, -inf }
 0x3c8   : > { %471 = vmax.xlane.f32.xlu1 %v470_v9 }
 0x3c9   : > { %v473_v10 = vsel %vm469_vm3, %v468_v7, -inf }
 0x3cc   : > { %474 = vmax.xlane.f32.xlu1 %v473_v10 }
 0x455   : > { %v472_v11 = vpop.xlane.xlu1 %471 }
 0x456   : > { %v476_v12 = vsub.f32 %v467_v4, %v472_v11 }
 0x458   : > { %v478_v13 = vmul.f32 1.442695, %v476_v12  ;;  %v3484_v12 = vld [vmem:[%s4934_s3 + $0x42] ss:$0 sm:$0xff] }
 0x459   : > { %v475_v14 = vpop.xlane.xlu1 %474 }
 0x45a   : > { %4107 = vpow2.f32 %v478_v13  ;;  %v477_v15 = vsub.f32 %v468_v7, %v475_v14  ;;  %v3483_v7 = vld [vmem:[%s4934_s3 + $0x41] ss:$0 sm:$0xff] }
 0x45c   : > { %v480_v16 = vmul.f32 1.442695, %v477_v15 }
 0x45e   : > { %4109 = vpow2.f32 %v480_v16 }
 0x464   : > { %v4108_v18 = vpop.eup %4107 }
 0x465   : > { %v482_v19 = vsel %vm469_vm3, %v4108_v18, 0.0 }
 0x466   : > { %483 = vadd.xlane.f32.xlu1 %v482_v19 }
 0x468   : > { %v4110_v21 = vpop.eup %4109 }
 0x469   : > { %v485_v22 = vsel %vm469_vm3, %v4110_v21, 0.0 }
 0x46a   : > { %486 = vadd.xlane.f32.xlu1 %v485_v22 }
 0x47b   : > { %493 = vrot.lane.b32.xlu1 %v416_v0, %s4174_s22 }
 0x4f3   : > { %v484_v24 = vpop.xlane.xlu1 %483 }
 0x4f4   : > { %4111 = vrcp.f32 %v484_v24 }
 0x4f7   : > { %v487_v25 = vpop.xlane.xlu1 %486 }
 0x4f8   : > { %4113 = vrcp.f32 %v487_v25 }
 0x4fb   : > { %v494_v26 = vpop.permute.xlu1 %493 }
 0x4fc   : > { %3725 = vmatpush3.bf16.msra.mxu0 %v494_v26 }
 0x4fd   : > { %3738 = vmatprep.subr.bf16.mxu0 %v4171_v28 }
 0x4fe   : > { %v4112_v27 = vpop.eup %4111 }
 0x4ff   : > { %v490_v30 = vmul.f32 %v4112_v27, %v4108_v18  ;;  %v4069_v18 = vld [vmem:[%s4933_s2 + $0x14] ss:$88 sps:$4 sm:$0xff]  }
 0x500   : > { %v755_v19 = vsel %vm249_vm0, %v4069_v18, 0 }
 0x502   : > { %v4114_v29 = vpop.eup %4113 }
 0x503   : > { %v491_v31 = vmul.f32 %v4114_v29, %v4110_v21  ;;  %v4070_v21 = vld [vmem:[%s4933_s2 + $0xc4] ss:$88 sps:$4 sm:$0xff]  }
 0x504   : > { %v758_v22 = vsel %vm249_vm0, %v4070_v21, 0 }
 0x505   : > { %v492_v32 = vpack.c.bf16 %v491_v31, %v490_v30 }
 0x507   : > { %3727 = vmatmul.mubr.msk.bf16.vlgmr.msra.gmra.mrb[4].mxu0 %vm469_vm3, %v492_v32 }
 0x508   : > { %3742 = vmatprep.mubr.msk.bf16.mxu0 %vm4172_vm2, %v4171_v28  ;;  %3739 = vmatpush3.bf16.msra.mxu0 %v4067_v52 }
 0x509   : > { %3740 = vmatprep.subr.bf16.mxu0 %v4171_v28 }
 0x50c   : > { %3741 = vmatpush3.bf16.msra.mxu0 %v4068_v53 }
 0x50d   : > { %3754 = vmatprep.subr.bf16.mxu0 %v4171_v28 }
 0x5da   : > { %v533_v34 = vpop.f32.mrb[4].mxu0 }
 0x5db   : > { %v3728_v35 = vpop.f32.mrb[5].mxu0 }
 0x5dc   : > { %v536_v36 = vpop.f32.mrb[6].mxu0 }
 0x5dd   : > { %v544_v37 = vpack.c.bf16 %v536_v36, %v533_v34  ;;  %v3729_v38 = vpop.f32.mrb[7].mxu0 }
 0x5df   : > { %3735 = vmatmul.mubr.msk.bf16.vlgmr.msra.gmra.mrb[8].mxu1 %vm304_vm1, %v544_v37 }
 0x5e0   : > { %3750 = vmatprep.mubr.msk.bf16.mxu1 %vm4172_vm2, %v4171_v28  ;;  %3747 = vmatpush3.bf16.xpose.msra.mxu1 %v755_v19 }
 0x5e1   : > { %3748 = vmatprep.subr.bf16.mxu1 %v4171_v28 }
 0x5e8   : > { %3749 = vmatpush3.bf16.xpose.msra.mxu1 %v758_v22 }
 0x5e9   : > { %3770 = vmatprep.subr.bf16.mxu1 %v4171_v28 }
 0x6b2   : > { %v599_v40 = vpop.f32.mrb[8].mxu1 }
 0x6b3   : > { %v600_v41 = vadd.f32 %v3479_v39, %v599_v40  ;;  %v3736_v42 = vpop.f32.mrb[9].mxu1 }
 0x6b4   : > { %v602_v43 = vpop.f32.mrb[10].mxu1 }
 0x6b5   : > { %v4323_v44 = vadd.f32 %v600_v41, %v4251_v17  ;;  %v603_v45 = vadd.f32 %v3479_v39, %v602_v43  ;;  %v3737_v46 = vpop.f32.mrb[11].mxu1 }
 0x6b7   : > { %v4326_v47 = vadd.f32 %v603_v45, %v4253_v20  ;;  %v608_v48 = vsel %vm304_vm1, %v4323_v44, 0.0  ;;  %v616_v49 = vmul.f32 %v4323_v44, %v4323_v44 }
 0x6b8   : > { %609 = vadd.xlane.f32.xlu0 %v608_v48 }
 0x6b9   : > { %v611_v50 = vsel %vm304_vm1, %v4326_v47, 0.0  ;;  %v618_v51 = vsel %vm304_vm1, %v616_v49, 0.0  ;;  %v617_v17 = vmul.f32 %v4326_v47, %v4326_v47 }
 0x6ba   : > { %612 = vadd.xlane.f32.xlu1 %v611_v50 }
 0x6bb   : > { %v621_v20 = vsel %vm304_vm1, %v617_v17, 0.0  ;;  %v4071_v17 = vld [vmem:[%s4933_s2 + $0x18] ss:$88 sps:$4 sm:$0xff]  }
 0x6bc   : > { %619 = vadd.xlane.f32.xlu0 %v618_v51 }
 0x6c0   : > { %622 = vadd.xlane.f32.xlu0 %v621_v20  ;;  %v4072_v20 = vld [vmem:[%s4933_s2 + $0xc8] ss:$88 sps:$4 sm:$0xff]  }
 0x745   : > { %v610_v54 = vpop.xlane.xlu0 %609 }
 0x746   : > { %v614_v55 = vmul.f32 0.03125, %v610_v54 }
 0x747   : > { %v613_v56 = vpop.xlane.xlu1 %612 }
 0x748   : > { %v626_v58 = vmul.f32 %v614_v55, %v614_v55  ;;  %v615_v59 = vmul.f32 0.03125, %v613_v56  ;;  %v630_v4 = vsub.f32 %v4323_v44, %v614_v55  ;;  %v3492_v55 = vld [vmem:[%s4934_s3 + $0x44] ss:$0 sm:$0xff] }
 0x749   : > { %v620_v57 = vpop.xlane.xlu0 %619 }
 0x74a   : > { %v624_v60 = vmul.f32 0.03125, %v620_v57  ;;  %v627_v63 = vmul.f32 %v615_v59, %v615_v59  ;;  %v631_v8 = vsub.f32 %v4326_v47, %v615_v59 }
 0x74c   : > { %v628_v61 = vsub.f32 %v624_v60, %v626_v58 }
 0x74d   : > { %v623_v62 = vpop.xlane.xlu0 %622 }
 0x74e   : > { %v632_v0 = vadd.f32 1e-06, %v628_v61  ;;  %v625_v1 = vmul.f32 0.03125, %v623_v62  ;;  %v4073_v61 = vld [vmem:[%s4933_s2 + $0x1c] ss:$88 sps:$4 sm:$0xff]  }
 0x74f   : > { %v4396_v62 = vld [vmem:[%s209_s6] sm:$0x3f]  ;;  %s4178_s6 = smov 88  }
 0x750   : > { %4115 = vrsqrt.f32 %v632_v0  ;;  %v629_v2 = vsub.f32 %v625_v1, %v627_v63  ;;  %v929_v63 = vpack.c.bf16 %v4396_v62, %v4396_v62 }
 0x752   : > { %v633_v3 = vadd.f32 1e-06, %v629_v2 }
 0x754   : > { %4117 = vrsqrt.f32 %v633_v3 }
 0x75a   : > { %v4116_v5 = vpop.eup %4115 }
 0x75b   : > { %v636_v6 = vmul.f32 %v4116_v5, %v630_v4  ;;  %v3499_v4 = vld [vmem:[%s4934_s3 + $0x4a] ss:$0 sm:$0xff] }
 0x75d   : > { %v643_v11 = vmul.f32 %v3483_v7, %v636_v6 }
 0x75e   : > { %v4118_v9 = vpop.eup %4117 }
 0x75f   : > { %v637_v10 = vmul.f32 %v4118_v9, %v631_v8  ;;  %v650_v14 = vadd.f32 %v3484_v12, %v643_v11  ;;  %v3493_v11 = vld [vmem:[%s4934_s3 + $0x45] ss:$0 sm:$0xff] }
 0x761   : > { %v644_v13 = vmul.f32 %v3483_v7, %v637_v10 }
 0x763   : > { %v651_v15 = vadd.f32 %v3484_v12, %v644_v13 }
 0x765   : > { %v656_v16 = vpack.c.bf16 %v651_v15, %v650_v14 }
 0x767   : > { %3743 = vmatmul.mubr.msk.bf16.vlgmr.msra.gmra.mrb[8].mxu0 %vm304_vm1, %v656_v16 }
 0x768   : > { %3758 = vmatprep.mubr.msk.bf16.mxu0 %vm4172_vm2, %v4171_v28  ;;  %3755 = vmatpush3.bf16.msra.mxu0 %v4071_v17 }
 0x769   : > { %3756 = vmatprep.subr.bf16.mxu0 %v4171_v28 }
 0x76c   : > { %3757 = vmatpush3.bf16.msra.mxu0 %v4072_v20 }
 0x76d   : > { %3762 = vmatprep.subr.bf16.mxu0 %v4171_v28 }
 0x83a   : > { %v711_v24 = vpop.f32.mrb[8].mxu0 }
 0x83b   : > { %v712_v25 = vadd.f32 %v3485_v23, %v711_v24  ;;  %v3744_v26 = vpop.f32.mrb[9].mxu0 }
 0x83c   : > { %v714_v27 = vpop.f32.mrb[10].mxu0 }
 0x83d   : > { %v718_v29 = vmul.f32 %v712_v25, %v712_v25  ;;  %v715_v30 = vadd.f32 %v3485_v23, %v714_v27  ;;  %v3745_v31 = vpop.f32.mrb[11].mxu0 }
 0x83f   : > { %v720_v32 = vmul.f32 %v718_v29, %v712_v25  ;;  %v719_v33 = vmul.f32 %v715_v30, %v715_v30 }
 0x841   : > { %v722_v34 = vmul.f32 0.044715, %v720_v32  ;;  %v721_v35 = vmul.f32 %v719_v33, %v715_v30 }
 0x843   : > { %v724_v36 = vadd.f32 %v722_v34, %v712_v25  ;;  %v723_v37 = vmul.f32 0.044715, %v721_v35 }
 0x845   : > { %v726_v38 = vmul.f32 0.7978846, %v724_v36  ;;  %v725_v39 = vadd.f32 %v723_v37, %v715_v30  ;;  %v4075_v36 = vld [vmem:[%s4933_s2 + $0x20] ss:$88 sps:$4 sm:$0xff]  }
 0x847   : > { %4119 = vtanh.f32 %v726_v38  ;;  %v727_v40 = vmul.f32 0.7978846, %v725_v39 }
 0x849   : > { %4121 = vtanh.f32 %v727_v40 }
 0x851   : > { %v4120_v41 = vpop.eup %4119 }
 0x852   : > { %v730_v42 = vadd.f32 1.0, %v4120_v41 }
 0x853   : > { %v4122_v43 = vpop.eup %4121 }
 0x854   : > { %v732_v45 = vmul.f32 0.5, %v730_v42  ;;  %v731_v46 = vadd.f32 1.0, %v4122_v43  ;;  %v4076_v43 = vld [vmem:[%s4933_s2 + $0xd0] ss:$88 sps:$4 sm:$0xff]  }
 0x856   : > { %v733_v48 = vmul.f32 0.5, %v731_v46  ;;  %v734_v49 = vmul.f32 %v732_v45, %v712_v25 }
 0x858   : > { %v735_v50 = vmul.f32 %v733_v48, %v715_v30 }
 0x85a   : > { %v740_v51 = vpack.c.bf16 %v735_v50, %v734_v49 }
 0x85c   : > { %3751 = vmatmul.mubr.msk.bf16.vlgmr.msra.gmra.mrb[12].mxu1 %vm249_vm0, %v740_v51 }
 0x85d   : > { %3772 = vmatprep.mubr.msk.bf16.mxu1 %vm4172_vm2, %v4171_v28 }
 0x92f   : > { %v794_v52 = vpop.f32.mrb[12].mxu1 }
 0x930   : > { %v801_v53 = vadd.f32 %v794_v52, %v4323_v44  ;;  %v3752_v54 = vpop.f32.mrb[13].mxu1 }
 0x931   : > { %v797_v56 = vpop.f32.mrb[14].mxu1 }
 0x932   : > { %v802_v57 = vadd.f32 %v797_v56, %v4326_v47  ;;  %v3753_v58 = vpop.f32.mrb[15].mxu1  ;;  %v808_v59 = vadd.f32 %v3492_v55, %v801_v53  ;;  %v4074_v47 = vld [vmem:[%s4933_s2 + $0xcc] ss:$88 sps:$4 sm:$0xff]  }
 0x934   : > { %v809_v60 = vadd.f32 %v3492_v55, %v802_v57 }
 0x936   : > { %v814_v44 = vpack.c.bf16 %v809_v60, %v808_v59 }
 0x938   : > { %3759 = vmatmul.mubr.msk.bf16.vlgmr.msra.gmra.mrb[12].mxu0 %vm304_vm1, %v814_v44 }
 0x939   : > { %3763 = vmatpush3.bf16.msra.mxu0 %v4073_v61  ;;  %3766 = vmatprep.mubr.msk.bf16.mxu0 %vm4172_vm2, %v4171_v28 }
 0x93a   : > { %3764 = vmatprep.subr.bf16.mxu0 %v4171_v28 }
 0x93d   : > { %3765 = vmatpush3.bf16.msra.mxu0 %v4074_v47 }
 0x93e   : > { %3776 = vmatprep.subr.bf16.mxu0 %v4171_v28 }
 0x940   : > { %3767 = vmatmul.mubr.msk.bf16.vlgmr.msra.gmra.mrb[16].mxu0 %vm304_vm1, %v929_v63  ;;  %v3497_v63 = vld [vmem:[%s4934_s3 + $0x46] ss:$0 sm:$0xff] }
 0x941   : > { %3778 = vmatprep.mubr.msk.bf16.mxu0 %vm4172_vm2, %v4171_v28 }
 0xa0b   : > { %v869_v0 = vpop.f32.mrb[12].mxu0 }
 0xa0c   : > { %v3760_v1 = vpop.f32.mrb[13].mxu0  ;;  %v4417_v12 = vadd.f32 %v3493_v11, %v869_v0 }
 0xa0d   : > { %v872_v2 = vpop.f32.mrb[14].mxu0 }
 0xa0e   : > { %v3761_v3 = vpop.f32.mrb[15].mxu0  ;;  %v4419_v13 = vadd.f32 %v3493_v11, %v872_v2  ;;  %v876_v14 = vsel %vm304_vm1, %v4417_v12, 0.0  ;;  %v884_v15 = vmul.f32 %v4417_v12, %v4417_v12  ;;  %v3498_v2 = vld [vmem:[%s4934_s3 + $0x47] ss:$0 sm:$0xff] }
 0xa10   : > { %v886_v16 = vsel %vm304_vm1, %v884_v15, 0.0  ;;  %v885_v18 = vmul.f32 %v4419_v13, %v4419_v13  ;;  %v879_v35 = vsel %vm304_vm1, %v4419_v13, 0.0 }
 0xa12   : > { %v889_v19 = vsel %vm304_vm1, %v885_v18, 0.0  ;;  %v3505_v18 = vld [vmem:[%s4934_s3 + $0x4b] ss:$0 sm:$0xff] }
 0xa13   : > { %v984_v5 = vpop.f32.mrb[16].mxu0 }
 0xa14   : > { %v985_v6 = vadd.f32 %v3499_v4, %v984_v5  ;;  %v3768_v7 = vpop.f32.mrb[17].mxu0  ;;  %v4077_v4 = vld [vmem:[%s4933_s2 + $0x28] ss:$88 sps:$4 sm:$0xff]  }
 0xa15   : > { %v987_v8 = vpop.f32.mrb[18].mxu0 }
 0xa16   : > { %v990_v9 = vpack.c.bf16 %v985_v6, %v985_v6  ;;  %v3769_v10 = vpop.f32.mrb[19].mxu0  ;;  %v921_v8 = vld [vmem:[%s4934_s3 + $0x18] sm:$0xff] }
 0xa18   : > { %992 = vrot.lane.b32.xlu0 %v990_v9, %s4173_s21 }
 0xa37   : > { %877 = vadd.xlane.f32.xlu0 %v876_v14 }
 0xa3b   : > { %887 = vadd.xlane.f32.xlu0 %v886_v16 }
 0xa3f   : > { %890 = vadd.xlane.f32.xlu0 %v889_v19 }
 0xa8a   : > { %v993_v21 = vpop.permute.xlu0 %992 }
 0xa8b   : > { %v998_v22 = vsel %vm304_vm1, %v993_v21, 0 }
 0xa8c   : > { %3771 = vmatpush3.bf16.xpose.msra.mxu1 %v998_v22 }
 0xa8d   : > { %3782 = vmatprep.subr.bf16.mxu1 %v4171_v28 }
 0xa93   : > { %3773 = vmatmul.mubr.msk.bf16.vlgmr.msra.gmra.mrb[16].mxu1 %vm304_vm1, %v990_v9 }
 0xa94   : > { %3786 = vmatprep.mubr.msk.bf16.mxu1 %vm4172_vm2, %v4171_v28  ;;  %3783 = vmatpush3.bf16.msra.mxu1 %v4075_v36 }
 0xa95   : > { %3784 = vmatprep.subr.bf16.mxu1 %v4171_v28 }
 0xa98   : > { %3785 = vmatpush3.bf16.msra.mxu1 %v4076_v43 }
 0xa99   : > { %3798 = vmatprep.subr.bf16.mxu1 %v4171_v28 }
 0xac4   : > { %v878_v45 = vpop.xlane.xlu0 %877 }
 0xac5   : > { %v882_v51 = vmul.f32 0.03125, %v878_v45 }
 0xac7   : > { %v894_v53 = vmul.f32 %v882_v51, %v882_v51  ;;  %v898_v61 = vsub.f32 %v4417_v12, %v882_v51  ;;  %v920_v12 = vld [vmem:[%s4934_s3 + $0x10] sm:$0xff] }
 0xac8   : > { %v888_v46 = vpop.xlane.xlu0 %887 }
 0xac9   : > { %v892_v20 = vmul.f32 0.03125, %v888_v46 }
 0xacb   : > { %v896_v55 = vsub.f32 %v892_v20, %v894_v53 }
 0xacc   : > { %v891_v50 = vpop.xlane.xlu0 %890 }
 0xacd   : > { %v893_v52 = vmul.f32 0.03125, %v891_v50  ;;  %v900_v57 = vadd.f32 1e-06, %v896_v55  ;;  %v3509_v50 = vld [vmem:[%s4934_s3 + $0x48] ss:$0 sm:$0xff] }
 0xace   : > { %v3511_v55 = vld [vmem:[%s4934_s3 + $0x4e] ss:$0 sm:$0xff] }
 0xb66   : > { %v1034_v23 = vpop.f32.mrb[16].mxu1 }
 0xb67   : > { %v1040_v24 = vmul.f32 0.17677669, %v1034_v23  ;;  %v3774_v25 = vpop.f32.mrb[17].mxu1 }
 0xb68   : > { %v1037_v26 = vpop.f32.mrb[18].mxu1 }
 0xb69   : > { %v3775_v27 = vpop.f32.mrb[19].mxu1  ;;  %v1042_v29 = vsel %vm1041_vm4, %v1040_v24, -inf }
 0xb6a   : > { %1043 = vmax.xlane.f32.xlu1 %v1042_v29  ;;  %v3515_v29 = vld [vmem:[%s4934_s3 + $0x4f] ss:$0 sm:$0xff] }
 0xbf7   : > { %v1044_v30 = vpop.xlane.xlu1 %1043 }
 0xbf8   : > { %v1045_v31 = vsub.f32 %v1040_v24, %v1044_v30 }
 0xbfa   : > { %v1046_v32 = vmul.f32 1.442695, %v1045_v31 }
 0xbfc   : > { %4123 = vpow2.f32 %v1046_v32 }
 0xc06   : > { %v4124_v33 = vpop.eup %4123 }
 0xc07   : > { %v1048_v34 = vsel %vm1041_vm4, %v4124_v33, 0.0 }
 0xc08   : > { %1049 = vadd.xlane.f32.xlu1 %v1048_v34 }
 0xc19   : > { %1054 = vrot.lane.b32.xlu1 %v990_v9, %s4174_s22 }
 0xc3d   : > { %880 = vadd.xlane.f32.xlu1 %v879_v35 }
 0xc95   : > { %v1050_v37 = vpop.xlane.xlu1 %1049 }
 0xc96   : > { %4125 = vrcp.f32 %v1050_v37 }
 0xc99   : > { %v1055_v38 = vpop.permute.xlu1 %1054 }
 0xc9a   : > { %v1062_v39 = vsel %vm1060_vm5, %v1055_v38, 0  ;;  %v4080_v38 = vld [vmem:[%s4933_s2 + $0xd4] ss:$88 sps:$4 sm:$0xff]  }
 0xc9b   : > { %3777 = vmatpush3.bf16.msra.mxu0 %v1062_v39 }
 0xc9c   : > { %3790 = vmatprep.subr.bf16.mxu0 %v4171_v28 }
 0xca0   : > { %v4126_v40 = vpop.eup %4125 }
 0xca1   : > { %v1052_v41 = vmul.f32 %v4126_v40, %v4124_v33 }
 0xca3   : > { %v1053_v42 = vpack.c.bf16 %v1052_v41, %v1052_v41 }
 0xca5   : > { %3779 = vmatmul.mubr.msk.bf16.vlgmr.msra.gmra.mrb[20].mxu0 %vm1056_vm6, %v1053_v42 }
 0xca6   : > { %3794 = vmatprep.mubr.msk.bf16.mxu0 %vm4172_vm2, %v4171_v28 }
 0xcca   : > { %v881_v48 = vpop.xlane.xlu1 %880 }
 0xccb   : > { %v883_v49 = vmul.f32 0.03125, %v881_v48 }
 0xccd   : > { %v895_v17 = vmul.f32 %v883_v49, %v883_v49  ;;  %v899_v59 = vsub.f32 %v4419_v13, %v883_v49  ;;  %v4078_v13 = vld [vmem:[%s4933_s2 + $0xd8] ss:$88 sps:$4 sm:$0xff]  }
 0xccf   : > { %v897_v54 = vsub.f32 %v893_v52, %v895_v17  ;;  %v3510_v17 = vld [vmem:[%s4934_s3 + $0x49] ss:$0 sm:$0xff] }
 0xcd1   : > { %v901_v56 = vadd.f32 1e-06, %v897_v54 }
 0xcd3   : > { %4127 = vrsqrt.f32 %v901_v56 }
 0xcd4   : > { %4129 = vrsqrt.f32 %v900_v57 }
 0xcdd   : > { %v4128_v58 = vpop.eup %4127 }
 0xcde   : > { %v4130_v60 = vpop.eup %4129  ;;  %v905_v44 = vmul.f32 %v4128_v58, %v899_v59 }
 0xcdf   : > { %v904_v47 = vmul.f32 %v4130_v60, %v898_v61 }
 0xce0   : > { %v912_v0 = vmul.f32 %v3497_v63, %v905_v44 }
 0xce1   : > { %v911_v1 = vmul.f32 %v3497_v63, %v904_v47 }
 0xce2   : > { %v919_v5 = vadd.f32 %v3498_v2, %v912_v0 }
 0xce3   : > { %v918_v10 = vadd.f32 %v3498_v2, %v911_v1 }
 0xce4   : > { %v4473_v14 = vadd.f32 %v921_v8, %v919_v5 }
 0xce5   : > { %v4476_v15 = vadd.f32 %v920_v12, %v918_v10 }
 0xce7   : > { %v4480_v16 = vpack.c.bf16 %v4473_v14, %v4476_v15 }
 0xd78   : > { %v1098_v3 = vpop.f32.mrb[20].mxu0 }
 0xd79   : > { %v1108_v6 = vpack.c.bf16 %v1098_v3, %v1098_v3  ;;  %v3780_v7 = vpop.f32.mrb[21].mxu0 }
 0xd7a   : > { %v1101_v9 = vpop.f32.mrb[22].mxu0 }
 0xd7b   : > { %v3781_v11 = vpop.f32.mrb[23].mxu0  ;;  %3787 = vmatmul.mubr.msk.bf16.vlgmr.msra.gmra.mrb[20].mxu1 %vm304_vm1, %v1108_v6  ;;  %v4081_v9 = vld [vmem:[%s4933_s2 + $0x2c] ss:$88 sps:$4 sm:$0xff]  }
 0xd7c   : > { %3799 = vmatpush3.bf16.msra.mxu1 %v4077_v4  ;;  %3802 = vmatprep.mubr.msk.bf16.mxu1 %vm4172_vm2, %v4171_v28 }
 0xd7d   : > { %3800 = vmatprep.subr.bf16.mxu1 %v4171_v28 }
 0xd80   : > { %3801 = vmatpush3.bf16.msra.mxu1 %v4078_v13 }
 0xd81   : > { %3812 = vmatprep.subr.bf16.mxu1 %v4171_v28 }
 0xd83   : > { %3803 = vmatmul.mubr.msk.bf16.vlgmr.msra.gmra.mrb[24].mxu1 %vm304_vm1, %v4480_v16 }
 0xd84   : > { %3814 = vmatprep.mubr.msk.bf16.mxu1 %vm4172_vm2, %v4171_v28 }
 0xe4e   : > { %v1163_v19 = vpop.f32.mrb[20].mxu1 }
 0xe4f   : > { %v1164_v21 = vadd.f32 %v3505_v18, %v1163_v19  ;;  %v3788_v22 = vpop.f32.mrb[21].mxu1  ;;  %v4082_v18 = vld [vmem:[%s4933_s2 + $0xdc] ss:$88 sps:$4 sm:$0xff]  }
 0xe50   : > { %v1166_v23 = vpop.f32.mrb[22].mxu1 }
 0xe51   : > { %v1169_v24 = vadd.f32 %v1164_v21, %v4396_v62  ;;  %v3789_v25 = vpop.f32.mrb[23].mxu1  ;;  %v4079_v62 = vld [vmem:[%s4933_s2 + $0x24] ss:$88 sps:$4 sm:$0xff]  }
 0xe52   : > { %3791 = vmatpush3.bf16.msra.mxu0 %v4079_v62  ;;  %v3521_v25 = vld [vmem:[%s4934_s3 + $0x50] ss:$0 sm:$0xff]  ;;  %v4087_v62 = vld [vmem:[%s4933_s2 + $0x34] ss:$88 sps:$4 sm:$0xff]  }
 0xe53   : > { %v1171_v26 = vsel %vm1170_vm7, %v1169_v24, 0.0  ;;  %v1175_v27 = vmul.f32 %v1169_v24, %v1169_v24  ;;  %3792 = vmatprep.subr.bf16.mxu0 %v4171_v28 }
 0xe54   : > { %1172 = vadd.xlane.f32.xlu0 %v1171_v26 }
 0xe55   : > { %v1176_v32 = vsel %vm1170_vm7, %v1175_v27, 0.0 }
 0xe56   : > { %v1322_v30 = vpop.f32.mrb[24].mxu1  ;;  %3793 = vmatpush3.bf16.msra.mxu0 %v4080_v38  ;;  %v1616_v38 = vsel %vm249_vm0, %v4087_v62, 0 }
 0xe57   : > { %v3804_v31 = vpop.f32.mrb[25].mxu1  ;;  %v1323_v34 = vadd.f32 %v3515_v29, %v1322_v30  ;;  %3806 = vmatprep.subr.bf16.mxu0 %v4171_v28 }
 0xe58   : > { %1177 = vadd.xlane.f32.xlu0 %v1176_v32  ;;  %v1325_v33 = vpop.f32.mrb[26].mxu1 }
 0xe59   : > { %v1326_v35 = vadd.f32 %v3515_v29, %v1325_v33  ;;  %v3805_v36 = vpop.f32.mrb[27].mxu1 }
 0xe5a   : > { %v4083_v36 = vld [vmem:[%s4933_s2 + $0x30] ss:$88 sps:$4 sm:$0xff]  }
 0xe5b   : > { %v1330_v37 = vpack.c.bf16 %v1326_v35, %v1323_v34 }
 0xe5d   : > { %v1335_v54 = vsel %vm304_vm1, %v1330_v37, 0 }
 0xee1   : > { %v1173_v39 = vpop.xlane.xlu0 %1172 }
 0xee2   : > { %v1174_v40 = vmul.f32 0.03125, %v1173_v39 }
 0xee4   : > { %v1180_v42 = vmul.f32 %v1174_v40, %v1174_v40  ;;  %v1182_v48 = vsub.f32 %v1169_v24, %v1174_v40 }
 0xee5   : > { %v1178_v41 = vpop.xlane.xlu0 %1177 }
 0xee6   : > { %v1179_v43 = vmul.f32 0.03125, %v1178_v41 }
 0xee8   : > { %v1181_v45 = vsub.f32 %v1179_v43, %v1180_v42 }
 0xeea   : > { %v1183_v46 = vadd.f32 1e-06, %v1181_v45 }
 0xeec   : > { %4131 = vrsqrt.f32 %v1183_v46 }
 0xef6   : > { %v4132_v49 = vpop.eup %4131 }
 0xef7   : > { %v1185_v51 = vmul.f32 %v4132_v49, %v1182_v48 }
 0xef9   : > { %v1191_v20 = vmul.f32 %v3509_v50, %v1185_v51  ;;  %v3525_v50 = vld [vmem:[%s4934_s3 + $0x4c] ss:$0 sm:$0xff] }
 0xefb   : > { %v1197_v52 = vadd.f32 %v3510_v17, %v1191_v20  ;;  %v3526_v17 = vld [vmem:[%s4934_s3 + $0x4d] ss:$0 sm:$0xff] }
 0xefd   : > { %v1202_v53 = vpack.c.bf16 %v1197_v52, %v1197_v52 }
 0xeff   : > { %3795 = vmatmul.mubr.msk.bf16.vlgmr.msra.gmra.mrb[24].mxu0 %vm304_vm1, %v1202_v53  ;;  %v4085_v53 = vld [vmem:[%s4933_s2 + $0x38] ss:$88 sps:$4 sm:$0xff]  }
 0xf00   : > { %3807 = vmatpush3.bf16.xpose.msra.mxu0 %v1335_v54  ;;  %3808 = vmatprep.mubr.msk.bf16.mxu0 %vm4172_vm2, %v4171_v28 }
 0xf01   : > { %3818 = vmatprep.subr.bf16.mxu0 %v4171_v28 }
 0xfd2   : > { %v1257_v56 = vpop.f32.mrb[24].mxu0 }
 0xfd3   : > { %v1258_v57 = vadd.f32 %v3511_v55, %v1257_v56  ;;  %v3796_v58 = vpop.f32.mrb[25].mxu0  ;;  %v4086_v55 = vld [vmem:[%s4933_s2 + $0xe8] ss:$88 sps:$4 sm:$0xff]   ;;  %v4088_v56 = vld [vmem:[%s4933_s2 + $0xe4] ss:$88 sps:$4 sm:$0xff]  }
 0xfd4   : > { %v1260_v59 = vpop.f32.mrb[26].mxu0  ;;  %v3527_v58 = vld [vmem:[%s4934_s3 + $0x51] ss:$0 sm:$0xff] }
 0xfd5   : > { %v1329_v60 = vpack.c.bf16 %v1258_v57, %v1258_v57  ;;  %v3797_v61 = vpop.f32.mrb[27].mxu0  ;;  %v1619_v57 = vsel %vm249_vm0, %v4088_v56, 0 }
 0xfd7   : > { %3809 = vmatmul.mubr.msk.bf16.vlgmr.msra.gmra.mrb[28].mxu0 %vm304_vm1, %v1329_v60 }
 0xfd8   : > { %3822 = vmatprep.mubr.msk.bf16.mxu0 %vm4172_vm2, %v4171_v28  ;;  %3819 = vmatpush3.bf16.msra.mxu0 %v4081_v9  ;;  %v3534_v9 = vld [vmem:[%s4934_s3 + $0x52] ss:$0 sm:$0xff] }
 0xfd9   : > { %3820 = vmatprep.subr.bf16.mxu0 %v4171_v28 }
 0xfdc   : > { %3821 = vmatpush3.bf16.msra.mxu0 %v4082_v18 }
 0xfdd   : > { %3834 = vmatprep.subr.bf16.mxu0 %v4171_v28 }
0x10aa   : > { %v1371_v44 = vpop.f32.mrb[28].mxu0 }
0x10ab   : > { %v1377_v47 = vmul.f32 0.17677669, %v1371_v44  ;;  %v3810_v63 = vpop.f32.mrb[29].mxu0 }
0x10ac   : > { %v1374_v0 = vpop.f32.mrb[30].mxu0 }
0x10ad   : > { %v3811_v1 = vpop.f32.mrb[31].mxu0  ;;  %v1379_v2 = vsel %vm1378_vm8, %v1377_v47, -inf  ;;  %v3537_v0 = vld [vmem:[%s4934_s3 + $0x55] ss:$0 sm:$0xff] }
0x10ae   : > { %1380 = vmax.xlane.f32.xlu0 %v1379_v2 }
0x10c4   : > { %1392 = vrot.lane.b32.xlu0 %v1330_v37, %s4173_s21  ;;  %v4084_v37 = vld [vmem:[%s4933_s2 + $0xe0] ss:$88 sps:$4 sm:$0xff]  }
0x113b   : > { %v1381_v3 = vpop.xlane.xlu0 %1380 }
0x113c   : > { %v1382_v4 = vsub.f32 %v1377_v47, %v1381_v3 }
0x113e   : > { %v1383_v5 = vmul.f32 1.442695, %v1382_v4 }
0x113f   : > { %v1393_v6 = vpop.permute.xlu0 %1392 }
0x1140   : > { %4133 = vpow2.f32 %v1383_v5  ;;  %3813 = vmatpush3.bf16.msra.mxu1 %v1393_v6 }
0x1141   : > { %3826 = vmatprep.subr.bf16.mxu1 %v4171_v28 }
0x114a   : > { %v4134_v7 = vpop.eup %4133 }
0x114b   : > { %v1385_v8 = vsel %vm1378_vm8, %v4134_v7, 0.0 }
0x114c   : > { %1386 = vadd.xlane.f32.xlu1 %v1385_v8 }
0x11d9   : > { %v1387_v10 = vpop.xlane.xlu1 %1386 }
0x11da   : > { %4135 = vrcp.f32 %v1387_v10 }
0x11e4   : > { %v4136_v11 = vpop.eup %4135 }
0x11e5   : > { %v1389_v12 = vmul.f32 %v4136_v11, %v4134_v7 }
0x11e7   : > { %v1390_v13 = vpack.c.bf16 %v1389_v12, %v1389_v12 }
0x11e9   : > { %3815 = vmatmul.mubr.msk.bf16.vlgmr.msra.gmra.mrb[28].mxu1 %vm469_vm3, %v1390_v13 }
0x11ea   : > { %3830 = vmatprep.mubr.msk.bf16.mxu1 %vm4172_vm2, %v4171_v28  ;;  %3827 = vmatpush3.bf16.msra.mxu1 %v4083_v36 }
0x11eb   : > { %3828 = vmatprep.subr.bf16.mxu1 %v4171_v28 }
0x11ee   : > { %3829 = vmatpush3.bf16.msra.mxu1 %v4084_v37  ;;  %v3536_v37 = vld [vmem:[%s4934_s3 + $0x54] ss:$0 sm:$0xff] }
0x11ef   : > { %3842 = vmatprep.subr.bf16.mxu1 %v4171_v28 }
0x12bc   : > { %v1432_v19 = vpop.f32.mrb[28].mxu1 }
0x12bd   : > { %v1442_v21 = vpack.c.bf16 %v1432_v19, %v1432_v19  ;;  %v3816_v22 = vpop.f32.mrb[29].mxu1 }
0x12be   : > { %v1435_v23 = vpop.f32.mrb[30].mxu1 }
0x12bf   : > { %v3817_v24 = vpop.f32.mrb[31].mxu1  ;;  %3823 = vmatmul.mubr.msk.bf16.vlgmr.msra.gmra.mrb[32].mxu0 %vm304_vm1, %v1442_v21  ;;  %v4089_v23 = vld [vmem:[%s4933_s2 + $0x3c] ss:$88 sps:$4 sm:$0xff]  }
0x12c0   : > { %3838 = vmatprep.mubr.msk.bf16.mxu0 %vm4172_vm2, %v4171_v28  ;;  %3835 = vmatpush3.bf16.xpose.msra.mxu0 %v1616_v38  ;;  %v4090_v24 = vld [vmem:[%s4933_s2 + $0xec] ss:$88 sps:$4 sm:$0xff]  }
0x12c1   : > { %3836 = vmatprep.subr.bf16.mxu0 %v4171_v28 }
0x12c8   : > { %3837 = vmatpush3.bf16.xpose.msra.mxu0 %v1619_v57 }
0x12c9   : > { %3858 = vmatprep.subr.bf16.mxu0 %v4171_v28 }
0x1392   : > { %v1497_v26 = vpop.f32.mrb[32].mxu0 }
0x1393   : > { %v1498_v27 = vadd.f32 %v3521_v25, %v1497_v26  ;;  %v3824_v29 = vpop.f32.mrb[33].mxu0 }
0x1394   : > { %v1500_v30 = vpop.f32.mrb[34].mxu0 }
0x1395   : > { %v1503_v31 = vadd.f32 %v1498_v27, %v1197_v52  ;;  %v3825_v32 = vpop.f32.mrb[35].mxu0 }
0x1397   : > { %v1504_v33 = vsel %vm1170_vm7, %v1503_v31, 0.0  ;;  %v1508_v34 = vmul.f32 %v1503_v31, %v1503_v31 }
0x1398   : > { %1505 = vadd.xlane.f32.xlu1 %v1504_v33 }
0x1399   : > { %v1509_v35 = vsel %vm1170_vm7, %v1508_v34, 0.0 }
0x139c   : > { %1510 = vadd.xlane.f32.xlu1 %v1509_v35  ;;  %v3535_v35 = vld [vmem:[%s4934_s3 + $0x53] ss:$0 sm:$0xff] }
0x1425   : > { %v1506_v39 = vpop.xlane.xlu1 %1505 }
0x1426   : > { %v1507_v40 = vmul.f32 0.03125, %v1506_v39 }
0x1428   : > { %v1513_v42 = vmul.f32 %v1507_v40, %v1507_v40  ;;  %v1515_v48 = vsub.f32 %v1503_v31, %v1507_v40  ;;  %v3541_v40 = vld [vmem:[%s4934_s3 + $0x56] ss:$0 sm:$0xff] }
0x1429   : > { %v1511_v41 = vpop.xlane.xlu1 %1510 }
0x142a   : > { %v1512_v43 = vmul.f32 0.03125, %v1511_v41 }
0x142c   : > { %v1514_v45 = vsub.f32 %v1512_v43, %v1513_v42 }
0x142e   : > { %v1516_v46 = vadd.f32 1e-06, %v1514_v45 }
0x1430   : > { %4137 = vrsqrt.f32 %v1516_v46 }
0x143a   : > { %v4138_v49 = vpop.eup %4137 }
0x143b   : > { %v1518_v51 = vmul.f32 %v4138_v49, %v1515_v48 }
0x143d   : > { %v1524_v20 = vmul.f32 %v3525_v50, %v1518_v51 }
0x143f   : > { %v1530_v52 = vadd.f32 %v3526_v17, %v1524_v20 }
0x1441   : > { %v1535_v54 = vpack.c.bf16 %v1530_v52, %v1530_v52 }
0x1443   : > { %3831 = vmatmul.mubr.msk.bf16.vlgmr.msra.gmra.mrb[32].mxu1 %vm304_vm1, %v1535_v54 }
0x1444   : > { %3843 = vmatpush3.bf16.msra.mxu1 %v4085_v53  ;;  %3846 = vmatprep.mubr.msk.bf16.mxu1 %vm4172_vm2, %v4171_v28 }
0x1445   : > { %3844 = vmatprep.subr.bf16.mxu1 %v4171_v28 }
0x1448   : > { %3845 = vmatpush3.bf16.msra.mxu1 %v4086_v55 }
0x1449   : > { %3850 = vmatprep.subr.bf16.mxu1 %v4171_v28 }
0x144b   : > { %3847 = vmatmul.mubr.msk.bf16.vlgmr.msra.gmra.mrb[36].mxu1 %vm304_vm1, %v4480_v16 }
0x144c   : > { %3854 = vmatprep.mubr.msk.bf16.mxu1 %vm4172_vm2, %v4171_v28  ;;  %3851 = vmatpush3.bf16.msra.mxu1 %v4089_v23 }
0x144d   : > { %3852 = vmatprep.subr.bf16.mxu1 %v4171_v28 }
0x1450   : > { %3853 = vmatpush3.bf16.msra.mxu1 %v4090_v24 }
0x1451   : > { %3864 = vmatprep.subr.bf16.mxu1 %v4171_v28 }
0x1516   : > { %v1590_v59 = vpop.f32.mrb[32].mxu1 }
0x1517   : > { %v1591_v60 = vadd.f32 %v3527_v58, %v1590_v59  ;;  %v3832_v61 = vpop.f32.mrb[33].mxu1 }
0x1518   : > { %v1593_v16 = vpop.f32.mrb[34].mxu1 }
0x1519   : > { %v1596_v44 = vmax.f32 %v1591_v60, 0.0  ;;  %v3833_v47 = vpop.f32.mrb[35].mxu1 }
0x151b   : > { %v1601_v63 = vpack.c.bf16 %v1596_v44, %v1596_v44 }
0x151d   : > { %3839 = vmatmul.mubr.msk.bf16.vlgmr.msra.gmra.mrb[36].mxu0 %vm249_vm0, %v1601_v63  ;;  %vm2937_vm0 = vcmask 913152  }
0x151e   : > { %v1750_v1 = vpop.f32.mrb[36].mxu1  ;;  %3860 = vmatprep.mubr.msk.bf16.mxu0 %vm4172_vm2, %v4171_v28 }
0x151f   : > { %v3848_v2 = vpop.f32.mrb[37].mxu1  ;;  %v1751_v4 = vadd.f32 %v3537_v0, %v1750_v1 }
0x1520   : > { %v1753_v3 = vpop.f32.mrb[38].mxu1 }
0x1521   : > { %v1754_v5 = vadd.f32 %v3537_v0, %v1753_v3  ;;  %v3849_v6 = vpop.f32.mrb[39].mxu1  ;;  %v4093_v0 = vld [vmem:[%s4933_s2 + $0x40] ss:$88 sps:$4 sm:$0xff]  }
0x1523   : > { %v1822_v7 = vpack.c.bf16 %v1754_v5, %v1751_v4 }
0x15f0   : > { %v1655_v8 = vpop.f32.mrb[36].mxu0 }
0x15f1   : > { %v1661_v10 = vadd.f32 %v1655_v8, %v1530_v52  ;;  %v3840_v11 = vpop.f32.mrb[37].mxu0 }
0x15f2   : > { %v1658_v12 = vpop.f32.mrb[38].mxu0  ;;  %v4092_v11 = vld [vmem:[%s4933_s2 + $0xf4] ss:$88 sps:$4 sm:$0xff]  }
0x15f3   : > { %v1667_v13 = vadd.f32 %v3534_v9, %v1661_v10  ;;  %v3841_v18 = vpop.f32.mrb[39].mxu0  ;;  %v4091_v9 = vld [vmem:[%s4933_s2 + $0x44] ss:$88 sps:$4 sm:$0xff]   ;;  %v4094_v12 = vld [vmem:[%s4933_s2 + $0xf0] ss:$88 sps:$4 sm:$0xff]  }
0x15f5   : > { %v1668_v19 = vsel %vm1170_vm7, %v1667_v13, 0.0  ;;  %v1672_v21 = vmul.f32 %v1667_v13, %v1667_v13 }
0x15f6   : > { %1669 = vadd.xlane.f32.xlu1 %v1668_v19 }
0x15f7   : > { %v1673_v22 = vsel %vm1170_vm7, %v1672_v21, 0.0 }
0x15fa   : > { %1674 = vadd.xlane.f32.xlu1 %v1673_v22 }
0x1683   : > { %v1670_v25 = vpop.xlane.xlu1 %1669 }
0x1684   : > { %v1671_v26 = vmul.f32 0.03125, %v1670_v25 }
0x1686   : > { %v1677_v29 = vmul.f32 %v1671_v26, %v1671_v26  ;;  %v1679_v33 = vsub.f32 %v1667_v13, %v1671_v26 }
0x1687   : > { %v1675_v27 = vpop.xlane.xlu1 %1674 }
0x1688   : > { %v1676_v30 = vmul.f32 0.03125, %v1675_v27  ;;  %v3547_v27 = vld [vmem:[%s4934_s3 + $0x57] ss:$0 sm:$0xff] }
0x168a   : > { %v1678_v31 = vsub.f32 %v1676_v30, %v1677_v29 }
0x168c   : > { %v1680_v32 = vadd.f32 1e-06, %v1678_v31 }
0x168e   : > { %4139 = vrsqrt.f32 %v1680_v32 }
0x1698   : > { %v4140_v34 = vpop.eup %4139 }
0x1699   : > { %v1682_v36 = vmul.f32 %v4140_v34, %v1679_v33 }
0x169b   : > { %v1688_v62 = vmul.f32 %v3535_v35, %v1682_v36 }
0x169d   : > { %v4611_v38 = vadd.f32 %v3536_v37, %v1688_v62 }
0x169f   : > { %v4615_v39 = vpack.c.bf16 %v4611_v38, %v4611_v38 }
0x16a1   : > { %3855 = vmatmul.mubr.msk.bf16.vlgmr.msra.gmra.mrb[40].mxu1 %vm304_vm1, %v4615_v39 }
0x16a2   : > { %3866 = vmatprep.mubr.msk.bf16.mxu1 %vm4172_vm2, %v4171_v28 }
0x1774   : > { %v1816_v41 = vpop.f32.mrb[40].mxu1 }
0x1775   : > { %v1817_v42 = vadd.f32 %v3541_v40, %v1816_v41  ;;  %v3856_v43 = vpop.f32.mrb[41].mxu1 }
0x1776   : > { %v1819_v45 = vpop.f32.mrb[42].mxu1 }
0x1777   : > { %v1823_v46 = vpack.c.bf16 %v1817_v42, %v1817_v42  ;;  %v3857_v48 = vpop.f32.mrb[43].mxu1 }
0x1779   : > { %v1828_v49 = vsel %vm304_vm1, %v1823_v46, 0 }
0x177a   : > { %3859 = vmatpush3.bf16.xpose.msra.mxu0 %v1828_v49 }
0x177b   : > { %3870 = vmatprep.subr.bf16.mxu0 %v4171_v28 }
0x1781   : > { %3861 = vmatmul.mubr.msk.bf16.vlgmr.msra.gmra.mrb[40].mxu0 %vm304_vm1, %v1822_v7 }
0x1782   : > { %3874 = vmatprep.mubr.msk.bf16.mxu0 %vm4172_vm2, %v4171_v28  ;;  %3871 = vmatpush3.bf16.msra.mxu0 %v4093_v0 }
0x1783   : > { %3872 = vmatprep.subr.bf16.mxu0 %v4171_v28 }
0x1786   : > { %3873 = vmatpush3.bf16.msra.mxu0 %v4094_v12  ;;  %v3553_v12 = vld [vmem:[%s4934_s3 + $0x5a] ss:$0 sm:$0xff] }
0x1787   : > { %3886 = vmatprep.subr.bf16.mxu0 %v4171_v28 }
0x1854   : > { %v1864_v50 = vpop.f32.mrb[40].mxu0 }
0x1855   : > { %v1871_v51 = vmul.f32 0.17677669, %v1864_v50  ;;  %v3862_v17 = vpop.f32.mrb[41].mxu0 }
0x1856   : > { %v1867_v20 = vpop.f32.mrb[42].mxu0 }
0x1857   : > { %v1872_v52 = vmul.f32 0.17677669, %v1867_v20  ;;  %v3863_v53 = vpop.f32.mrb[43].mxu0  ;;  %v1873_v54 = vsel %vm1056_vm6, %v1871_v51, -inf }
0x1858   : > { %1874 = vmax.xlane.f32.xlu1 %v1873_v54 }
0x1859   : > { %v1876_v55 = vsel %vm1056_vm6, %v1872_v52, -inf }
0x185c   : > { %1877 = vmax.xlane.f32.xlu1 %v1876_v55 }
0x18e5   : > { %v1875_v56 = vpop.xlane.xlu1 %1874 }
0x18e6   : > { %v1879_v57 = vsub.f32 %v1871_v51, %v1875_v56 }
0x18e8   : > { %v1881_v58 = vmul.f32 1.442695, %v1879_v57 }
0x18e9   : > { %v1878_v59 = vpop.xlane.xlu1 %1877 }
0x18ea   : > { %4141 = vpow2.f32 %v1881_v58  ;;  %v1880_v60 = vsub.f32 %v1872_v52, %v1878_v59 }
0x18ec   : > { %v1883_v61 = vmul.f32 1.442695, %v1880_v60  ;;  %v3551_v60 = vld [vmem:[%s4934_s3 + $0x58] ss:$0 sm:$0xff] }
0x18ee   : > { %4143 = vpow2.f32 %v1883_v61 }
0x18f4   : > { %v4142_v16 = vpop.eup %4141 }
0x18f5   : > { %v1885_v44 = vsel %vm1056_vm6, %v4142_v16, 0.0 }
0x18f6   : > { %1886 = vadd.xlane.f32.xlu0 %v1885_v44 }
0x18f8   : > { %v4144_v47 = vpop.eup %4143 }
0x18f9   : > { %v1888_v63 = vsel %vm1056_vm6, %v4144_v47, 0.0 }
0x18fa   : > { %1889 = vadd.xlane.f32.xlu1 %v1888_v63  ;;  %v3552_v63 = vld [vmem:[%s4934_s3 + $0x59] ss:$0 sm:$0xff] }
0x190b   : > { %1897 = vrot.lane.b32.xlu1 %v1823_v46, %s4173_s21 }
0x1983   : > { %v1887_v1 = vpop.xlane.xlu0 %1886 }
0x1984   : > { %4145 = vrcp.f32 %v1887_v1 }
0x1987   : > { %v1890_v2 = vpop.xlane.xlu1 %1889 }
0x1988   : > { %4147 = vrcp.f32 %v1890_v2 }
0x198b   : > { %v1898_v3 = vpop.permute.xlu1 %1897 }
0x198c   : > { %v1903_v4 = vsel %vm1060_vm5, %v1898_v3, 0 }
0x198d   : > { %3865 = vmatpush3.bf16.msra.mxu1 %v1903_v4  ;;  %v3557_v4 = vld [vmem:[%s4934_s3 + $0x5b] ss:$0 sm:$0xff] }
0x198e   : > { %3878 = vmatprep.subr.bf16.mxu1 %v4171_v28  ;;  %v4146_v5 = vpop.eup %4145 }
0x198f   : > { %v1893_v7 = vmul.f32 %v4146_v5, %v4142_v16 }
0x1992   : > { %v4148_v6 = vpop.eup %4147 }
0x1993   : > { %v1894_v8 = vmul.f32 %v4148_v6, %v4144_v47 }
0x1995   : > { %v1895_v10 = vpack.c.bf16 %v1894_v8, %v1893_v7 }
0x1997   : > { %3867 = vmatmul.mubr.msk.bf16.vlgmr.msra.gmra.mrb[44].mxu1 %vm1056_vm6, %v1895_v10 }
0x1998   : > { %3879 = vmatpush3.bf16.msra.mxu1 %v4091_v9  ;;  %3882 = vmatprep.mubr.msk.bf16.mxu1 %vm4172_vm2, %v4171_v28 }
0x1999   : > { %3880 = vmatprep.subr.bf16.mxu1 %v4171_v28 }
0x199c   : > { %3881 = vmatpush3.bf16.msra.mxu1 %v4092_v11 }
0x199d   : > { %3894 = vmatprep.subr.bf16.mxu1 %v4171_v28 }
0x199f   : > { %3883 = vmatmul.mubr.msk.bf16.vlgmr.msra.gmra.mrb[48].mxu1 %vm304_vm1, %v4615_v39 }
0x19a0   : > { %3896 = vmatprep.mubr.msk.bf16.mxu1 %vm4172_vm2, %v4171_v28 }
0x1a6a   : > { %v1939_v13 = vpop.f32.mrb[44].mxu1 }
0x1a6b   : > { %v3868_v18 = vpop.f32.mrb[45].mxu1 }
0x1a6c   : > { %v1942_v19 = vpop.f32.mrb[46].mxu1 }
0x1a6d   : > { %v1950_v21 = vpack.c.bf16 %v1942_v19, %v1939_v13  ;;  %v3869_v22 = vpop.f32.mrb[47].mxu1 }
0x1a6f   : > { %3875 = vmatmul.mubr.msk.bf16.vlgmr.msra.gmra.mrb[44].mxu0 %vm304_vm1, %v1950_v21 }
0x1a70   : > { %3890 = vmatprep.mubr.msk.bf16.mxu0 %vm4172_vm2, %v4171_v28 }
0x1a72   : > { %v4662_v23 = vpop.f32.mrb[48].mxu1 }
0x1a73   : > { %v3884_v24 = vpop.f32.mrb[49].mxu1  ;;  %v2114_v18 = vadd.f32 %v3553_v12, %v4662_v23  ;;  %v2391_v12 = vld [vmem:[%s4934_s3 + $0x28] sm:$0xf] }
0x1a74   : > { %v2116_v25 = vpop.f32.mrb[50].mxu1 }
0x1a75   : > { %v3885_v26 = vpop.f32.mrb[51].mxu1  ;;  %v2185_v19 = vpack.c.bf16 %v2114_v18, %v2114_v18 }
0x1b42   : > { %v2005_v29 = vpop.f32.mrb[44].mxu0 }
0x1b43   : > { %v2006_v30 = vadd.f32 %v3547_v27, %v2005_v29  ;;  %v3876_v31 = vpop.f32.mrb[45].mxu0 }
0x1b44   : > { %v2008_v32 = vpop.f32.mrb[46].mxu0 }
0x1b45   : > { %v2012_v33 = vadd.f32 %v2006_v30, %v4476_v15  ;;  %v2009_v34 = vadd.f32 %v3547_v27, %v2008_v32  ;;  %v3877_v35 = vpop.f32.mrb[47].mxu0  ;;  %v4095_v15 = vld [vmem:[%s4933_s2 + $0x48] ss:$88 sps:$4 sm:$0xff]  }
0x1b46   : > { %3887 = vmatpush3.bf16.msra.mxu0 %v4095_v15 }
0x1b47   : > { %v2013_v36 = vadd.f32 %v2009_v34, %v4473_v14  ;;  %v2014_v37 = vsel %vm304_vm1, %v2012_v33, 0.0  ;;  %v2022_v39 = vmul.f32 %v2012_v33, %v2012_v33  ;;  %v4096_v14 = vld [vmem:[%s4933_s2 + $0xf8] ss:$88 sps:$4 sm:$0xff]   ;;  %3888 = vmatprep.subr.bf16.mxu0 %v4171_v28 }
0x1b48   : > { %2015 = vadd.xlane.f32.xlu1 %v2014_v37 }
0x1b49   : > { %v2017_v62 = vsel %vm304_vm1, %v2013_v36, 0.0  ;;  %v2024_v40 = vsel %vm304_vm1, %v2022_v39, 0.0  ;;  %v2023_v41 = vmul.f32 %v2013_v36, %v2013_v36  ;;  %v4098_v39 = vld [vmem:[%s4933_s2 + $0xfc] ss:$88 sps:$4 sm:$0xff]  }
0x1b4a   : > { %2018 = vadd.xlane.f32.xlu0 %v2017_v62  ;;  %3889 = vmatpush3.bf16.msra.mxu0 %v4096_v14 }
0x1b4b   : > { %v2027_v42 = vsel %vm304_vm1, %v2023_v41, 0.0  ;;  %3900 = vmatprep.subr.bf16.mxu0 %v4171_v28 }
0x1b4e   : > { %2025 = vadd.xlane.f32.xlu0 %v2024_v40 }
0x1b52   : > { %2028 = vadd.xlane.f32.xlu0 %v2027_v42 }
0x1bd5   : > { %v2016_v43 = vpop.xlane.xlu1 %2015 }
0x1bd6   : > { %v2020_v46 = vmul.f32 0.03125, %v2016_v43  ;;  %v3563_v43 = vld [vmem:[%s4934_s3 + $0x5c] ss:$0 sm:$0xff] }
0x1bd7   : > { %v2019_v45 = vpop.xlane.xlu0 %2018 }
0x1bd8   : > { %v2032_v49 = vmul.f32 %v2020_v46, %v2020_v46  ;;  %v2021_v50 = vmul.f32 0.03125, %v2019_v45  ;;  %v2036_v57 = vsub.f32 %v2012_v33, %v2020_v46  ;;  %v4097_v33 = vld [vmem:[%s4933_s2 + $0x4c] ss:$88 sps:$4 sm:$0xff]  }
0x1bda   : > { %v2033_v52 = vmul.f32 %v2021_v50, %v2021_v50  ;;  %v2037_v61 = vsub.f32 %v2013_v36, %v2021_v50 }
0x1bdb   : > { %v2026_v48 = vpop.xlane.xlu0 %2025 }
0x1bdc   : > { %v2030_v51 = vmul.f32 0.03125, %v2026_v48 }
0x1bde   : > { %v2034_v17 = vsub.f32 %v2030_v51, %v2032_v49 }
0x1bdf   : > { %v2029_v20 = vpop.xlane.xlu0 %2028 }
0x1be0   : > { %v2038_v53 = vadd.f32 1e-06, %v2034_v17  ;;  %v2031_v54 = vmul.f32 0.03125, %v2029_v20 }
0x1be2   : > { %4149 = vrsqrt.f32 %v2038_v53  ;;  %v2035_v55 = vsub.f32 %v2031_v54, %v2033_v52  ;;  %v4099_v53 = vld [vmem:[%s4933_s2 + $0x54] ss:$88 sps:$4 sm:$0xff]   ;;  %v4100_v54 = vld [vmem:[%s4933_s2 + $0x104] ss:$88 sps:$4 sm:$0xff]  }
0x1be4   : > { %v2039_v56 = vadd.f32 1e-06, %v2035_v55 }
0x1be6   : > { %4151 = vrsqrt.f32 %v2039_v56 }
0x1bec   : > { %v4150_v58 = vpop.eup %4149 }
0x1bed   : > { %v2042_v59 = vmul.f32 %v4150_v58, %v2036_v57 }
0x1bef   : > { %v2049_v47 = vmul.f32 %v3551_v60, %v2042_v59 }
0x1bf0   : > { %v4152_v16 = vpop.eup %4151 }
0x1bf1   : > { %v2043_v44 = vmul.f32 %v4152_v16, %v2037_v61  ;;  %v2056_v1 = vadd.f32 %v3552_v63, %v2049_v47 }
0x1bf3   : > { %v2050_v0 = vmul.f32 %v3551_v60, %v2043_v44  ;;  %v3567_v44 = vld [vmem:[%s4934_s3 + $0x5d] ss:$0 sm:$0xff] }
0x1bf5   : > { %v2057_v2 = vadd.f32 %v3552_v63, %v2050_v0  ;;  %v3568_v63 = vld [vmem:[%s4934_s3 + $0x5e] ss:$0 sm:$0xff] }
0x1bf7   : > { %v4687_v3 = vpack.c.bf16 %v2057_v2, %v2056_v1 }
0x1bf9   : > { %3891 = vmatmul.mubr.msk.bf16.vlgmr.msra.gmra.mrb[48].mxu0 %vm304_vm1, %v4687_v3 }
0x1bfa   : > { %3902 = vmatprep.mubr.msk.bf16.mxu0 %vm4172_vm2, %v4171_v28 }
0x1ccc   : > { %v2178_v5 = vpop.f32.mrb[48].mxu0 }
0x1ccd   : > { %v3892_v6 = vpop.f32.mrb[49].mxu0  ;;  %v2179_v8 = vadd.f32 %v3557_v4, %v2178_v5 }
0x1cce   : > { %v2181_v7 = vpop.f32.mrb[50].mxu0 }
0x1ccf   : > { %v2182_v9 = vadd.f32 %v3557_v4, %v2181_v7  ;;  %v3893_v10 = vpop.f32.mrb[51].mxu0  ;;  %v4101_v7 = vld [vmem:[%s4933_s2 + $0x50] ss:$88 sps:$4 sm:$0xff]  }
0x1cd0   : > { %v2457_v10 = vld [vmem:[%s4934_s3 + $0x20] sm:$0xff] }
0x1cd1   : > { %v2186_v11 = vpack.c.bf16 %v2182_v9, %v2179_v8  ;;  %v4102_v9 = vld [vmem:[%s4933_s2 + $0x100] ss:$88 sps:$4 sm:$0xff]  }
0x1cd3   : > { %v2191_v13 = vsel %vm304_vm1, %v2186_v11, 0 }
0x1cd4   : > { %3895 = vmatpush3.bf16.xpose.msra.mxu1 %v2191_v13 }
0x1cd5   : > { %3906 = vmatprep.subr.bf16.mxu1 %v4171_v28 }
0x1cdb   : > { %3897 = vmatmul.mubr.msk.bf16.vlgmr.msra.gmra.mrb[52].mxu1 %vm304_vm1, %v2185_v19 }
0x1cdc   : > { %3910 = vmatprep.mubr.msk.bf16.mxu1 %vm4172_vm2, %v4171_v28  ;;  %3907 = vmatpush3.bf16.msra.mxu1 %v4097_v33 }
0x1cdd   : > { %3908 = vmatprep.subr.bf16.mxu1 %v4171_v28 }
0x1ce0   : > { %3909 = vmatpush3.bf16.msra.mxu1 %v4098_v39 }
0x1ce1   : > { %3922 = vmatprep.subr.bf16.mxu1 %v4171_v28 }
0x1dae   : > { %v2227_v21 = vpop.f32.mrb[52].mxu1 }
0x1daf   : > { %v2233_v22 = vmul.f32 0.17677669, %v2227_v21  ;;  %v3898_v24 = vpop.f32.mrb[53].mxu1 }
0x1db0   : > { %v2230_v25 = vpop.f32.mrb[54].mxu1 }
0x1db1   : > { %v3899_v26 = vpop.f32.mrb[55].mxu1  ;;  %v2234_v27 = vsel %vm1378_vm8, %v2233_v22, -inf }
0x1db2   : > { %2235 = vmax.xlane.f32.xlu0 %v2234_v27  ;;  %v3572_v26 = vld [vmem:[%s4934_s3 + $0x5f] ss:$0 sm:$0xff] }
0x1e3f   : > { %v2236_v29 = vpop.xlane.xlu0 %2235 }
0x1e40   : > { %v2237_v30 = vsub.f32 %v2233_v22, %v2236_v29 }
0x1e42   : > { %v2238_v31 = vmul.f32 1.442695, %v2237_v30 }
0x1e44   : > { %4153 = vpow2.f32 %v2238_v31 }
0x1e4e   : > { %v4154_v23 = vpop.eup %4153 }
0x1e4f   : > { %v2240_v32 = vsel %vm1378_vm8, %v4154_v23, 0.0 }
0x1e50   : > { %2241 = vadd.xlane.f32.xlu0 %v2240_v32 }
0x1e66   : > { %2247 = vrot.lane.b32.xlu0 %v2186_v11, %s4173_s21  ;;  %v2459_v11 = vpack.c.bf16 %v2457_v10, %v2457_v10 }
0x1edd   : > { %v2242_v34 = vpop.xlane.xlu0 %2241 }
0x1ede   : > { %4155 = vrcp.f32 %v2242_v34 }
0x1ee1   : > { %v2248_v35 = vpop.permute.xlu0 %2247 }
0x1ee2   : > { %3901 = vmatpush3.bf16.msra.mxu0 %v2248_v35 }
0x1ee3   : > { %3914 = vmatprep.subr.bf16.mxu0 %v4171_v28 }
0x1ee8   : > { %v4156_v36 = vpop.eup %4155 }
0x1ee9   : > { %v2244_v37 = vmul.f32 %v4156_v36, %v4154_v23 }
0x1eeb   : > { %v2245_v62 = vpack.c.bf16 %v2244_v37, %v2244_v37 }
0x1eed   : > { %3903 = vmatmul.mubr.msk.bf16.vlgmr.msra.gmra.mrb[52].mxu0 %vm469_vm3, %v2245_v62 }
0x1eee   : > { %3918 = vmatprep.mubr.msk.bf16.mxu0 %vm4172_vm2, %v4171_v28  ;;  %3915 = vmatpush3.bf16.msra.mxu0 %v4099_v53 }
0x1eef   : > { %3916 = vmatprep.subr.bf16.mxu0 %v4171_v28 }
0x1ef2   : > { %3917 = vmatpush3.bf16.msra.mxu0 %v4100_v54 }
0x1ef3   : > { %3928 = vmatprep.subr.bf16.mxu0 %v4171_v28 }
0x1fc0   : > { %v2287_v40 = vpop.f32.mrb[52].mxu0 }
0x1fc1   : > { %v2297_v41 = vpack.c.bf16 %v2287_v40, %v2287_v40  ;;  %v3904_v42 = vpop.f32.mrb[53].mxu0 }
0x1fc2   : > { %v2290_v15 = vpop.f32.mrb[54].mxu0 }
0x1fc3   : > { %v3905_v14 = vpop.f32.mrb[55].mxu0  ;;  %3911 = vmatmul.mubr.msk.bf16.vlgmr.msra.gmra.mrb[56].mxu1 %vm304_vm1, %v2297_v41 }
0x1fc4   : > { %3924 = vmatprep.mubr.msk.bf16.mxu1 %vm4172_vm2, %v4171_v28  ;;  %3923 = vmatpush3.bf16.xpose.msra.mxu1 %v2459_v11 }
0x1fc5   : > { %3936 = vmatprep.subr.bf16.mxu1 %v4171_v28 }
0x2096   : > { %v2352_v45 = vpop.f32.mrb[56].mxu1 }
0x2097   : > { %v2353_v46 = vadd.f32 %v3563_v43, %v2352_v45  ;;  %v3912_v48 = vpop.f32.mrb[57].mxu1 }
0x2098   : > { %v2355_v49 = vpop.f32.mrb[58].mxu1 }
0x2099   : > { %v2358_v50 = vadd.f32 %v2353_v46, %v4611_v38  ;;  %v3913_v51 = vpop.f32.mrb[59].mxu1 }
0x209b   : > { %v2359_v17 = vsel %vm1170_vm7, %v2358_v50, 0.0  ;;  %v2363_v20 = vmul.f32 %v2358_v50, %v2358_v50 }
0x209c   : > { %2360 = vadd.xlane.f32.xlu1 %v2359_v17 }
0x209d   : > { %v2364_v52 = vsel %vm1170_vm7, %v2363_v20, 0.0 }
0x20a0   : > { %2365 = vadd.xlane.f32.xlu1 %v2364_v52 }
0x2129   : > { %v2361_v38 = vpop.xlane.xlu1 %2360 }
0x212a   : > { %v2362_v55 = vmul.f32 0.03125, %v2361_v38  ;;  %v2460_v38 = vld [vmem:[%s4934_s3 + $0x38] sm:$0xf] }
0x212c   : > { %v2368_v57 = vmul.f32 %v2362_v55, %v2362_v55  ;;  %v2370_v61 = vsub.f32 %v2358_v50, %v2362_v55 }
0x212d   : > { %v2366_v56 = vpop.xlane.xlu1 %2365 }
0x212e   : > { %v2367_v58 = vmul.f32 0.03125, %v2366_v56 }
0x2130   : > { %v2369_v59 = vsub.f32 %v2367_v58, %v2368_v57 }
0x2132   : > { %v2371_v60 = vadd.f32 1e-06, %v2369_v59 }
0x2134   : > { %4157 = vrsqrt.f32 %v2371_v60 }
0x213e   : > { %v4158_v16 = vpop.eup %4157 }
0x213f   : > { %v2373_v47 = vmul.f32 %v4158_v16, %v2370_v61 }
0x2141   : > { %v2379_v0 = vmul.f32 %v3567_v44, %v2373_v47 }
0x2143   : > { %v2385_v1 = vadd.f32 %v3568_v63, %v2379_v0 }
0x2145   : > { %v2390_v2 = vpack.c.bf16 %v2385_v1, %v2385_v1 }
0x2147   : > { %v2395_v4 = vshll.u32 %v2390_v2, 16  ;;  %v2393_v5 = vshrl.u32 %v2390_v2, 16 }
0x2149   : > { %v2397_v6 = vrot.slane %v2395_v4, 1 }
0x214b   : > { %v2398_v8 = vor.u32 %v2397_v6, %v2393_v5 }
0x214d   : > { %3919 = vmatmul.mubr.msk.bf16.vlgmr.msra.gmra.mrb[56].mxu0 %vm304_vm1, %v2398_v8 }
0x214e   : > { %3929 = vmatpush3.bf16.msra.mxu0 %v4101_v7  ;;  %3932 = vmatprep.mubr.msk.bf16.mxu0 %vm4172_vm2, %v4171_v28 }
0x214f   : > { %3930 = vmatprep.subr.bf16.mxu0 %v4171_v28 }
0x2152   : > { %3931 = vmatpush3.bf16.msra.mxu0 %v4102_v9 }
0x2153   : > { %3942 = vmatprep.subr.bf16.mxu0 %v4171_v28 }
0x2155   : > { %3933 = vmatmul.mubr.msk.bf16.vlgmr.msra.gmra.mrb[60].mxu0 %vm304_vm1, %v4687_v3  ;;  %v2455_v3 = vld [vmem:[%s4934_s3 + $0x30] sm:$0xf]  ;;  %vm2988_vm1 = vcmask 1044352  }
0x2156   : > { %3944 = vmatprep.mubr.msk.bf16.mxu0 %vm4172_vm2, %v4171_v28 }
0x2220   : > { %v2448_v13 = vpop.f32.mrb[56].mxu0 }
0x2221   : > { %v2449_v18 = vadd.f32 %v2448_v13, %v2391_v12  ;;  %v3920_v19 = vpop.f32.mrb[57].mxu0 }
0x2222   : > { %v2451_v21 = vpop.f32.mrb[58].mxu0 }
0x2223   : > { %v2454_v22 = vmax.f32 %v2449_v18, 0.0  ;;  %v3921_v24 = vpop.f32.mrb[59].mxu0 }
0x2225   : > { %v2456_v25 = vmul.f32 %v2455_v3, %v2454_v22 }
0x2227   : > { %v2458_v27 = vpack.c.bf16 %v2456_v25, %v2456_v25 }
0x2228   : > { %v2556_v29 = vpop.f32.mrb[60].mxu0 }
0x2229   : > { %v2557_v30 = vadd.f32 %v3572_v26, %v2556_v29  ;;  %3925 = vmatmul.mubr.bf16.vlgmr.msra.gmra.mrb[60].mxu1 %v2458_v27  ;;  %v3934_v31 = vpop.f32.mrb[61].mxu0 }
0x222a   : > { %v2559_v23 = vpop.f32.mrb[62].mxu0  ;;  %3938 = vmatprep.mubr.msk.bf16.mxu1 %vm4172_vm2, %v4171_v28 }
0x222b   : > { %v2563_v32 = vmul.f32 %v2557_v30, %v2557_v30  ;;  %v2560_v33 = vadd.f32 %v3572_v26, %v2559_v23  ;;  %v3935_v34 = vpop.f32.mrb[63].mxu0 }
0x222d   : > { %v2565_v35 = vmul.f32 %v2563_v32, %v2557_v30  ;;  %v2564_v36 = vmul.f32 %v2560_v33, %v2560_v33 }
0x222f   : > { %v2567_v37 = vmul.f32 0.044715, %v2565_v35  ;;  %v2566_v62 = vmul.f32 %v2564_v36, %v2560_v33 }
0x2231   : > { %v2569_v39 = vadd.f32 %v2567_v37, %v2557_v30  ;;  %v2568_v40 = vmul.f32 0.044715, %v2566_v62 }
0x2233   : > { %v2571_v41 = vmul.f32 0.7978846, %v2569_v39  ;;  %v2570_v42 = vadd.f32 %v2568_v40, %v2560_v33 }
0x2235   : > { %4159 = vtanh.f32 %v2571_v41  ;;  %v2572_v15 = vmul.f32 0.7978846, %v2570_v42 }
0x2237   : > { %4161 = vtanh.f32 %v2572_v15 }
0x223f   : > { %v4160_v14 = vpop.eup %4159 }
0x2240   : > { %v2575_v43 = vadd.f32 1.0, %v4160_v14 }
0x2241   : > { %v4162_v45 = vpop.eup %4161 }
0x2242   : > { %v2577_v46 = vmul.f32 0.5, %v2575_v43  ;;  %v2576_v48 = vadd.f32 1.0, %v4162_v45 }
0x2244   : > { %v2578_v49 = vmul.f32 0.5, %v2576_v48  ;;  %v2579_v50 = vmul.f32 %v2577_v46, %v2557_v30 }
0x2246   : > { %v2580_v51 = vmul.f32 %v2578_v49, %v2560_v33 }
0x2248   : > { %v2582_v17 = vpack.c.bf16 %v2580_v51, %v2579_v50 }
0x224a   : > { %2684 = vrot.lane.b32.xlu0 %v2582_v17, %s4175_s29  ;;  %2633 = vrot.lane.b32.xlu1 %v2582_v17, %s4176_s30  ;;  %v2588_v20 = vsel %vm2583_vm9, %v2582_v17, 0 }
0x224b   : > { %3937 = vmatpush3.bf16.xpose.msra.mxu1 %v2588_v20 }
0x224c   : > { %3948 = vmatprep.subr.bf16.mxu1 %v4171_v28 }
0x224e   : > { %2735 = vrot.lane.b32.xlu0 %v2582_v17, %s4177_s5  ;;  %2837 = vrot.lane.b32.xlu1 %v2582_v17, %s4178_s6 }
0x2252   : > { %2786 = vrot.lane.b32.xlu0 %v2582_v17, %s4173_s21  ;;  %2939 = vrot.lane.b32.xlu1 %v2582_v17, %s4179_s7 }
0x2256   : > { %2888 = vrot.lane.b32.xlu0 %v2582_v17, %s4180_s8  ;;  %3036 = vrot.lane.b32.xlu1 %v2582_v17, %s4181_s9 }
0x225a   : > { %2990 = vrot.lane.b32.xlu0 %v2582_v17, %s4174_s22  ;;  %3136 = vrot.lane.b32.xlu1 %v2582_v17, %s4182_s10 }
0x225e   : > { %3086 = vrot.lane.b32.xlu0 %v2582_v17, %s4183_s11  ;;  %3236 = vrot.lane.b32.xlu1 %v2582_v17, %s4184_s12 }
0x2262   : > { %3186 = vrot.lane.b32.xlu0 %v2582_v17, %s4185_s13  ;;  %3336 = vrot.lane.b32.xlu1 %v2582_v17, %s4186_s14 }
0x2266   : > { %3286 = vrot.lane.b32.xlu0 %v2582_v17, %s4187_s17 }
0x22bc   : > { %v2634_v52 = vpop.permute.xlu1 %2633  ;;  %v2685_v54 = vpop.permute.xlu0 %2684 }
0x22bd   : > { %v2636_v53 = vsel %vm2583_vm9, %v2634_v52, 0  ;;  %v2687_v16 = vsel %vm2583_vm9, %v2685_v54, 0 }
0x22be   : > { %3943 = vmatpush3.bf16.xpose.msra.mxu0 %v2636_v53 }
0x22bf   : > { %3954 = vmatprep.subr.bf16.mxu0 %v4171_v28 }
0x22c0   : > { %v2736_v58 = vpop.permute.xlu0 %2735  ;;  %v2838_v47 = vpop.permute.xlu1 %2837 }
0x22c1   : > { %v2738_v44 = vsel %vm2583_vm9, %v2736_v58, 0  ;;  %v2840_v0 = vsel %vm2583_vm9, %v2838_v47, 0 }
0x22c4   : > { %v2787_v63 = vpop.permute.xlu0 %2786  ;;  %v2940_v2 = vpop.permute.xlu1 %2939 }
0x22c5   : > { %v2789_v1 = vsel %vm2583_vm9, %v2787_v63, 0  ;;  %v2942_v5 = vsel %vm2583_vm9, %v2940_v2, 0 }
0x22c8   : > { %v2889_v4 = vpop.permute.xlu0 %2888  ;;  %v3037_v7 = vpop.permute.xlu1 %3036 }
0x22c9   : > { %v2891_v6 = vsel %vm2583_vm9, %v2889_v4, 0  ;;  %v3039_v9 = vsel %vm2583_vm9, %v3037_v7, 0 }
0x22cc   : > { %v2991_v8 = vpop.permute.xlu0 %2990  ;;  %v3137_v11 = vpop.permute.xlu1 %3136 }
0x22cd   : > { %v2993_v10 = vsel %vm2583_vm9, %v2991_v8, 0  ;;  %v3139_v13 = vsel %vm2583_vm9, %v3137_v11, 0 }
0x22d0   : > { %v3087_v12 = vpop.permute.xlu0 %3086  ;;  %v3237_v19 = vpop.permute.xlu1 %3236 }
0x22d1   : > { %v3089_v18 = vsel %vm2583_vm9, %v3087_v12, 0  ;;  %v3239_v21 = vsel %vm2583_vm9, %v3237_v19, 0 }
0x22d4   : > { %v3187_v3 = vpop.permute.xlu0 %3186  ;;  %v3337_v24 = vpop.permute.xlu1 %3336 }
0x22d5   : > { %v3189_v22 = vsel %vm2583_vm9, %v3187_v3, 0  ;;  %v3339_v26 = vsel %vm2583_vm9, %v3337_v24, 0 }
0x22d8   : > { %v3287_v25 = vpop.permute.xlu0 %3286 }
0x22d9   : > { %v3289_v27 = vsel %vm2583_vm9, %v3287_v25, 0 }
0x22fc   : > { %v2495_v55 = vpop.f32.mrb[60].mxu1 }
0x22fd   : > { %v2496_v56 = vadd.f32 %v2495_v55, %v2460_v38  ;;  %v3926_v57 = vpop.f32.mrb[61].mxu1 }
0x22fe   : > { %v2498_v59 = vpop.f32.mrb[62].mxu1 }
0x22ff   : > { %v4787_v60 = vpack.c.bf16 %v2496_v56, %v2496_v56  ;;  %v3927_v61 = vpop.f32.mrb[63].mxu1 }
0x2301   : > { %3939 = vmatmul.mubr.msk.bf16.vlgmr.msra.gmra.mrb[64].mxu1 %vm2583_vm9, %v4787_v60  ;;  %3945 = vmatmul.mubr.msk.bf16.vlgmr.msra.gmra.mrb[64].mxu0 %vm2583_vm9, %v4787_v60 }
0x2302   : > { %3949 = vmatpush3.bf16.xpose.msra.mxu1 %v2687_v16  ;;  %3955 = vmatpush3.bf16.xpose.msra.mxu0 %v2738_v44 }
0x2303   : > { %3950 = vmatprep.mubr.msk.bf16.mxu1 %vm4172_vm2, %v4171_v28  ;;  %3956 = vmatprep.mubr.msk.bf16.mxu0 %vm4172_vm2, %v4171_v28 }
0x2304   : > { %3960 = vmatprep.subr.bf16.mxu1 %v4171_v28  ;;  %3966 = vmatprep.subr.bf16.mxu0 %v4171_v28 }
0x2309   : > { %3951 = vmatmul.mubr.msk.bf16.vlgmr.msra.gmra.mrb[68].mxu1 %vm2583_vm9, %v4787_v60  ;;  %3957 = vmatmul.mubr.msk.bf16.vlgmr.msra.gmra.mrb[68].mxu0 %vm2583_vm9, %v4787_v60 }
0x230a   : > { %3961 = vmatpush3.bf16.xpose.msra.mxu1 %v2789_v1  ;;  %3967 = vmatpush3.bf16.xpose.msra.mxu0 %v2840_v0 }
0x230b   : > { %3962 = vmatprep.mubr.msk.bf16.mxu1 %vm4172_vm2, %v4171_v28  ;;  %3968 = vmatprep.mubr.msk.bf16.mxu0 %vm4172_vm2, %v4171_v28 }
0x230c   : > { %3972 = vmatprep.subr.bf16.mxu1 %v4171_v28  ;;  %3978 = vmatprep.subr.bf16.mxu0 %v4171_v28 }
0x2311   : > { %3963 = vmatmul.mubr.msk.bf16.vlgmr.msra.gmra.mrb[72].mxu1 %vm2583_vm9, %v4787_v60  ;;  %3969 = vmatmul.mubr.msk.bf16.vlgmr.msra.gmra.mrb[72].mxu0 %vm2583_vm9, %v4787_v60 }
0x2312   : > { %3973 = vmatpush3.bf16.xpose.msra.mxu1 %v2891_v6  ;;  %3979 = vmatpush3.bf16.xpose.msra.mxu0 %v2942_v5 }
0x2313   : > { %3974 = vmatprep.mubr.msk.bf16.mxu1 %vm4172_vm2, %v4171_v28  ;;  %3980 = vmatprep.mubr.msk.bf16.mxu0 %vm4172_vm2, %v4171_v28 }
0x2314   : > { %3984 = vmatprep.subr.bf16.mxu1 %v4171_v28  ;;  %3990 = vmatprep.subr.bf16.mxu0 %v4171_v28 }
0x2319   : > { %3975 = vmatmul.mubr.msk.bf16.vlgmr.msra.gmra.mrb[76].mxu1 %vm2583_vm9, %v4787_v60  ;;  %3981 = vmatmul.mubr.msk.bf16.vlgmr.msra.gmra.mrb[76].mxu0 %vm2583_vm9, %v4787_v60 }
0x231a   : > { %3985 = vmatpush3.bf16.xpose.msra.mxu1 %v2993_v10  ;;  %3991 = vmatpush3.bf16.xpose.msra.mxu0 %v3039_v9 }
0x231b   : > { %3986 = vmatprep.mubr.msk.bf16.mxu1 %vm4172_vm2, %v4171_v28  ;;  %3992 = vmatprep.mubr.msk.bf16.mxu0 %vm4172_vm2, %v4171_v28 }
0x231c   : > { %3996 = vmatprep.subr.bf16.mxu1 %v4171_v28  ;;  %4002 = vmatprep.subr.bf16.mxu0 %v4171_v28 }
0x2321   : > { %3987 = vmatmul.mubr.msk.bf16.vlgmr.msra.gmra.mrb[80].mxu1 %vm2583_vm9, %v4787_v60  ;;  %3993 = vmatmul.mubr.msk.bf16.vlgmr.msra.gmra.mrb[80].mxu0 %vm2583_vm9, %v4787_v60 }
0x2322   : > { %3997 = vmatpush3.bf16.xpose.msra.mxu1 %v3089_v18  ;;  %4003 = vmatpush3.bf16.xpose.msra.mxu0 %v3139_v13 }
0x2323   : > { %3998 = vmatprep.mubr.msk.bf16.mxu1 %vm4172_vm2, %v4171_v28  ;;  %4004 = vmatprep.mubr.msk.bf16.mxu0 %vm4172_vm2, %v4171_v28 }
0x2324   : > { %4008 = vmatprep.subr.bf16.mxu1 %v4171_v28  ;;  %4014 = vmatprep.subr.bf16.mxu0 %v4171_v28 }
0x2329   : > { %3999 = vmatmul.mubr.msk.bf16.vlgmr.msra.gmra.mrb[84].mxu1 %vm2583_vm9, %v4787_v60  ;;  %4005 = vmatmul.mubr.msk.bf16.vlgmr.msra.gmra.mrb[84].mxu0 %vm2583_vm9, %v4787_v60 }
0x232a   : > { %4009 = vmatpush3.bf16.xpose.msra.mxu1 %v3189_v22  ;;  %4015 = vmatpush3.bf16.xpose.msra.mxu0 %v3239_v21 }
0x232b   : > { %4010 = vmatprep.mubr.msk.bf16.mxu1 %vm4172_vm2, %v4171_v28  ;;  %4016 = vmatprep.mubr.msk.bf16.mxu0 %vm4172_vm2, %v4171_v28 }
0x232c   : > { %4020 = vmatprep.subr.bf16.mxu1 %v4171_v28  ;;  %4026 = vmatprep.subr.bf16.mxu0 %v4171_v28 }
0x2331   : > { %4011 = vmatmul.mubr.msk.bf16.vlgmr.msra.gmra.mrb[88].mxu1 %vm2583_vm9, %v4787_v60  ;;  %4017 = vmatmul.mubr.msk.bf16.vlgmr.msra.gmra.mrb[88].mxu0 %vm2583_vm9, %v4787_v60 }
0x2332   : > { %4021 = vmatpush3.bf16.xpose.msra.mxu1 %v3289_v27  ;;  %4027 = vmatpush3.bf16.xpose.msra.mxu0 %v3339_v26 }
0x2333   : > { %4022 = vmatprep.mubr.msk.bf16.mxu1 %vm4172_vm2, %v4171_v28  ;;  %4028 = vmatprep.mubr.msk.bf16.mxu0 %vm4172_vm2, %v4171_v28 }
0x2339   : > { %4023 = vmatmul.mubr.msk.bf16.vlgmr.msra.gmra.mrb[92].mxu1 %vm2583_vm9, %v4787_v60  ;;  %4029 = vmatmul.mubr.msk.bf16.vlgmr.msra.gmra.mrb[92].mxu0 %vm2583_vm9, %v4787_v60 }
0x23d4   : > { %v2624_v29 = vpop.f32.mrb[64].mxu1  ;;  %v2672_v30 = vpop.f32.mrb[64].mxu0 }
0x23d5   : > { %2631 = vst.msk [vmem:[%s4880_s24] sm:$0xf] %vm2630_vm10, %v2624_v29  ;;  %2679 = vrot.lane.b32.xlu0 %v2672_v30, %s4187_s17  ;;  %v3940_v28 = vpop.f32.mrb[65].mxu1  ;;  %v3946_v31 = vpop.f32.mrb[65].mxu0 }
0x23d6   : > { %v2627_v23 = vpop.f32.mrb[66].mxu1  ;;  %v2675_v32 = vpop.f32.mrb[66].mxu0 }
0x23d7   : > { %v3941_v33 = vpop.f32.mrb[67].mxu1  ;;  %v3947_v34 = vpop.f32.mrb[67].mxu0 }
0x23dc   : > { %v2723_v35 = vpop.f32.mrb[68].mxu1  ;;  %v2774_v36 = vpop.f32.mrb[68].mxu0 }
0x23dd   : > { %v3958_v37 = vpop.f32.mrb[69].mxu0  ;;  %2730 = vrot.lane.b32.xlu0 %v2723_v35, %s4185_s13  ;;  %v3952_v62 = vpop.f32.mrb[69].mxu1 }
0x23de   : > { %v2726_v39 = vpop.f32.mrb[70].mxu1  ;;  %v2777_v40 = vpop.f32.mrb[70].mxu0 }
0x23df   : > { %v3953_v41 = vpop.f32.mrb[71].mxu1  ;;  %v3959_v42 = vpop.f32.mrb[71].mxu0 }
0x23e1   : > { %2781 = vrot.lane.b32.xlu0 %v2774_v36, %s4183_s11 }
0x23e4   : > { %v2825_v15 = vpop.f32.mrb[72].mxu1  ;;  %v2876_v14 = vpop.f32.mrb[72].mxu0 }
0x23e5   : > { %v3970_v43 = vpop.f32.mrb[73].mxu0  ;;  %2832 = vrot.lane.b32.xlu0 %v2825_v15, %s4174_s22  ;;  %v3964_v45 = vpop.f32.mrb[73].mxu1 }
0x23e6   : > { %v2828_v46 = vpop.f32.mrb[74].mxu1  ;;  %v2879_v48 = vpop.f32.mrb[74].mxu0 }
0x23e7   : > { %v3965_v49 = vpop.f32.mrb[75].mxu1  ;;  %v3971_v50 = vpop.f32.mrb[75].mxu0 }
0x23e9   : > { %2883 = vrot.lane.b32.xlu0 %v2876_v14, %s4180_s8 }
0x23ec   : > { %v2927_v51 = vpop.f32.mrb[76].mxu1  ;;  %v2978_v17 = vpop.f32.mrb[76].mxu0 }
0x23ed   : > { %v3982_v20 = vpop.f32.mrb[77].mxu0  ;;  %2934 = vrot.lane.b32.xlu0 %v2927_v51, %s4173_s21  ;;  %v3976_v52 = vpop.f32.mrb[77].mxu1 }
0x23ee   : > { %v2930_v53 = vpop.f32.mrb[78].mxu1  ;;  %v2981_v54 = vpop.f32.mrb[78].mxu0 }
0x23ef   : > { %v3977_v38 = vpop.f32.mrb[79].mxu1  ;;  %v3983_v55 = vpop.f32.mrb[79].mxu0 }
0x23f1   : > { %2985 = vrot.lane.b32.xlu0 %v2978_v17, %s4175_s29 }
0x23f4   : > { %v3029_v56 = vpop.f32.mrb[80].mxu1  ;;  %v3075_v57 = vpop.f32.mrb[80].mxu0 }
0x23f5   : > { %3035 = vst.msk [vmem:[%s4880_s24 + $0x4] sm:$0xf] %vm2630_vm10, %v3029_v56  ;;  %3082 = vrot.lane.b32.xlu1 %v3075_v57, %s4187_s17  ;;  %v3988_v58 = vpop.f32.mrb[81].mxu1  ;;  %v3994_v59 = vpop.f32.mrb[81].mxu0 }
0x23f6   : > { %v3032_v60 = vpop.f32.mrb[82].mxu1  ;;  %v3078_v61 = vpop.f32.mrb[82].mxu0 }
0x23f7   : > { %v3989_v16 = vpop.f32.mrb[83].mxu1  ;;  %v3995_v44 = vpop.f32.mrb[83].mxu0 }
0x23fc   : > { %v3125_v47 = vpop.f32.mrb[84].mxu1  ;;  %v3175_v63 = vpop.f32.mrb[84].mxu0 }
0x23fd   : > { %v4006_v0 = vpop.f32.mrb[85].mxu0  ;;  %3132 = vrot.lane.b32.xlu1 %v3125_v47, %s4185_s13  ;;  %v4000_v1 = vpop.f32.mrb[85].mxu1 }
0x23fe   : > { %v3128_v2 = vpop.f32.mrb[86].mxu1  ;;  %v3178_v4 = vpop.f32.mrb[86].mxu0 }
0x23ff   : > { %v4001_v5 = vpop.f32.mrb[87].mxu1  ;;  %v4007_v6 = vpop.f32.mrb[87].mxu0 }
0x2401   : > { %3182 = vrot.lane.b32.xlu1 %v3175_v63, %s4183_s11 }
0x2404   : > { %v3225_v7 = vpop.f32.mrb[88].mxu1  ;;  %v3275_v8 = vpop.f32.mrb[88].mxu0 }
0x2405   : > { %v4018_v9 = vpop.f32.mrb[89].mxu0  ;;  %3232 = vrot.lane.b32.xlu1 %v3225_v7, %s4174_s22  ;;  %v4012_v10 = vpop.f32.mrb[89].mxu1 }
0x2406   : > { %v3228_v11 = vpop.f32.mrb[90].mxu1  ;;  %v3278_v12 = vpop.f32.mrb[90].mxu0 }
0x2407   : > { %v4013_v13 = vpop.f32.mrb[91].mxu1  ;;  %v4019_v18 = vpop.f32.mrb[91].mxu0 }
0x2409   : > { %3282 = vrot.lane.b32.xlu1 %v3275_v8, %s4180_s8 }
0x240c   : > { %v3325_v19 = vpop.f32.mrb[92].mxu1  ;;  %v3375_v3 = vpop.f32.mrb[92].mxu0 }
0x240d   : > { %v4030_v21 = vpop.f32.mrb[93].mxu0  ;;  %3332 = vrot.lane.b32.xlu1 %v3325_v19, %s4173_s21  ;;  %v4024_v22 = vpop.f32.mrb[93].mxu1 }
0x240e   : > { %v3328_v24 = vpop.f32.mrb[94].mxu1  ;;  %v3378_v25 = vpop.f32.mrb[94].mxu0 }
0x240f   : > { %v4025_v26 = vpop.f32.mrb[95].mxu1  ;;  %v4031_v27 = vpop.f32.mrb[95].mxu0 }
0x2411   : > { %3382 = vrot.lane.b32.xlu1 %v3375_v3, %s4175_s29 }
0x2447   : > { %v2680_v29 = vpop.permute.xlu0 %2679 }
0x2448   : > { %2683 = vst.msk [vmem:[%s4880_s24] sm:$0xf] %vm2682_vm11, %v2680_v29 }
0x244f   : > { %v2731_v30 = vpop.permute.xlu0 %2730 }
0x2450   : > { %2734 = vst.msk [vmem:[%s4880_s24] sm:$0xf] %vm2733_vm12, %v2731_v30 }
0x2453   : > { %v2782_v28 = vpop.permute.xlu0 %2781 }
0x2454   : > { %2785 = vst.msk [vmem:[%s4880_s24] sm:$0xf] %vm2784_vm13, %v2782_v28 }
0x2457   : > { %v2833_v31 = vpop.permute.xlu0 %2832 }
0x2458   : > { %2836 = vst.msk [vmem:[%s4880_s24] sm:$0xf] %vm2835_vm14, %v2833_v31 }
0x245b   : > { %v2884_v23 = vpop.permute.xlu0 %2883 }
0x245c   : > { %2887 = vst.msk [vmem:[%s4880_s24] sm:$0xf] %vm2886_vm15, %v2884_v23 }
0x245f   : > { %v2935_v32 = vpop.permute.xlu0 %2934 }
0x2460   : > { %2938 = vst.msk [vmem:[%s4880_s24] sm:$0xf] %vm2937_vm0, %v2935_v32 }
0x2463   : > { %v2986_v33 = vpop.permute.xlu0 %2985 }
0x2464   : > { %2989 = vst.msk [vmem:[%s4880_s24] sm:$0xf] %vm2988_vm1, %v2986_v33 }
0x2467   : > { %v3083_v34 = vpop.permute.xlu1 %3082 }
0x2468   : > { %3085 = vst.msk [vmem:[%s4880_s24 + $0x4] sm:$0xf] %vm2682_vm11, %v3083_v34 }
0x246f   : > { %v3133_v35 = vpop.permute.xlu1 %3132 }
0x2470   : > { %3135 = vst.msk [vmem:[%s4880_s24 + $0x4] sm:$0xf] %vm2733_vm12, %v3133_v35 }
0x2473   : > { %v3183_v36 = vpop.permute.xlu1 %3182 }
0x2474   : > { %3185 = vst.msk [vmem:[%s4880_s24 + $0x4] sm:$0xf] %vm2784_vm13, %v3183_v36 }
0x2477   : > { %v3233_v37 = vpop.permute.xlu1 %3232 }
0x2478   : > { %3235 = vst.msk [vmem:[%s4880_s24 + $0x4] sm:$0xf] %vm2835_vm14, %v3233_v37 }
0x247b   : > { %v3283_v62 = vpop.permute.xlu1 %3282 }
0x247c   : > { %3285 = vst.msk [vmem:[%s4880_s24 + $0x4] sm:$0xf] %vm2886_vm15, %v3283_v62 }
0x247f   : > { %v3333_v39 = vpop.permute.xlu1 %3332 }
0x2480   : > { %3335 = vst.msk [vmem:[%s4880_s24 + $0x4] sm:$0xf] %vm2937_vm0, %v3333_v39 }
0x2483   : > { %v3383_v40 = vpop.permute.xlu1 %3382 }
0x2484   : > { %3385 = vst.msk [vmem:[%s4880_s24 + $0x4] sm:$0xf] %vm2988_vm1, %v3383_v40 }
0x2485 PF: > { %s14_s15 = sadd.s32 1, %s4169_s15  }
0x2486   : > { %p11_p4 = scmp.ge.s32.totalorder %s14_s15, 4  }
0x2488   :  { %13 = sbr.rel (!%p11_p4) target bundleno = 1 (0x1), region = 69 }

</bundles_post_ra>
